<compile_context>
chip_gen: v7x
topology: tpu7x:2x2x1
jax: 0.10.0
libtpu: 0.0.40
codegen_flags: <defaults>
</compile_context>

<pallas_src>
import jax
import jax.numpy as jnp
from jax import lax
from jax.experimental import pallas as pl
from jax.experimental.pallas import tpu as pltpu

_TIME_UNROLL = 8     # unroll factor for the serial recurrence
_TIME_CHUNK = 128    # timesteps per chunked input projection (keeps gates scratch ~2 MiB)


# ---------------------------------------------------------------------------
# Helpers
# ---------------------------------------------------------------------------
def _round_up(n, m):
    return ((n + m - 1) // m) * m


def _pad_axis(a, axis, size):
    pad = size - a.shape[axis]
    if pad <= 0:
        return a
    widths = [(0, 0)] * a.ndim
    widths[axis] = (0, pad)
    return jnp.pad(a, widths)


def _vmem_bytes(rows, cols, itemsize=4):
    """f32 VMEM footprint of a 2-D array after (8,128) tile padding."""
    return _round_up(max(int(rows), 1), 8) * _round_up(max(int(cols), 1), 128) * itemsize


# ---------------------------------------------------------------------------
# Pallas kernels
# ---------------------------------------------------------------------------
def _make_fused_kernel(n_layers, seq_len, n_chunks, chunk_steps, batch_pad, hid_pad, unroll):
    """Fused stacked-LSTM + classifier kernel (everything VMEM-resident)."""
    L, Tc, Np, Hp = seq_len, chunk_steps, batch_pad, hid_pad
    rows_per_chunk = Tc * Np

    def kernel(*refs):
        # inputs:  x2, (w_ih_t, w_hh_t, bias) * n_layers, w_fc, b_fc
        # outputs: feat2 (Lp*Np, Hp), logits (Np, Cp)
        # scratch: gates (Tc*Np, 4Hp), h (Np, Hp), c (Np, Hp)
        x_ref = refs[0]
        layer_refs = refs[1:1 + 3 * n_layers]
        w_fc_ref = refs[1 + 3 * n_layers]
        b_fc_ref = refs[2 + 3 * n_layers]
        feat_ref = refs[3 + 3 * n_layers]
        logits_ref = refs[4 + 3 * n_layers]
        gates_ref, h_scr, c_scr = refs[5 + 3 * n_layers:]

        def run_layer(inp_ref, w_ih_ref, w_hh_ref, b_ref):
            h_scr[...] = jnp.zeros_like(h_scr)
            c_scr[...] = jnp.zeros_like(c_scr)
            w_ih = w_ih_ref[...]
            # TODO(synk): weight-stationary W_hh via pltpu.matmul_push_rhs/_acc_lhs/_pop.
            w_hh = w_hh_ref[...]
            bias = b_ref[...]

            def chunk_body(k, carry):
                base = pl.multiple_of(k * rows_per_chunk, rows_per_chunk)
                # Chunked hoisted input projection: one big MXU matmul per time chunk.
                # The whole input chunk is read here, BEFORE the recurrence below
                # overwrites these rows of feat_ref (layers >= 1 read & write it).
                gates_ref[...] = (
                    jnp.dot(inp_ref[pl.ds(base, rows_per_chunk), :], w_ih,
                            preferred_element_type=jnp.float32) + bias)

                # Serial recurrence: only h @ W_hh stays on the critical path.
                def step(t, carry2):
                    row = pl.multiple_of(t * Np, Np)
                    gates = gates_ref[pl.ds(row, Np), :] + jnp.dot(
                        h_scr[...], w_hh, preferred_element_type=jnp.float32)
                    # Gate layout is (i | f | o | g): one contiguous (Np, 3Hp)
                    # sigmoid and one (Np, Hp) tanh EUP push per step.
                    sig = jax.nn.sigmoid(gates[:, :3 * Hp])
                    i = sig[:, 0 * Hp:1 * Hp]
                    f = sig[:, 1 * Hp:2 * Hp]
                    o = sig[:, 2 * Hp:3 * Hp]
                    g = jnp.tanh(gates[:, 3 * Hp:4 * Hp])
                    c_new = f * c_scr[...] + i * g
                    h_new = o * jnp.tanh(c_new)
                    c_scr[...] = c_new
                    h_scr[...] = h_new
                    out_row = pl.multiple_of(base + row, Np)
                    feat_ref[pl.ds(out_row, Np), :] = h_new
                    return carry2

                lax.fori_loop(0, Tc, step, 0, unroll=unroll)
                return carry

            lax.fori_loop(0, n_chunks, chunk_body, 0)

        # Layer 0 reads the input; layers 1.. read the previous layer's hidden
        # states directly from feat_ref (VMEM-resident inter-layer buffer).
        run_layer(x_ref, *layer_refs[0:3])
        for layer in range(1, n_layers):
            run_layer(feat_ref, *layer_refs[3 * layer:3 * layer + 3])

        # Classifier fused in: last REAL timestep only, lane-padded output.
        h_last = feat_ref[pl.ds((L - 1) * Np, Np), :]
        logits_ref[...] = (
            jnp.dot(h_last, w_fc_ref[...], preferred_element_type=jnp.float32)
            + b_fc_ref[...])

    return kernel


def _linear_kernel(x_ref, w_ref, b_ref, o_ref):
    # x_ref: (M, Hp); w_ref: (Hp, Cp); b_ref: (1, Cp); o_ref: (M, Cp)
    o_ref[...] = (jnp.dot(x_ref[...], w_ref[...],
                          preferred_element_type=jnp.float32) + b_ref[...])


# ---------------------------------------------------------------------------
# Parameter preparation (PyTorch layout -> padded, gate-reordered kernel layout)
# ---------------------------------------------------------------------------
def _prepare_kernel_params(params):
    lstm = params['lstm']
    H = lstm[0]['w_hh'].shape[1]
    Hp = _round_up(H, 128)            # lane-aligned hidden size
    C = params['fc']['w'].shape[0]
    Cp = _round_up(C, 128)            # lane-dense classifier output

    def gate_cols(w_t):
        # w_t: (Din, 4H), torch column order [i, f, g, o] -> [i, f, o, g], each block padded to Hp.
        blocks = (w_t[:, 0 * H:1 * H], w_t[:, 1 * H:2 * H],
                  w_t[:, 3 * H:4 * H], w_t[:, 2 * H:3 * H])
        return jnp.concatenate([_pad_axis(b, 1, Hp) for b in blocks], axis=1)

    klstm = []
    for layer, lp in enumerate(lstm):
        w_ih_t = gate_cols(lp['w_ih'].T)                    # (Din, 4Hp)
        if layer > 0:
            w_ih_t = _pad_axis(w_ih_t, 0, Hp)               # prev-layer h is Hp wide
        w_hh_t = _pad_axis(gate_cols(lp['w_hh'].T), 0, Hp)  # (Hp, 4Hp)
        b = lp['b_ih'] + lp['b_hh']
        bb = (b[0 * H:1 * H], b[1 * H:2 * H], b[3 * H:4 * H], b[2 * H:3 * H])
        bias = jnp.concatenate([_pad_axis(v, 0, Hp) for v in bb])[None, :]
        klstm.append({'w_ih_t': w_ih_t, 'w_hh_t': w_hh_t, 'bias': bias})

    w_fc_p = _pad_axis(_pad_axis(params['fc']['w'].T, 0, Hp), 1, Cp)   # (Hp, Cp)
    b_fc_p = _pad_axis(params['fc']['b'][None, :], 1, Cp)              # (1, Cp)
    return {'lstm': klstm, 'w_fc': w_fc_p, 'b_fc': b_fc_p,
            'H': H, 'Hp': Hp, 'C': C, 'Cp': Cp}


# ---------------------------------------------------------------------------
# Wrappers around pallas_call
# ---------------------------------------------------------------------------
def _fused_forward(x, kp):
    """x: (N, L, C_in) batch-first -> (feat (N, L, H), logits (N, C))."""
    N, L, C_in = x.shape
    H, Hp, C, Cp = kp['H'], kp['Hp'], kp['C'], kp['Cp']
    n_layers = len(kp['lstm'])

    Np = max(8, _round_up(N, 8))          # sublane-aligned batch
    Tc = min(_TIME_CHUNK, L)              # timesteps per input-projection chunk
    Lp = _round_up(L, Tc)                 # padded seq length (padded steps are discarded)
    n_chunks = Lp // Tc

    # Time-major, batch/time padded, flattened into a 2-D slab (row = t*Np + b).
    x_p = _pad_axis(_pad_axis(x.astype(jnp.float32), 0, Np), 1, Lp)
    x2 = jnp.transpose(x_p, (1, 0, 2)).reshape(Lp * Np, C_in)

    inputs = [x2]
    for lp in kp['lstm']:
        inputs += [lp['w_ih_t'], lp['w_hh_t'], lp['bias']]
    inputs += [kp['w_fc'], kp['b_fc']]

    # Scoped-VMEM budget from the actual tile-padded residency (+25% headroom).
    total = sum(_vmem_bytes(a.shape[0], a.shape[1]) for a in inputs)
    total += _vmem_bytes(Lp * Np, Hp)            # feat output / inter-layer buffer
    total += _vmem_bytes(Np, Cp)                 # logits output
    total += _vmem_bytes(Tc * Np, 4 * Hp)        # gates scratch (chunked)
    total += 2 * _vmem_bytes(Np, Hp)             # h, c scratch
    vmem_limit = min(int(total * 1.25) + (2 << 20), 112 << 20)

    feat2, logits_p = pl.pallas_call(
        _make_fused_kernel(n_layers, L, n_chunks, Tc, Np, Hp, _TIME_UNROLL),
        out_shape=(jax.ShapeDtypeStruct((Lp * Np, Hp), jnp.float32),
                   jax.ShapeDtypeStruct((Np, Cp), jnp.float32)),
        in_specs=[pl.BlockSpec(memory_space=pltpu.MemorySpace.VMEM)] * len(inputs),
        out_specs=(pl.BlockSpec(memory_space=pltpu.MemorySpace.VMEM),
                   pl.BlockSpec(memory_space=pltpu.MemorySpace.VMEM)),
        scratch_shapes=[pltpu.VMEM((Tc * Np, 4 * Hp), jnp.float32),
                        pltpu.VMEM((Np, Hp), jnp.float32),
                        pltpu.VMEM((Np, Hp), jnp.float32)],
        compiler_params=pltpu.CompilerParams(vmem_limit_bytes=vmem_limit),
    )(*inputs)

    feat = jnp.transpose(feat2.reshape(Lp, Np, Hp), (1, 0, 2))[:N, :L, :H]
    return feat, logits_p[:N, :C]


def _classifier_last(h_last, kp):
    """h_last: (N, H) -> (N, C) via a small lane-dense linear kernel."""
    N, _ = h_last.shape
    Np = max(8, _round_up(N, 8))
    Hp, C, Cp = kp['Hp'], kp['C'], kp['Cp']
    h_pad = _pad_axis(_pad_axis(h_last.astype(jnp.float32), 0, Np), 1, Hp)
    logits = pl.pallas_call(
        _linear_kernel,
        out_shape=jax.ShapeDtypeStruct((Np, Cp), jnp.float32),
        in_specs=[pl.BlockSpec(memory_space=pltpu.MemorySpace.VMEM)] * 3,
        out_specs=pl.BlockSpec(memory_space=pltpu.MemorySpace.VMEM),
    )(h_pad, kp['w_fc'], kp['b_fc'])
    return logits[:N, :C]


# ---------------------------------------------------------------------------
# Parameter init (mirrors PyTorch default uniform(-1/sqrt(H), 1/sqrt(H)), torch layout)
# ---------------------------------------------------------------------------
def init_params(key, in_channels=1, hid_dim=128, num_classes=10, n_layers=3):
    bound = 1.0 / jnp.sqrt(jnp.float32(hid_dim))
    params = {'lstm': [], 'fc': None}
    for layer in range(n_layers):
        d_in = in_channels if layer == 0 else hid_dim
        key, k1, k2, k3, k4 = jax.random.split(key, 5)
        params['lstm'].append({
            'w_ih': jax.random.uniform(k1, (4 * hid_dim, d_in), jnp.float32, -bound, bound),
            'w_hh': jax.random.uniform(k2, (4 * hid_dim, hid_dim), jnp.float32, -bound, bound),
            'b_ih': jax.random.uniform(k3, (4 * hid_dim,), jnp.float32, -bound, bound),
            'b_hh': jax.random.uniform(k4, (4 * hid_dim,), jnp.float32, -bound, bound),
        })
    key, k1, k2 = jax.random.split(key, 3)
    params['fc'] = {
        'w': jax.random.uniform(k1, (num_classes, hid_dim), jnp.float32, -bound, bound),
        'b': jax.random.uniform(k2, (num_classes,), jnp.float32, -bound, bound),
    }
    return params


# ---------------------------------------------------------------------------
# Forward pass matching SimpleRNN.forward
# ---------------------------------------------------------------------------
def simple_rnn_forward(params, x, only_fc=False, only_feat=False):
    if x.ndim == 2 and x.shape[1] == 1504:
        x = x[:, :, None]

    kp = _prepare_kernel_params(params)

    if only_fc:
        # Classifier is pointwise over time and only logits[:, -1, :] is kept,
        # so compute it on the last timestep only.
        return _classifier_last(x[:, -1, :], kp)

    feat, logits = _fused_forward(x, kp)
    if only_feat:
        return feat
    return {'logits': logits, 'feat': feat}


# ---------------------------------------------------------------------------
# Pure-JAX reference (for correctness check; PyTorch gate order i, f, g, o)
# ---------------------------------------------------------------------------
def _reference_forward(params, x):
    h = x.astype(jnp.float32)
    for lp in params['lstm']:
        H = lp['w_hh'].shape[1]
        w_ih_t, w_hh_t = lp['w_ih'].T, lp['w_hh'].T
        bias = lp['b_ih'] + lp['b_hh']

        def step(carry, x_t):
            h_prev, c_prev = carry
            gates = x_t @ w_ih_t + h_prev @ w_hh_t + bias
            i = jax.nn.sigmoid(gates[:, 0 * H:1 * H])
            f = jax.nn.sigmoid(gates[:, 1 * H:2 * H])
            g = jnp.tanh(gates[:, 2 * H:3 * H])
            o = jax.nn.sigmoid(gates[:, 3 * H:4 * H])
            c = f * c_prev + i * g
            hh = o * jnp.tanh(c)
            return (hh, c), hh

        N = h.shape[0]
        init = (jnp.zeros((N, H), jnp.float32), jnp.zeros((N, H), jnp.float32))
        _, hs = lax.scan(step, init, jnp.transpose(h, (1, 0, 2)))
        h = jnp.transpose(hs, (1, 0, 2))
    logits = h[:, -1, :] @ params['fc']['w'].T + params['fc']['b']
    return {'logits': logits, 'feat': h}


# ---------------------------------------------------------------------------
if __name__ == "__main__":
    key = jax.random.PRNGKey(0)
    k_param, k_x, k_feat = jax.random.split(key, 3)

    # Small shapes consistent with the module's (N, L, H_in) RNN input convention.
    N, L, C_IN, HID, NUM_CLASSES, N_LAYERS = 2, 8, 4, 32, 10, 3

    params = init_params(k_param, in_channels=C_IN, hid_dim=HID,
                         num_classes=NUM_CLASSES, n_layers=N_LAYERS)
    x = jax.random.normal(k_x, (N, L, C_IN), jnp.float32)

    out = simple_rnn_forward(params, x)
    jax.block_until_ready(out)

    ref = _reference_forward(params, x)
    assert out['logits'].shape == (N, NUM_CLASSES)
    assert out['feat'].shape == (N, L, HID)
    assert jnp.allclose(out['logits'], ref['logits'], atol=1e-3, rtol=1e-3)
    assert jnp.allclose(out['feat'], ref['feat'], atol=1e-3, rtol=1e-3)

    # only_feat path
    feat_only = simple_rnn_forward(params, x, only_feat=True)
    assert jnp.allclose(feat_only, ref['feat'], atol=1e-3, rtol=1e-3)

    # only_fc path (input = features before classifier)
    feats = jax.random.normal(k_feat, (N, L, HID), jnp.float32)
    logits_fc = simple_rnn_forward(params, feats, only_fc=True)
    ref_fc = feats[:, -1, :] @ params['fc']['w'].T + params['fc']['b']
    assert jnp.allclose(logits_fc, ref_fc, atol=1e-3, rtol=1e-3)

    print("KERNEL_OK")
</pallas_src>

<mosaic_0001>
module attributes {stable_mosaic.version = 11 : i64} {
  func.func @kernel(%arg0: memref<64x4xf32, #tpu.memory_space<vmem>>, %arg1: memref<4x512xf32, #tpu.memory_space<vmem>>, %arg2: memref<128x512xf32, #tpu.memory_space<vmem>>, %arg3: memref<1x512xf32, #tpu.memory_space<vmem>>, %arg4: memref<128x512xf32, #tpu.memory_space<vmem>>, %arg5: memref<128x512xf32, #tpu.memory_space<vmem>>, %arg6: memref<1x512xf32, #tpu.memory_space<vmem>>, %arg7: memref<128x512xf32, #tpu.memory_space<vmem>>, %arg8: memref<128x512xf32, #tpu.memory_space<vmem>>, %arg9: memref<1x512xf32, #tpu.memory_space<vmem>>, %arg10: memref<128x128xf32, #tpu.memory_space<vmem>>, %arg11: memref<1x128xf32, #tpu.memory_space<vmem>>, %arg12: memref<64x128xf32, #tpu.memory_space<vmem>>, %arg13: memref<8x128xf32, #tpu.memory_space<vmem>>, %arg14: memref<64x512xf32, #tpu.memory_space<vmem>>, %arg15: memref<8x128xf32, #tpu.memory_space<vmem>>, %arg16: memref<8x128xf32, #tpu.memory_space<vmem>>) attributes {dimension_semantics = [], scalar_prefetch = 0 : i64, scratch_operands = 3 : i64, tpu.core_type = #tpu.core_type<tc>} {
    %cst = arith.constant 0.000000e+00 : f32
    %0 = vector.broadcast %cst : f32 to vector<8x128xf32>
    %c0 = arith.constant 0 : index
    %c0_0 = arith.constant 0 : index
    %1 = vector.load %arg15[%c0, %c0_0] : memref<8x128xf32, #tpu.memory_space<vmem>>, vector<8x128xf32>
    tpu.vector_store %arg15[%c0, %c0_0], %0 {strides = array<i32>} : memref<8x128xf32, #tpu.memory_space<vmem>>, vector<8x128xf32>,
    %cst_1 = arith.constant 0.000000e+00 : f32
    %2 = vector.broadcast %cst_1 : f32 to vector<8x128xf32>
    %c0_2 = arith.constant 0 : index
    %c0_3 = arith.constant 0 : index
    %3 = vector.load %arg16[%c0_2, %c0_3] : memref<8x128xf32, #tpu.memory_space<vmem>>, vector<8x128xf32>
    tpu.vector_store %arg16[%c0_2, %c0_3], %2 {strides = array<i32>} : memref<8x128xf32, #tpu.memory_space<vmem>>, vector<8x128xf32>,
    %c0_4 = arith.constant 0 : index
    %c0_5 = arith.constant 0 : index
    %4 = vector.load %arg1[%c0_4, %c0_5] : memref<4x512xf32, #tpu.memory_space<vmem>>, vector<4x512xf32>
    %c0_6 = arith.constant 0 : index
    %c0_7 = arith.constant 0 : index
    %5 = vector.load %arg2[%c0_6, %c0_7] : memref<128x512xf32, #tpu.memory_space<vmem>>, vector<128x512xf32>
    %c0_8 = arith.constant 0 : index
    %c0_9 = arith.constant 0 : index
    %6 = vector.load %arg3[%c0_8, %c0_9] : memref<1x512xf32, #tpu.memory_space<vmem>>, vector<1x512xf32>
    %c0_i32 = arith.constant 0 : i32
    %c64_i32 = arith.constant 64 : i32
    %7 = arith.muli %c0_i32, %c64_i32 : i32
    %8 = tpu.assume_multiple %7, 64 : i32
    %9 = arith.index_cast %8 : i32 to index
    %c0_10 = arith.constant 0 : index
    %10 = vector.load %arg0[%9, %c0_10] : memref<64x4xf32, #tpu.memory_space<vmem>>, vector<64x4xf32>
    %cst_11 = arith.constant dense<0.000000e+00> : vector<64x512xf32>
    %11 = tpu.matmul %10, %4, %cst_11 {dimension_numbers = #tpu.dot_dimension_numbers<[1], [0], [0], [1], [0, 0, 1, 1], [], []>} : vector<64x4xf32>, vector<4x512xf32>, vector<64x512xf32> -> vector<64x512xf32>
    %12 = vector.broadcast %6 : vector<1x512xf32> to vector<64x512xf32>
    %13 = arith.addf %11, %12 : vector<64x512xf32>
    %c0_12 = arith.constant 0 : index
    %c0_13 = arith.constant 0 : index
    %14 = vector.load %arg14[%c0_12, %c0_13] : memref<64x512xf32, #tpu.memory_space<vmem>>, vector<64x512xf32>
    tpu.vector_store %arg14[%c0_12, %c0_13], %13 {strides = array<i32>} : memref<64x512xf32, #tpu.memory_space<vmem>>, vector<64x512xf32>,
    %c0_i32_14 = arith.constant 0 : i32
    %c8_i32 = arith.constant 8 : i32
    %15 = arith.muli %c0_i32_14, %c8_i32 : i32
    %16 = tpu.assume_multiple %15, 8 : i32
    %17 = arith.index_cast %16 : i32 to index
    %c0_15 = arith.constant 0 : index
    %18 = vector.load %arg14[%17, %c0_15] : memref<64x512xf32, #tpu.memory_space<vmem>>, vector<8x512xf32>
    %c0_16 = arith.constant 0 : index
    %c0_17 = arith.constant 0 : index
    %19 = vector.load %arg15[%c0_16, %c0_17] : memref<8x128xf32, #tpu.memory_space<vmem>>, vector<8x128xf32>
    %cst_18 = arith.constant dense<0.000000e+00> : vector<8x512xf32>
    %20 = tpu.matmul %19, %5, %cst_18 {dimension_numbers = #tpu.dot_dimension_numbers<[1], [0], [0], [1], [0, 0, 1, 1], [], []>} : vector<8x128xf32>, vector<128x512xf32>, vector<8x512xf32> -> vector<8x512xf32>
    %21 = arith.addf %18, %20 : vector<8x512xf32>
    %22 = vector.extract_strided_slice %21 {offsets = [0, 0], sizes = [8, 384], strides = [1, 1]} : vector<8x512xf32> to vector<8x384xf32>
    %23 = arith.negf %22 : vector<8x384xf32>
    %24 = math.exp %23 : vector<8x384xf32>
    %cst_19 = arith.constant 1.000000e+00 : f32
    %25 = vector.broadcast %cst_19 : f32 to vector<8x384xf32>
    %26 = arith.addf %25, %24 : vector<8x384xf32>
    %27 = arith.divf %25, %26 : vector<8x384xf32>
    %28 = vector.extract_strided_slice %27 {offsets = [0, 0], sizes = [8, 128], strides = [1, 1]} : vector<8x384xf32> to vector<8x128xf32>
    %29 = vector.extract_strided_slice %27 {offsets = [0, 128], sizes = [8, 128], strides = [1, 1]} : vector<8x384xf32> to vector<8x128xf32>
    %30 = vector.extract_strided_slice %27 {offsets = [0, 256], sizes = [8, 128], strides = [1, 1]} : vector<8x384xf32> to vector<8x128xf32>
    %31 = vector.extract_strided_slice %21 {offsets = [0, 384], sizes = [8, 128], strides = [1, 1]} : vector<8x512xf32> to vector<8x128xf32>
    %32 = math.tanh %31 : vector<8x128xf32>
    %c0_20 = arith.constant 0 : index
    %c0_21 = arith.constant 0 : index
    %33 = vector.load %arg16[%c0_20, %c0_21] : memref<8x128xf32, #tpu.memory_space<vmem>>, vector<8x128xf32>
    %34 = arith.mulf %29, %33 : vector<8x128xf32>
    %35 = arith.mulf %28, %32 : vector<8x128xf32>
    %36 = arith.addf %34, %35 : vector<8x128xf32>
    %37 = math.tanh %36 : vector<8x128xf32>
    %38 = arith.mulf %30, %37 : vector<8x128xf32>
    %c0_22 = arith.constant 0 : index
    %c0_23 = arith.constant 0 : index
    %39 = vector.load %arg16[%c0_22, %c0_23] : memref<8x128xf32, #tpu.memory_space<vmem>>, vector<8x128xf32>
    tpu.vector_store %arg16[%c0_22, %c0_23], %36 {strides = array<i32>} : memref<8x128xf32, #tpu.memory_space<vmem>>, vector<8x128xf32>,
    %c0_24 = arith.constant 0 : index
    %c0_25 = arith.constant 0 : index
    %40 = vector.load %arg15[%c0_24, %c0_25] : memref<8x128xf32, #tpu.memory_space<vmem>>, vector<8x128xf32>
    tpu.vector_store %arg15[%c0_24, %c0_25], %38 {strides = array<i32>} : memref<8x128xf32, #tpu.memory_space<vmem>>, vector<8x128xf32>,
    %41 = arith.addi %8, %16 : i32
    %42 = tpu.assume_multiple %41, 8 : i32
    %43 = arith.index_cast %42 : i32 to index
    %c0_26 = arith.constant 0 : index
    %44 = vector.load %arg12[%43, %c0_26] : memref<64x128xf32, #tpu.memory_space<vmem>>, vector<8x128xf32>
    tpu.vector_store %arg12[%43, %c0_26], %38 {strides = array<i32>} : memref<64x128xf32, #tpu.memory_space<vmem>>, vector<8x128xf32>,
    %c1_i32 = arith.constant 1 : i32
    %c8_i32_27 = arith.constant 8 : i32
    %45 = arith.muli %c1_i32, %c8_i32_27 : i32
    %46 = tpu.assume_multiple %45, 8 : i32
    %47 = arith.index_cast %46 : i32 to index
    %c0_28 = arith.constant 0 : index
    %48 = vector.load %arg14[%47, %c0_28] : memref<64x512xf32, #tpu.memory_space<vmem>>, vector<8x512xf32>
    %c0_29 = arith.constant 0 : index
    %c0_30 = arith.constant 0 : index
    %49 = vector.load %arg15[%c0_29, %c0_30] : memref<8x128xf32, #tpu.memory_space<vmem>>, vector<8x128xf32>
    %cst_31 = arith.constant dense<0.000000e+00> : vector<8x512xf32>
    %50 = tpu.matmul %49, %5, %cst_31 {dimension_numbers = #tpu.dot_dimension_numbers<[1], [0], [0], [1], [0, 0, 1, 1], [], []>} : vector<8x128xf32>, vector<128x512xf32>, vector<8x512xf32> -> vector<8x512xf32>
    %51 = arith.addf %48, %50 : vector<8x512xf32>
    %52 = vector.extract_strided_slice %51 {offsets = [0, 0], sizes = [8, 384], strides = [1, 1]} : vector<8x512xf32> to vector<8x384xf32>
    %53 = arith.negf %52 : vector<8x384xf32>
    %54 = math.exp %53 : vector<8x384xf32>
    %cst_32 = arith.constant 1.000000e+00 : f32
    %55 = vector.broadcast %cst_32 : f32 to vector<8x384xf32>
    %56 = arith.addf %55, %54 : vector<8x384xf32>
    %57 = arith.divf %55, %56 : vector<8x384xf32>
    %58 = vector.extract_strided_slice %57 {offsets = [0, 0], sizes = [8, 128], strides = [1, 1]} : vector<8x384xf32> to vector<8x128xf32>
    %59 = vector.extract_strided_slice %57 {offsets = [0, 128], sizes = [8, 128], strides = [1, 1]} : vector<8x384xf32> to vector<8x128xf32>
    %60 = vector.extract_strided_slice %57 {offsets = [0, 256], sizes = [8, 128], strides = [1, 1]} : vector<8x384xf32> to vector<8x128xf32>
    %61 = vector.extract_strided_slice %51 {offsets = [0, 384], sizes = [8, 128], strides = [1, 1]} : vector<8x512xf32> to vector<8x128xf32>
    %62 = math.tanh %61 : vector<8x128xf32>
    %c0_33 = arith.constant 0 : index
    %c0_34 = arith.constant 0 : index
    %63 = vector.load %arg16[%c0_33, %c0_34] : memref<8x128xf32, #tpu.memory_space<vmem>>, vector<8x128xf32>
    %64 = arith.mulf %59, %63 : vector<8x128xf32>
    %65 = arith.mulf %58, %62 : vector<8x128xf32>
    %66 = arith.addf %64, %65 : vector<8x128xf32>
    %67 = math.tanh %66 : vector<8x128xf32>
    %68 = arith.mulf %60, %67 : vector<8x128xf32>
    %c0_35 = arith.constant 0 : index
    %c0_36 = arith.constant 0 : index
    %69 = vector.load %arg16[%c0_35, %c0_36] : memref<8x128xf32, #tpu.memory_space<vmem>>, vector<8x128xf32>
    tpu.vector_store %arg16[%c0_35, %c0_36], %66 {strides = array<i32>} : memref<8x128xf32, #tpu.memory_space<vmem>>, vector<8x128xf32>,
    %c0_37 = arith.constant 0 : index
    %c0_38 = arith.constant 0 : index
    %70 = vector.load %arg15[%c0_37, %c0_38] : memref<8x128xf32, #tpu.memory_space<vmem>>, vector<8x128xf32>
    tpu.vector_store %arg15[%c0_37, %c0_38], %68 {strides = array<i32>} : memref<8x128xf32, #tpu.memory_space<vmem>>, vector<8x128xf32>,
    %71 = arith.addi %8, %46 : i32
    %72 = tpu.assume_multiple %71, 8 : i32
    %73 = arith.index_cast %72 : i32 to index
    %c0_39 = arith.constant 0 : index
    %74 = vector.load %arg12[%73, %c0_39] : memref<64x128xf32, #tpu.memory_space<vmem>>, vector<8x128xf32>
    tpu.vector_store %arg12[%73, %c0_39], %68 {strides = array<i32>} : memref<64x128xf32, #tpu.memory_space<vmem>>, vector<8x128xf32>,
    %c2_i32 = arith.constant 2 : i32
    %c8_i32_40 = arith.constant 8 : i32
    %75 = arith.muli %c2_i32, %c8_i32_40 : i32
    %76 = tpu.assume_multiple %75, 8 : i32
    %77 = arith.index_cast %76 : i32 to index
    %c0_41 = arith.constant 0 : index
    %78 = vector.load %arg14[%77, %c0_41] : memref<64x512xf32, #tpu.memory_space<vmem>>, vector<8x512xf32>
    %c0_42 = arith.constant 0 : index
    %c0_43 = arith.constant 0 : index
    %79 = vector.load %arg15[%c0_42, %c0_43] : memref<8x128xf32, #tpu.memory_space<vmem>>, vector<8x128xf32>
    %cst_44 = arith.constant dense<0.000000e+00> : vector<8x512xf32>
    %80 = tpu.matmul %79, %5, %cst_44 {dimension_numbers = #tpu.dot_dimension_numbers<[1], [0], [0], [1], [0, 0, 1, 1], [], []>} : vector<8x128xf32>, vector<128x512xf32>, vector<8x512xf32> -> vector<8x512xf32>
    %81 = arith.addf %78, %80 : vector<8x512xf32>
    %82 = vector.extract_strided_slice %81 {offsets = [0, 0], sizes = [8, 384], strides = [1, 1]} : vector<8x512xf32> to vector<8x384xf32>
    %83 = arith.negf %82 : vector<8x384xf32>
    %84 = math.exp %83 : vector<8x384xf32>
    %cst_45 = arith.constant 1.000000e+00 : f32
    %85 = vector.broadcast %cst_45 : f32 to vector<8x384xf32>
    %86 = arith.addf %85, %84 : vector<8x384xf32>
    %87 = arith.divf %85, %86 : vector<8x384xf32>
    %88 = vector.extract_strided_slice %87 {offsets = [0, 0], sizes = [8, 128], strides = [1, 1]} : vector<8x384xf32> to vector<8x128xf32>
    %89 = vector.extract_strided_slice %87 {offsets = [0, 128], sizes = [8, 128], strides = [1, 1]} : vector<8x384xf32> to vector<8x128xf32>
    %90 = vector.extract_strided_slice %87 {offsets = [0, 256], sizes = [8, 128], strides = [1, 1]} : vector<8x384xf32> to vector<8x128xf32>
    %91 = vector.extract_strided_slice %81 {offsets = [0, 384], sizes = [8, 128], strides = [1, 1]} : vector<8x512xf32> to vector<8x128xf32>
    %92 = math.tanh %91 : vector<8x128xf32>
    %c0_46 = arith.constant 0 : index
    %c0_47 = arith.constant 0 : index
    %93 = vector.load %arg16[%c0_46, %c0_47] : memref<8x128xf32, #tpu.memory_space<vmem>>, vector<8x128xf32>
    %94 = arith.mulf %89, %93 : vector<8x128xf32>
    %95 = arith.mulf %88, %92 : vector<8x128xf32>
    %96 = arith.addf %94, %95 : vector<8x128xf32>
    %97 = math.tanh %96 : vector<8x128xf32>
    %98 = arith.mulf %90, %97 : vector<8x128xf32>
    %c0_48 = arith.constant 0 : index
    %c0_49 = arith.constant 0 : index
    %99 = vector.load %arg16[%c0_48, %c0_49] : memref<8x128xf32, #tpu.memory_space<vmem>>, vector<8x128xf32>
    tpu.vector_store %arg16[%c0_48, %c0_49], %96 {strides = array<i32>} : memref<8x128xf32, #tpu.memory_space<vmem>>, vector<8x128xf32>,
    %c0_50 = arith.constant 0 : index
    %c0_51 = arith.constant 0 : index
    %100 = vector.load %arg15[%c0_50, %c0_51] : memref<8x128xf32, #tpu.memory_space<vmem>>, vector<8x128xf32>
    tpu.vector_store %arg15[%c0_50, %c0_51], %98 {strides = array<i32>} : memref<8x128xf32, #tpu.memory_space<vmem>>, vector<8x128xf32>,
    %101 = arith.addi %8, %76 : i32
    %102 = tpu.assume_multiple %101, 8 : i32
    %103 = arith.index_cast %102 : i32 to index
    %c0_52 = arith.constant 0 : index
    %104 = vector.load %arg12[%103, %c0_52] : memref<64x128xf32, #tpu.memory_space<vmem>>, vector<8x128xf32>
    tpu.vector_store %arg12[%103, %c0_52], %98 {strides = array<i32>} : memref<64x128xf32, #tpu.memory_space<vmem>>, vector<8x128xf32>,
    %c3_i32 = arith.constant 3 : i32
    %c8_i32_53 = arith.constant 8 : i32
    %105 = arith.muli %c3_i32, %c8_i32_53 : i32
    %106 = tpu.assume_multiple %105, 8 : i32
    %107 = arith.index_cast %106 : i32 to index
    %c0_54 = arith.constant 0 : index
    %108 = vector.load %arg14[%107, %c0_54] : memref<64x512xf32, #tpu.memory_space<vmem>>, vector<8x512xf32>
    %c0_55 = arith.constant 0 : index
    %c0_56 = arith.constant 0 : index
    %109 = vector.load %arg15[%c0_55, %c0_56] : memref<8x128xf32, #tpu.memory_space<vmem>>, vector<8x128xf32>
    %cst_57 = arith.constant dense<0.000000e+00> : vector<8x512xf32>
    %110 = tpu.matmul %109, %5, %cst_57 {dimension_numbers = #tpu.dot_dimension_numbers<[1], [0], [0], [1], [0, 0, 1, 1], [], []>} : vector<8x128xf32>, vector<128x512xf32>, vector<8x512xf32> -> vector<8x512xf32>
    %111 = arith.addf %108, %110 : vector<8x512xf32>
    %112 = vector.extract_strided_slice %111 {offsets = [0, 0], sizes = [8, 384], strides = [1, 1]} : vector<8x512xf32> to vector<8x384xf32>
    %113 = arith.negf %112 : vector<8x384xf32>
    %114 = math.exp %113 : vector<8x384xf32>
    %cst_58 = arith.constant 1.000000e+00 : f32
    %115 = vector.broadcast %cst_58 : f32 to vector<8x384xf32>
    %116 = arith.addf %115, %114 : vector<8x384xf32>
    %117 = arith.divf %115, %116 : vector<8x384xf32>
    %118 = vector.extract_strided_slice %117 {offsets = [0, 0], sizes = [8, 128], strides = [1, 1]} : vector<8x384xf32> to vector<8x128xf32>
    %119 = vector.extract_strided_slice %117 {offsets = [0, 128], sizes = [8, 128], strides = [1, 1]} : vector<8x384xf32> to vector<8x128xf32>
    %120 = vector.extract_strided_slice %117 {offsets = [0, 256], sizes = [8, 128], strides = [1, 1]} : vector<8x384xf32> to vector<8x128xf32>
    %121 = vector.extract_strided_slice %111 {offsets = [0, 384], sizes = [8, 128], strides = [1, 1]} : vector<8x512xf32> to vector<8x128xf32>
    %122 = math.tanh %121 : vector<8x128xf32>
    %c0_59 = arith.constant 0 : index
    %c0_60 = arith.constant 0 : index
    %123 = vector.load %arg16[%c0_59, %c0_60] : memref<8x128xf32, #tpu.memory_space<vmem>>, vector<8x128xf32>
    %124 = arith.mulf %119, %123 : vector<8x128xf32>
    %125 = arith.mulf %118, %122 : vector<8x128xf32>
    %126 = arith.addf %124, %125 : vector<8x128xf32>
    %127 = math.tanh %126 : vector<8x128xf32>
    %128 = arith.mulf %120, %127 : vector<8x128xf32>
    %c0_61 = arith.constant 0 : index
    %c0_62 = arith.constant 0 : index
    %129 = vector.load %arg16[%c0_61, %c0_62] : memref<8x128xf32, #tpu.memory_space<vmem>>, vector<8x128xf32>
    tpu.vector_store %arg16[%c0_61, %c0_62], %126 {strides = array<i32>} : memref<8x128xf32, #tpu.memory_space<vmem>>, vector<8x128xf32>,
    %c0_63 = arith.constant 0 : index
    %c0_64 = arith.constant 0 : index
    %130 = vector.load %arg15[%c0_63, %c0_64] : memref<8x128xf32, #tpu.memory_space<vmem>>, vector<8x128xf32>
    tpu.vector_store %arg15[%c0_63, %c0_64], %128 {strides = array<i32>} : memref<8x128xf32, #tpu.memory_space<vmem>>, vector<8x128xf32>,
    %131 = arith.addi %8, %106 : i32
    %132 = tpu.assume_multiple %131, 8 : i32
    %133 = arith.index_cast %132 : i32 to index
    %c0_65 = arith.constant 0 : index
    %134 = vector.load %arg12[%133, %c0_65] : memref<64x128xf32, #tpu.memory_space<vmem>>, vector<8x128xf32>
    tpu.vector_store %arg12[%133, %c0_65], %128 {strides = array<i32>} : memref<64x128xf32, #tpu.memory_space<vmem>>, vector<8x128xf32>,
    %c4_i32 = arith.constant 4 : i32
    %c8_i32_66 = arith.constant 8 : i32
    %135 = arith.muli %c4_i32, %c8_i32_66 : i32
    %136 = tpu.assume_multiple %135, 8 : i32
    %137 = arith.index_cast %136 : i32 to index
    %c0_67 = arith.constant 0 : index
    %138 = vector.load %arg14[%137, %c0_67] : memref<64x512xf32, #tpu.memory_space<vmem>>, vector<8x512xf32>
    %c0_68 = arith.constant 0 : index
    %c0_69 = arith.constant 0 : index
    %139 = vector.load %arg15[%c0_68, %c0_69] : memref<8x128xf32, #tpu.memory_space<vmem>>, vector<8x128xf32>
    %cst_70 = arith.constant dense<0.000000e+00> : vector<8x512xf32>
    %140 = tpu.matmul %139, %5, %cst_70 {dimension_numbers = #tpu.dot_dimension_numbers<[1], [0], [0], [1], [0, 0, 1, 1], [], []>} : vector<8x128xf32>, vector<128x512xf32>, vector<8x512xf32> -> vector<8x512xf32>
    %141 = arith.addf %138, %140 : vector<8x512xf32>
    %142 = vector.extract_strided_slice %141 {offsets = [0, 0], sizes = [8, 384], strides = [1, 1]} : vector<8x512xf32> to vector<8x384xf32>
    %143 = arith.negf %142 : vector<8x384xf32>
    %144 = math.exp %143 : vector<8x384xf32>
    %cst_71 = arith.constant 1.000000e+00 : f32
    %145 = vector.broadcast %cst_71 : f32 to vector<8x384xf32>
    %146 = arith.addf %145, %144 : vector<8x384xf32>
    %147 = arith.divf %145, %146 : vector<8x384xf32>
    %148 = vector.extract_strided_slice %147 {offsets = [0, 0], sizes = [8, 128], strides = [1, 1]} : vector<8x384xf32> to vector<8x128xf32>
    %149 = vector.extract_strided_slice %147 {offsets = [0, 128], sizes = [8, 128], strides = [1, 1]} : vector<8x384xf32> to vector<8x128xf32>
    %150 = vector.extract_strided_slice %147 {offsets = [0, 256], sizes = [8, 128], strides = [1, 1]} : vector<8x384xf32> to vector<8x128xf32>
    %151 = vector.extract_strided_slice %141 {offsets = [0, 384], sizes = [8, 128], strides = [1, 1]} : vector<8x512xf32> to vector<8x128xf32>
    %152 = math.tanh %151 : vector<8x128xf32>
    %c0_72 = arith.constant 0 : index
    %c0_73 = arith.constant 0 : index
    %153 = vector.load %arg16[%c0_72, %c0_73] : memref<8x128xf32, #tpu.memory_space<vmem>>, vector<8x128xf32>
    %154 = arith.mulf %149, %153 : vector<8x128xf32>
    %155 = arith.mulf %148, %152 : vector<8x128xf32>
    %156 = arith.addf %154, %155 : vector<8x128xf32>
    %157 = math.tanh %156 : vector<8x128xf32>
    %158 = arith.mulf %150, %157 : vector<8x128xf32>
    %c0_74 = arith.constant 0 : index
    %c0_75 = arith.constant 0 : index
    %159 = vector.load %arg16[%c0_74, %c0_75] : memref<8x128xf32, #tpu.memory_space<vmem>>, vector<8x128xf32>
    tpu.vector_store %arg16[%c0_74, %c0_75], %156 {strides = array<i32>} : memref<8x128xf32, #tpu.memory_space<vmem>>, vector<8x128xf32>,
    %c0_76 = arith.constant 0 : index
    %c0_77 = arith.constant 0 : index
    %160 = vector.load %arg15[%c0_76, %c0_77] : memref<8x128xf32, #tpu.memory_space<vmem>>, vector<8x128xf32>
    tpu.vector_store %arg15[%c0_76, %c0_77], %158 {strides = array<i32>} : memref<8x128xf32, #tpu.memory_space<vmem>>, vector<8x128xf32>,
    %161 = arith.addi %8, %136 : i32
    %162 = tpu.assume_multiple %161, 8 : i32
    %163 = arith.index_cast %162 : i32 to index
    %c0_78 = arith.constant 0 : index
    %164 = vector.load %arg12[%163, %c0_78] : memref<64x128xf32, #tpu.memory_space<vmem>>, vector<8x128xf32>
    tpu.vector_store %arg12[%163, %c0_78], %158 {strides = array<i32>} : memref<64x128xf32, #tpu.memory_space<vmem>>, vector<8x128xf32>,
    %c5_i32 = arith.constant 5 : i32
    %c8_i32_79 = arith.constant 8 : i32
    %165 = arith.muli %c5_i32, %c8_i32_79 : i32
    %166 = tpu.assume_multiple %165, 8 : i32
    %167 = arith.index_cast %166 : i32 to index
    %c0_80 = arith.constant 0 : index
    %168 = vector.load %arg14[%167, %c0_80] : memref<64x512xf32, #tpu.memory_space<vmem>>, vector<8x512xf32>
    %c0_81 = arith.constant 0 : index
    %c0_82 = arith.constant 0 : index
    %169 = vector.load %arg15[%c0_81, %c0_82] : memref<8x128xf32, #tpu.memory_space<vmem>>, vector<8x128xf32>
    %cst_83 = arith.constant dense<0.000000e+00> : vector<8x512xf32>
    %170 = tpu.matmul %169, %5, %cst_83 {dimension_numbers = #tpu.dot_dimension_numbers<[1], [0], [0], [1], [0, 0, 1, 1], [], []>} : vector<8x128xf32>, vector<128x512xf32>, vector<8x512xf32> -> vector<8x512xf32>
    %171 = arith.addf %168, %170 : vector<8x512xf32>
    %172 = vector.extract_strided_slice %171 {offsets = [0, 0], sizes = [8, 384], strides = [1, 1]} : vector<8x512xf32> to vector<8x384xf32>
    %173 = arith.negf %172 : vector<8x384xf32>
    %174 = math.exp %173 : vector<8x384xf32>
    %cst_84 = arith.constant 1.000000e+00 : f32
    %175 = vector.broadcast %cst_84 : f32 to vector<8x384xf32>
    %176 = arith.addf %175, %174 : vector<8x384xf32>
    %177 = arith.divf %175, %176 : vector<8x384xf32>
    %178 = vector.extract_strided_slice %177 {offsets = [0, 0], sizes = [8, 128], strides = [1, 1]} : vector<8x384xf32> to vector<8x128xf32>
    %179 = vector.extract_strided_slice %177 {offsets = [0, 128], sizes = [8, 128], strides = [1, 1]} : vector<8x384xf32> to vector<8x128xf32>
    %180 = vector.extract_strided_slice %177 {offsets = [0, 256], sizes = [8, 128], strides = [1, 1]} : vector<8x384xf32> to vector<8x128xf32>
    %181 = vector.extract_strided_slice %171 {offsets = [0, 384], sizes = [8, 128], strides = [1, 1]} : vector<8x512xf32> to vector<8x128xf32>
    %182 = math.tanh %181 : vector<8x128xf32>
    %c0_85 = arith.constant 0 : index
    %c0_86 = arith.constant 0 : index
    %183 = vector.load %arg16[%c0_85, %c0_86] : memref<8x128xf32, #tpu.memory_space<vmem>>, vector<8x128xf32>
    %184 = arith.mulf %179, %183 : vector<8x128xf32>
    %185 = arith.mulf %178, %182 : vector<8x128xf32>
    %186 = arith.addf %184, %185 : vector<8x128xf32>
    %187 = math.tanh %186 : vector<8x128xf32>
    %188 = arith.mulf %180, %187 : vector<8x128xf32>
    %c0_87 = arith.constant 0 : index
    %c0_88 = arith.constant 0 : index
    %189 = vector.load %arg16[%c0_87, %c0_88] : memref<8x128xf32, #tpu.memory_space<vmem>>, vector<8x128xf32>
    tpu.vector_store %arg16[%c0_87, %c0_88], %186 {strides = array<i32>} : memref<8x128xf32, #tpu.memory_space<vmem>>, vector<8x128xf32>,
    %c0_89 = arith.constant 0 : index
    %c0_90 = arith.constant 0 : index
    %190 = vector.load %arg15[%c0_89, %c0_90] : memref<8x128xf32, #tpu.memory_space<vmem>>, vector<8x128xf32>
    tpu.vector_store %arg15[%c0_89, %c0_90], %188 {strides = array<i32>} : memref<8x128xf32, #tpu.memory_space<vmem>>, vector<8x128xf32>,
    %191 = arith.addi %8, %166 : i32
    %192 = tpu.assume_multiple %191, 8 : i32
    %193 = arith.index_cast %192 : i32 to index
    %c0_91 = arith.constant 0 : index
    %194 = vector.load %arg12[%193, %c0_91] : memref<64x128xf32, #tpu.memory_space<vmem>>, vector<8x128xf32>
    tpu.vector_store %arg12[%193, %c0_91], %188 {strides = array<i32>} : memref<64x128xf32, #tpu.memory_space<vmem>>, vector<8x128xf32>,
    %c6_i32 = arith.constant 6 : i32
    %c8_i32_92 = arith.constant 8 : i32
    %195 = arith.muli %c6_i32, %c8_i32_92 : i32
    %196 = tpu.assume_multiple %195, 8 : i32
    %197 = arith.index_cast %196 : i32 to index
    %c0_93 = arith.constant 0 : index
    %198 = vector.load %arg14[%197, %c0_93] : memref<64x512xf32, #tpu.memory_space<vmem>>, vector<8x512xf32>
    %c0_94 = arith.constant 0 : index
    %c0_95 = arith.constant 0 : index
    %199 = vector.load %arg15[%c0_94, %c0_95] : memref<8x128xf32, #tpu.memory_space<vmem>>, vector<8x128xf32>
    %cst_96 = arith.constant dense<0.000000e+00> : vector<8x512xf32>
    %200 = tpu.matmul %199, %5, %cst_96 {dimension_numbers = #tpu.dot_dimension_numbers<[1], [0], [0], [1], [0, 0, 1, 1], [], []>} : vector<8x128xf32>, vector<128x512xf32>, vector<8x512xf32> -> vector<8x512xf32>
    %201 = arith.addf %198, %200 : vector<8x512xf32>
    %202 = vector.extract_strided_slice %201 {offsets = [0, 0], sizes = [8, 384], strides = [1, 1]} : vector<8x512xf32> to vector<8x384xf32>
    %203 = arith.negf %202 : vector<8x384xf32>
    %204 = math.exp %203 : vector<8x384xf32>
    %cst_97 = arith.constant 1.000000e+00 : f32
    %205 = vector.broadcast %cst_97 : f32 to vector<8x384xf32>
    %206 = arith.addf %205, %204 : vector<8x384xf32>
    %207 = arith.divf %205, %206 : vector<8x384xf32>
    %208 = vector.extract_strided_slice %207 {offsets = [0, 0], sizes = [8, 128], strides = [1, 1]} : vector<8x384xf32> to vector<8x128xf32>
    %209 = vector.extract_strided_slice %207 {offsets = [0, 128], sizes = [8, 128], strides = [1, 1]} : vector<8x384xf32> to vector<8x128xf32>
    %210 = vector.extract_strided_slice %207 {offsets = [0, 256], sizes = [8, 128], strides = [1, 1]} : vector<8x384xf32> to vector<8x128xf32>
    %211 = vector.extract_strided_slice %201 {offsets = [0, 384], sizes = [8, 128], strides = [1, 1]} : vector<8x512xf32> to vector<8x128xf32>
    %212 = math.tanh %211 : vector<8x128xf32>
    %c0_98 = arith.constant 0 : index
    %c0_99 = arith.constant 0 : index
    %213 = vector.load %arg16[%c0_98, %c0_99] : memref<8x128xf32, #tpu.memory_space<vmem>>, vector<8x128xf32>
    %214 = arith.mulf %209, %213 : vector<8x128xf32>
    %215 = arith.mulf %208, %212 : vector<8x128xf32>
    %216 = arith.addf %214, %215 : vector<8x128xf32>
    %217 = math.tanh %216 : vector<8x128xf32>
    %218 = arith.mulf %210, %217 : vector<8x128xf32>
    %c0_100 = arith.constant 0 : index
    %c0_101 = arith.constant 0 : index
    %219 = vector.load %arg16[%c0_100, %c0_101] : memref<8x128xf32, #tpu.memory_space<vmem>>, vector<8x128xf32>
    tpu.vector_store %arg16[%c0_100, %c0_101], %216 {strides = array<i32>} : memref<8x128xf32, #tpu.memory_space<vmem>>, vector<8x128xf32>,
    %c0_102 = arith.constant 0 : index
    %c0_103 = arith.constant 0 : index
    %220 = vector.load %arg15[%c0_102, %c0_103] : memref<8x128xf32, #tpu.memory_space<vmem>>, vector<8x128xf32>
    tpu.vector_store %arg15[%c0_102, %c0_103], %218 {strides = array<i32>} : memref<8x128xf32, #tpu.memory_space<vmem>>, vector<8x128xf32>,
    %221 = arith.addi %8, %196 : i32
    %222 = tpu.assume_multiple %221, 8 : i32
    %223 = arith.index_cast %222 : i32 to index
    %c0_104 = arith.constant 0 : index
    %224 = vector.load %arg12[%223, %c0_104] : memref<64x128xf32, #tpu.memory_space<vmem>>, vector<8x128xf32>
    tpu.vector_store %arg12[%223, %c0_104], %218 {strides = array<i32>} : memref<64x128xf32, #tpu.memory_space<vmem>>, vector<8x128xf32>,
    %c7_i32 = arith.constant 7 : i32
    %c8_i32_105 = arith.constant 8 : i32
    %225 = arith.muli %c7_i32, %c8_i32_105 : i32
    %226 = tpu.assume_multiple %225, 8 : i32
    %227 = arith.index_cast %226 : i32 to index
    %c0_106 = arith.constant 0 : index
    %228 = vector.load %arg14[%227, %c0_106] : memref<64x512xf32, #tpu.memory_space<vmem>>, vector<8x512xf32>
    %c0_107 = arith.constant 0 : index
    %c0_108 = arith.constant 0 : index
    %229 = vector.load %arg15[%c0_107, %c0_108] : memref<8x128xf32, #tpu.memory_space<vmem>>, vector<8x128xf32>
    %cst_109 = arith.constant dense<0.000000e+00> : vector<8x512xf32>
    %230 = tpu.matmul %229, %5, %cst_109 {dimension_numbers = #tpu.dot_dimension_numbers<[1], [0], [0], [1], [0, 0, 1, 1], [], []>} : vector<8x128xf32>, vector<128x512xf32>, vector<8x512xf32> -> vector<8x512xf32>
    %231 = arith.addf %228, %230 : vector<8x512xf32>
    %232 = vector.extract_strided_slice %231 {offsets = [0, 0], sizes = [8, 384], strides = [1, 1]} : vector<8x512xf32> to vector<8x384xf32>
    %233 = arith.negf %232 : vector<8x384xf32>
    %234 = math.exp %233 : vector<8x384xf32>
    %cst_110 = arith.constant 1.000000e+00 : f32
    %235 = vector.broadcast %cst_110 : f32 to vector<8x384xf32>
    %236 = arith.addf %235, %234 : vector<8x384xf32>
    %237 = arith.divf %235, %236 : vector<8x384xf32>
    %238 = vector.extract_strided_slice %237 {offsets = [0, 0], sizes = [8, 128], strides = [1, 1]} : vector<8x384xf32> to vector<8x128xf32>
    %239 = vector.extract_strided_slice %237 {offsets = [0, 128], sizes = [8, 128], strides = [1, 1]} : vector<8x384xf32> to vector<8x128xf32>
    %240 = vector.extract_strided_slice %237 {offsets = [0, 256], sizes = [8, 128], strides = [1, 1]} : vector<8x384xf32> to vector<8x128xf32>
    %241 = vector.extract_strided_slice %231 {offsets = [0, 384], sizes = [8, 128], strides = [1, 1]} : vector<8x512xf32> to vector<8x128xf32>
    %242 = math.tanh %241 : vector<8x128xf32>
    %c0_111 = arith.constant 0 : index
    %c0_112 = arith.constant 0 : index
    %243 = vector.load %arg16[%c0_111, %c0_112] : memref<8x128xf32, #tpu.memory_space<vmem>>, vector<8x128xf32>
    %244 = arith.mulf %239, %243 : vector<8x128xf32>
    %245 = arith.mulf %238, %242 : vector<8x128xf32>
    %246 = arith.addf %244, %245 : vector<8x128xf32>
    %247 = math.tanh %246 : vector<8x128xf32>
    %248 = arith.mulf %240, %247 : vector<8x128xf32>
    %c0_113 = arith.constant 0 : index
    %c0_114 = arith.constant 0 : index
    %249 = vector.load %arg16[%c0_113, %c0_114] : memref<8x128xf32, #tpu.memory_space<vmem>>, vector<8x128xf32>
    tpu.vector_store %arg16[%c0_113, %c0_114], %246 {strides = array<i32>} : memref<8x128xf32, #tpu.memory_space<vmem>>, vector<8x128xf32>,
    %c0_115 = arith.constant 0 : index
    %c0_116 = arith.constant 0 : index
    %250 = vector.load %arg15[%c0_115, %c0_116] : memref<8x128xf32, #tpu.memory_space<vmem>>, vector<8x128xf32>
    tpu.vector_store %arg15[%c0_115, %c0_116], %248 {strides = array<i32>} : memref<8x128xf32, #tpu.memory_space<vmem>>, vector<8x128xf32>,
    %251 = arith.addi %8, %226 : i32
    %252 = tpu.assume_multiple %251, 8 : i32
    %253 = arith.index_cast %252 : i32 to index
    %c0_117 = arith.constant 0 : index
    %254 = vector.load %arg12[%253, %c0_117] : memref<64x128xf32, #tpu.memory_space<vmem>>, vector<8x128xf32>
    tpu.vector_store %arg12[%253, %c0_117], %248 {strides = array<i32>} : memref<64x128xf32, #tpu.memory_space<vmem>>, vector<8x128xf32>,
    %c8_i32_118 = arith.constant 8 : i32
    %c1_i32_119 = arith.constant 1 : i32
    %cst_120 = arith.constant 0.000000e+00 : f32
    %255 = vector.broadcast %cst_120 : f32 to vector<8x128xf32>
    %c0_121 = arith.constant 0 : index
    %c0_122 = arith.constant 0 : index
    %256 = vector.load %arg15[%c0_121, %c0_122] : memref<8x128xf32, #tpu.memory_space<vmem>>, vector<8x128xf32>
    tpu.vector_store %arg15[%c0_121, %c0_122], %255 {strides = array<i32>} : memref<8x128xf32, #tpu.memory_space<vmem>>, vector<8x128xf32>,
    %cst_123 = arith.constant 0.000000e+00 : f32
    %257 = vector.broadcast %cst_123 : f32 to vector<8x128xf32>
    %c0_124 = arith.constant 0 : index
    %c0_125 = arith.constant 0 : index
    %258 = vector.load %arg16[%c0_124, %c0_125] : memref<8x128xf32, #tpu.memory_space<vmem>>, vector<8x128xf32>
    tpu.vector_store %arg16[%c0_124, %c0_125], %257 {strides = array<i32>} : memref<8x128xf32, #tpu.memory_space<vmem>>, vector<8x128xf32>,
    %c0_126 = arith.constant 0 : index
    %c0_127 = arith.constant 0 : index
    %259 = vector.load %arg4[%c0_126, %c0_127] : memref<128x512xf32, #tpu.memory_space<vmem>>, vector<128x512xf32>
    %c0_128 = arith.constant 0 : index
    %c0_129 = arith.constant 0 : index
    %260 = vector.load %arg5[%c0_128, %c0_129] : memref<128x512xf32, #tpu.memory_space<vmem>>, vector<128x512xf32>
    %c0_130 = arith.constant 0 : index
    %c0_131 = arith.constant 0 : index
    %261 = vector.load %arg6[%c0_130, %c0_131] : memref<1x512xf32, #tpu.memory_space<vmem>>, vector<1x512xf32>
    %c0_i32_132 = arith.constant 0 : i32
    %c64_i32_133 = arith.constant 64 : i32
    %262 = arith.muli %c0_i32_132, %c64_i32_133 : i32
    %263 = tpu.assume_multiple %262, 64 : i32
    %264 = arith.index_cast %263 : i32 to index
    %c0_134 = arith.constant 0 : index
    %265 = vector.load %arg12[%264, %c0_134] : memref<64x128xf32, #tpu.memory_space<vmem>>, vector<64x128xf32>
    %cst_135 = arith.constant dense<0.000000e+00> : vector<64x512xf32>
    %266 = tpu.matmul %265, %259, %cst_135 {dimension_numbers = #tpu.dot_dimension_numbers<[1], [0], [0], [1], [0, 0, 1, 1], [], []>} : vector<64x128xf32>, vector<128x512xf32>, vector<64x512xf32> -> vector<64x512xf32>
    %267 = vector.broadcast %261 : vector<1x512xf32> to vector<64x512xf32>
    %268 = arith.addf %266, %267 : vector<64x512xf32>
    %c0_136 = arith.constant 0 : index
    %c0_137 = arith.constant 0 : index
    %269 = vector.load %arg14[%c0_136, %c0_137] : memref<64x512xf32, #tpu.memory_space<vmem>>, vector<64x512xf32>
    tpu.vector_store %arg14[%c0_136, %c0_137], %268 {strides = array<i32>} : memref<64x512xf32, #tpu.memory_space<vmem>>, vector<64x512xf32>,
    %c0_i32_138 = arith.constant 0 : i32
    %c8_i32_139 = arith.constant 8 : i32
    %270 = arith.muli %c0_i32_138, %c8_i32_139 : i32
    %271 = tpu.assume_multiple %270, 8 : i32
    %272 = arith.index_cast %271 : i32 to index
    %c0_140 = arith.constant 0 : index
    %273 = vector.load %arg14[%272, %c0_140] : memref<64x512xf32, #tpu.memory_space<vmem>>, vector<8x512xf32>
    %c0_141 = arith.constant 0 : index
    %c0_142 = arith.constant 0 : index
    %274 = vector.load %arg15[%c0_141, %c0_142] : memref<8x128xf32, #tpu.memory_space<vmem>>, vector<8x128xf32>
    %cst_143 = arith.constant dense<0.000000e+00> : vector<8x512xf32>
    %275 = tpu.matmul %274, %260, %cst_143 {dimension_numbers = #tpu.dot_dimension_numbers<[1], [0], [0], [1], [0, 0, 1, 1], [], []>} : vector<8x128xf32>, vector<128x512xf32>, vector<8x512xf32> -> vector<8x512xf32>
    %276 = arith.addf %273, %275 : vector<8x512xf32>
    %277 = vector.extract_strided_slice %276 {offsets = [0, 0], sizes = [8, 384], strides = [1, 1]} : vector<8x512xf32> to vector<8x384xf32>
    %278 = arith.negf %277 : vector<8x384xf32>
    %279 = math.exp %278 : vector<8x384xf32>
    %cst_144 = arith.constant 1.000000e+00 : f32
    %280 = vector.broadcast %cst_144 : f32 to vector<8x384xf32>
    %281 = arith.addf %280, %279 : vector<8x384xf32>
    %282 = arith.divf %280, %281 : vector<8x384xf32>
    %283 = vector.extract_strided_slice %282 {offsets = [0, 0], sizes = [8, 128], strides = [1, 1]} : vector<8x384xf32> to vector<8x128xf32>
    %284 = vector.extract_strided_slice %282 {offsets = [0, 128], sizes = [8, 128], strides = [1, 1]} : vector<8x384xf32> to vector<8x128xf32>
    %285 = vector.extract_strided_slice %282 {offsets = [0, 256], sizes = [8, 128], strides = [1, 1]} : vector<8x384xf32> to vector<8x128xf32>
    %286 = vector.extract_strided_slice %276 {offsets = [0, 384], sizes = [8, 128], strides = [1, 1]} : vector<8x512xf32> to vector<8x128xf32>
    %287 = math.tanh %286 : vector<8x128xf32>
    %c0_145 = arith.constant 0 : index
    %c0_146 = arith.constant 0 : index
    %288 = vector.load %arg16[%c0_145, %c0_146] : memref<8x128xf32, #tpu.memory_space<vmem>>, vector<8x128xf32>
    %289 = arith.mulf %284, %288 : vector<8x128xf32>
    %290 = arith.mulf %283, %287 : vector<8x128xf32>
    %291 = arith.addf %289, %290 : vector<8x128xf32>
    %292 = math.tanh %291 : vector<8x128xf32>
    %293 = arith.mulf %285, %292 : vector<8x128xf32>
    %c0_147 = arith.constant 0 : index
    %c0_148 = arith.constant 0 : index
    %294 = vector.load %arg16[%c0_147, %c0_148] : memref<8x128xf32, #tpu.memory_space<vmem>>, vector<8x128xf32>
    tpu.vector_store %arg16[%c0_147, %c0_148], %291 {strides = array<i32>} : memref<8x128xf32, #tpu.memory_space<vmem>>, vector<8x128xf32>,
    %c0_149 = arith.constant 0 : index
    %c0_150 = arith.constant 0 : index
    %295 = vector.load %arg15[%c0_149, %c0_150] : memref<8x128xf32, #tpu.memory_space<vmem>>, vector<8x128xf32>
    tpu.vector_store %arg15[%c0_149, %c0_150], %293 {strides = array<i32>} : memref<8x128xf32, #tpu.memory_space<vmem>>, vector<8x128xf32>,
    %296 = arith.addi %263, %271 : i32
    %297 = tpu.assume_multiple %296, 8 : i32
    %298 = arith.index_cast %297 : i32 to index
    %c0_151 = arith.constant 0 : index
    %299 = vector.load %arg12[%298, %c0_151] : memref<64x128xf32, #tpu.memory_space<vmem>>, vector<8x128xf32>
    tpu.vector_store %arg12[%298, %c0_151], %293 {strides = array<i32>} : memref<64x128xf32, #tpu.memory_space<vmem>>, vector<8x128xf32>,
    %c1_i32_152 = arith.constant 1 : i32
    %c8_i32_153 = arith.constant 8 : i32
    %300 = arith.muli %c1_i32_152, %c8_i32_153 : i32
    %301 = tpu.assume_multiple %300, 8 : i32
    %302 = arith.index_cast %301 : i32 to index
    %c0_154 = arith.constant 0 : index
    %303 = vector.load %arg14[%302, %c0_154] : memref<64x512xf32, #tpu.memory_space<vmem>>, vector<8x512xf32>
    %c0_155 = arith.constant 0 : index
    %c0_156 = arith.constant 0 : index
    %304 = vector.load %arg15[%c0_155, %c0_156] : memref<8x128xf32, #tpu.memory_space<vmem>>, vector<8x128xf32>
    %cst_157 = arith.constant dense<0.000000e+00> : vector<8x512xf32>
    %305 = tpu.matmul %304, %260, %cst_157 {dimension_numbers = #tpu.dot_dimension_numbers<[1], [0], [0], [1], [0, 0, 1, 1], [], []>} : vector<8x128xf32>, vector<128x512xf32>, vector<8x512xf32> -> vector<8x512xf32>
    %306 = arith.addf %303, %305 : vector<8x512xf32>
    %307 = vector.extract_strided_slice %306 {offsets = [0, 0], sizes = [8, 384], strides = [1, 1]} : vector<8x512xf32> to vector<8x384xf32>
    %308 = arith.negf %307 : vector<8x384xf32>
    %309 = math.exp %308 : vector<8x384xf32>
    %cst_158 = arith.constant 1.000000e+00 : f32
    %310 = vector.broadcast %cst_158 : f32 to vector<8x384xf32>
    %311 = arith.addf %310, %309 : vector<8x384xf32>
    %312 = arith.divf %310, %311 : vector<8x384xf32>
    %313 = vector.extract_strided_slice %312 {offsets = [0, 0], sizes = [8, 128], strides = [1, 1]} : vector<8x384xf32> to vector<8x128xf32>
    %314 = vector.extract_strided_slice %312 {offsets = [0, 128], sizes = [8, 128], strides = [1, 1]} : vector<8x384xf32> to vector<8x128xf32>
    %315 = vector.extract_strided_slice %312 {offsets = [0, 256], sizes = [8, 128], strides = [1, 1]} : vector<8x384xf32> to vector<8x128xf32>
    %316 = vector.extract_strided_slice %306 {offsets = [0, 384], sizes = [8, 128], strides = [1, 1]} : vector<8x512xf32> to vector<8x128xf32>
    %317 = math.tanh %316 : vector<8x128xf32>
    %c0_159 = arith.constant 0 : index
    %c0_160 = arith.constant 0 : index
    %318 = vector.load %arg16[%c0_159, %c0_160] : memref<8x128xf32, #tpu.memory_space<vmem>>, vector<8x128xf32>
    %319 = arith.mulf %314, %318 : vector<8x128xf32>
    %320 = arith.mulf %313, %317 : vector<8x128xf32>
    %321 = arith.addf %319, %320 : vector<8x128xf32>
    %322 = math.tanh %321 : vector<8x128xf32>
    %323 = arith.mulf %315, %322 : vector<8x128xf32>
    %c0_161 = arith.constant 0 : index
    %c0_162 = arith.constant 0 : index
    %324 = vector.load %arg16[%c0_161, %c0_162] : memref<8x128xf32, #tpu.memory_space<vmem>>, vector<8x128xf32>
    tpu.vector_store %arg16[%c0_161, %c0_162], %321 {strides = array<i32>} : memref<8x128xf32, #tpu.memory_space<vmem>>, vector<8x128xf32>,
    %c0_163 = arith.constant 0 : index
    %c0_164 = arith.constant 0 : index
    %325 = vector.load %arg15[%c0_163, %c0_164] : memref<8x128xf32, #tpu.memory_space<vmem>>, vector<8x128xf32>
    tpu.vector_store %arg15[%c0_163, %c0_164], %323 {strides = array<i32>} : memref<8x128xf32, #tpu.memory_space<vmem>>, vector<8x128xf32>,
    %326 = arith.addi %263, %301 : i32
    %327 = tpu.assume_multiple %326, 8 : i32
    %328 = arith.index_cast %327 : i32 to index
    %c0_165 = arith.constant 0 : index
    %329 = vector.load %arg12[%328, %c0_165] : memref<64x128xf32, #tpu.memory_space<vmem>>, vector<8x128xf32>
    tpu.vector_store %arg12[%328, %c0_165], %323 {strides = array<i32>} : memref<64x128xf32, #tpu.memory_space<vmem>>, vector<8x128xf32>,
    %c2_i32_166 = arith.constant 2 : i32
    %c8_i32_167 = arith.constant 8 : i32
    %330 = arith.muli %c2_i32_166, %c8_i32_167 : i32
    %331 = tpu.assume_multiple %330, 8 : i32
    %332 = arith.index_cast %331 : i32 to index
    %c0_168 = arith.constant 0 : index
    %333 = vector.load %arg14[%332, %c0_168] : memref<64x512xf32, #tpu.memory_space<vmem>>, vector<8x512xf32>
    %c0_169 = arith.constant 0 : index
    %c0_170 = arith.constant 0 : index
    %334 = vector.load %arg15[%c0_169, %c0_170] : memref<8x128xf32, #tpu.memory_space<vmem>>, vector<8x128xf32>
    %cst_171 = arith.constant dense<0.000000e+00> : vector<8x512xf32>
    %335 = tpu.matmul %334, %260, %cst_171 {dimension_numbers = #tpu.dot_dimension_numbers<[1], [0], [0], [1], [0, 0, 1, 1], [], []>} : vector<8x128xf32>, vector<128x512xf32>, vector<8x512xf32> -> vector<8x512xf32>
    %336 = arith.addf %333, %335 : vector<8x512xf32>
    %337 = vector.extract_strided_slice %336 {offsets = [0, 0], sizes = [8, 384], strides = [1, 1]} : vector<8x512xf32> to vector<8x384xf32>
    %338 = arith.negf %337 : vector<8x384xf32>
    %339 = math.exp %338 : vector<8x384xf32>
    %cst_172 = arith.constant 1.000000e+00 : f32
    %340 = vector.broadcast %cst_172 : f32 to vector<8x384xf32>
    %341 = arith.addf %340, %339 : vector<8x384xf32>
    %342 = arith.divf %340, %341 : vector<8x384xf32>
    %343 = vector.extract_strided_slice %342 {offsets = [0, 0], sizes = [8, 128], strides = [1, 1]} : vector<8x384xf32> to vector<8x128xf32>
    %344 = vector.extract_strided_slice %342 {offsets = [0, 128], sizes = [8, 128], strides = [1, 1]} : vector<8x384xf32> to vector<8x128xf32>
    %345 = vector.extract_strided_slice %342 {offsets = [0, 256], sizes = [8, 128], strides = [1, 1]} : vector<8x384xf32> to vector<8x128xf32>
    %346 = vector.extract_strided_slice %336 {offsets = [0, 384], sizes = [8, 128], strides = [1, 1]} : vector<8x512xf32> to vector<8x128xf32>
    %347 = math.tanh %346 : vector<8x128xf32>
    %c0_173 = arith.constant 0 : index
    %c0_174 = arith.constant 0 : index
    %348 = vector.load %arg16[%c0_173, %c0_174] : memref<8x128xf32, #tpu.memory_space<vmem>>, vector<8x128xf32>
    %349 = arith.mulf %344, %348 : vector<8x128xf32>
    %350 = arith.mulf %343, %347 : vector<8x128xf32>
    %351 = arith.addf %349, %350 : vector<8x128xf32>
    %352 = math.tanh %351 : vector<8x128xf32>
    %353 = arith.mulf %345, %352 : vector<8x128xf32>
    %c0_175 = arith.constant 0 : index
    %c0_176 = arith.constant 0 : index
    %354 = vector.load %arg16[%c0_175, %c0_176] : memref<8x128xf32, #tpu.memory_space<vmem>>, vector<8x128xf32>
    tpu.vector_store %arg16[%c0_175, %c0_176], %351 {strides = array<i32>} : memref<8x128xf32, #tpu.memory_space<vmem>>, vector<8x128xf32>,
    %c0_177 = arith.constant 0 : index
    %c0_178 = arith.constant 0 : index
    %355 = vector.load %arg15[%c0_177, %c0_178] : memref<8x128xf32, #tpu.memory_space<vmem>>, vector<8x128xf32>
    tpu.vector_store %arg15[%c0_177, %c0_178], %353 {strides = array<i32>} : memref<8x128xf32, #tpu.memory_space<vmem>>, vector<8x128xf32>,
    %356 = arith.addi %263, %331 : i32
    %357 = tpu.assume_multiple %356, 8 : i32
    %358 = arith.index_cast %357 : i32 to index
    %c0_179 = arith.constant 0 : index
    %359 = vector.load %arg12[%358, %c0_179] : memref<64x128xf32, #tpu.memory_space<vmem>>, vector<8x128xf32>
    tpu.vector_store %arg12[%358, %c0_179], %353 {strides = array<i32>} : memref<64x128xf32, #tpu.memory_space<vmem>>, vector<8x128xf32>,
    %c3_i32_180 = arith.constant 3 : i32
    %c8_i32_181 = arith.constant 8 : i32
    %360 = arith.muli %c3_i32_180, %c8_i32_181 : i32
    %361 = tpu.assume_multiple %360, 8 : i32
    %362 = arith.index_cast %361 : i32 to index
    %c0_182 = arith.constant 0 : index
    %363 = vector.load %arg14[%362, %c0_182] : memref<64x512xf32, #tpu.memory_space<vmem>>, vector<8x512xf32>
    %c0_183 = arith.constant 0 : index
    %c0_184 = arith.constant 0 : index
    %364 = vector.load %arg15[%c0_183, %c0_184] : memref<8x128xf32, #tpu.memory_space<vmem>>, vector<8x128xf32>
    %cst_185 = arith.constant dense<0.000000e+00> : vector<8x512xf32>
    %365 = tpu.matmul %364, %260, %cst_185 {dimension_numbers = #tpu.dot_dimension_numbers<[1], [0], [0], [1], [0, 0, 1, 1], [], []>} : vector<8x128xf32>, vector<128x512xf32>, vector<8x512xf32> -> vector<8x512xf32>
    %366 = arith.addf %363, %365 : vector<8x512xf32>
    %367 = vector.extract_strided_slice %366 {offsets = [0, 0], sizes = [8, 384], strides = [1, 1]} : vector<8x512xf32> to vector<8x384xf32>
    %368 = arith.negf %367 : vector<8x384xf32>
    %369 = math.exp %368 : vector<8x384xf32>
    %cst_186 = arith.constant 1.000000e+00 : f32
    %370 = vector.broadcast %cst_186 : f32 to vector<8x384xf32>
    %371 = arith.addf %370, %369 : vector<8x384xf32>
    %372 = arith.divf %370, %371 : vector<8x384xf32>
    %373 = vector.extract_strided_slice %372 {offsets = [0, 0], sizes = [8, 128], strides = [1, 1]} : vector<8x384xf32> to vector<8x128xf32>
    %374 = vector.extract_strided_slice %372 {offsets = [0, 128], sizes = [8, 128], strides = [1, 1]} : vector<8x384xf32> to vector<8x128xf32>
    %375 = vector.extract_strided_slice %372 {offsets = [0, 256], sizes = [8, 128], strides = [1, 1]} : vector<8x384xf32> to vector<8x128xf32>
    %376 = vector.extract_strided_slice %366 {offsets = [0, 384], sizes = [8, 128], strides = [1, 1]} : vector<8x512xf32> to vector<8x128xf32>
    %377 = math.tanh %376 : vector<8x128xf32>
    %c0_187 = arith.constant 0 : index
    %c0_188 = arith.constant 0 : index
    %378 = vector.load %arg16[%c0_187, %c0_188] : memref<8x128xf32, #tpu.memory_space<vmem>>, vector<8x128xf32>
    %379 = arith.mulf %374, %378 : vector<8x128xf32>
    %380 = arith.mulf %373, %377 : vector<8x128xf32>
    %381 = arith.addf %379, %380 : vector<8x128xf32>
    %382 = math.tanh %381 : vector<8x128xf32>
    %383 = arith.mulf %375, %382 : vector<8x128xf32>
    %c0_189 = arith.constant 0 : index
    %c0_190 = arith.constant 0 : index
    %384 = vector.load %arg16[%c0_189, %c0_190] : memref<8x128xf32, #tpu.memory_space<vmem>>, vector<8x128xf32>
    tpu.vector_store %arg16[%c0_189, %c0_190], %381 {strides = array<i32>} : memref<8x128xf32, #tpu.memory_space<vmem>>, vector<8x128xf32>,
    %c0_191 = arith.constant 0 : index
    %c0_192 = arith.constant 0 : index
    %385 = vector.load %arg15[%c0_191, %c0_192] : memref<8x128xf32, #tpu.memory_space<vmem>>, vector<8x128xf32>
    tpu.vector_store %arg15[%c0_191, %c0_192], %383 {strides = array<i32>} : memref<8x128xf32, #tpu.memory_space<vmem>>, vector<8x128xf32>,
    %386 = arith.addi %263, %361 : i32
    %387 = tpu.assume_multiple %386, 8 : i32
    %388 = arith.index_cast %387 : i32 to index
    %c0_193 = arith.constant 0 : index
    %389 = vector.load %arg12[%388, %c0_193] : memref<64x128xf32, #tpu.memory_space<vmem>>, vector<8x128xf32>
    tpu.vector_store %arg12[%388, %c0_193], %383 {strides = array<i32>} : memref<64x128xf32, #tpu.memory_space<vmem>>, vector<8x128xf32>,
    %c4_i32_194 = arith.constant 4 : i32
    %c8_i32_195 = arith.constant 8 : i32
    %390 = arith.muli %c4_i32_194, %c8_i32_195 : i32
    %391 = tpu.assume_multiple %390, 8 : i32
    %392 = arith.index_cast %391 : i32 to index
    %c0_196 = arith.constant 0 : index
    %393 = vector.load %arg14[%392, %c0_196] : memref<64x512xf32, #tpu.memory_space<vmem>>, vector<8x512xf32>
    %c0_197 = arith.constant 0 : index
    %c0_198 = arith.constant 0 : index
    %394 = vector.load %arg15[%c0_197, %c0_198] : memref<8x128xf32, #tpu.memory_space<vmem>>, vector<8x128xf32>
    %cst_199 = arith.constant dense<0.000000e+00> : vector<8x512xf32>
    %395 = tpu.matmul %394, %260, %cst_199 {dimension_numbers = #tpu.dot_dimension_numbers<[1], [0], [0], [1], [0, 0, 1, 1], [], []>} : vector<8x128xf32>, vector<128x512xf32>, vector<8x512xf32> -> vector<8x512xf32>
    %396 = arith.addf %393, %395 : vector<8x512xf32>
    %397 = vector.extract_strided_slice %396 {offsets = [0, 0], sizes = [8, 384], strides = [1, 1]} : vector<8x512xf32> to vector<8x384xf32>
    %398 = arith.negf %397 : vector<8x384xf32>
    %399 = math.exp %398 : vector<8x384xf32>
    %cst_200 = arith.constant 1.000000e+00 : f32
    %400 = vector.broadcast %cst_200 : f32 to vector<8x384xf32>
    %401 = arith.addf %400, %399 : vector<8x384xf32>
    %402 = arith.divf %400, %401 : vector<8x384xf32>
    %403 = vector.extract_strided_slice %402 {offsets = [0, 0], sizes = [8, 128], strides = [1, 1]} : vector<8x384xf32> to vector<8x128xf32>
    %404 = vector.extract_strided_slice %402 {offsets = [0, 128], sizes = [8, 128], strides = [1, 1]} : vector<8x384xf32> to vector<8x128xf32>
    %405 = vector.extract_strided_slice %402 {offsets = [0, 256], sizes = [8, 128], strides = [1, 1]} : vector<8x384xf32> to vector<8x128xf32>
    %406 = vector.extract_strided_slice %396 {offsets = [0, 384], sizes = [8, 128], strides = [1, 1]} : vector<8x512xf32> to vector<8x128xf32>
    %407 = math.tanh %406 : vector<8x128xf32>
    %c0_201 = arith.constant 0 : index
    %c0_202 = arith.constant 0 : index
    %408 = vector.load %arg16[%c0_201, %c0_202] : memref<8x128xf32, #tpu.memory_space<vmem>>, vector<8x128xf32>
    %409 = arith.mulf %404, %408 : vector<8x128xf32>
    %410 = arith.mulf %403, %407 : vector<8x128xf32>
    %411 = arith.addf %409, %410 : vector<8x128xf32>
    %412 = math.tanh %411 : vector<8x128xf32>
    %413 = arith.mulf %405, %412 : vector<8x128xf32>
    %c0_203 = arith.constant 0 : index
    %c0_204 = arith.constant 0 : index
    %414 = vector.load %arg16[%c0_203, %c0_204] : memref<8x128xf32, #tpu.memory_space<vmem>>, vector<8x128xf32>
    tpu.vector_store %arg16[%c0_203, %c0_204], %411 {strides = array<i32>} : memref<8x128xf32, #tpu.memory_space<vmem>>, vector<8x128xf32>,
    %c0_205 = arith.constant 0 : index
    %c0_206 = arith.constant 0 : index
    %415 = vector.load %arg15[%c0_205, %c0_206] : memref<8x128xf32, #tpu.memory_space<vmem>>, vector<8x128xf32>
    tpu.vector_store %arg15[%c0_205, %c0_206], %413 {strides = array<i32>} : memref<8x128xf32, #tpu.memory_space<vmem>>, vector<8x128xf32>,
    %416 = arith.addi %263, %391 : i32
    %417 = tpu.assume_multiple %416, 8 : i32
    %418 = arith.index_cast %417 : i32 to index
    %c0_207 = arith.constant 0 : index
    %419 = vector.load %arg12[%418, %c0_207] : memref<64x128xf32, #tpu.memory_space<vmem>>, vector<8x128xf32>
    tpu.vector_store %arg12[%418, %c0_207], %413 {strides = array<i32>} : memref<64x128xf32, #tpu.memory_space<vmem>>, vector<8x128xf32>,
    %c5_i32_208 = arith.constant 5 : i32
    %c8_i32_209 = arith.constant 8 : i32
    %420 = arith.muli %c5_i32_208, %c8_i32_209 : i32
    %421 = tpu.assume_multiple %420, 8 : i32
    %422 = arith.index_cast %421 : i32 to index
    %c0_210 = arith.constant 0 : index
    %423 = vector.load %arg14[%422, %c0_210] : memref<64x512xf32, #tpu.memory_space<vmem>>, vector<8x512xf32>
    %c0_211 = arith.constant 0 : index
    %c0_212 = arith.constant 0 : index
    %424 = vector.load %arg15[%c0_211, %c0_212] : memref<8x128xf32, #tpu.memory_space<vmem>>, vector<8x128xf32>
    %cst_213 = arith.constant dense<0.000000e+00> : vector<8x512xf32>
    %425 = tpu.matmul %424, %260, %cst_213 {dimension_numbers = #tpu.dot_dimension_numbers<[1], [0], [0], [1], [0, 0, 1, 1], [], []>} : vector<8x128xf32>, vector<128x512xf32>, vector<8x512xf32> -> vector<8x512xf32>
    %426 = arith.addf %423, %425 : vector<8x512xf32>
    %427 = vector.extract_strided_slice %426 {offsets = [0, 0], sizes = [8, 384], strides = [1, 1]} : vector<8x512xf32> to vector<8x384xf32>
    %428 = arith.negf %427 : vector<8x384xf32>
    %429 = math.exp %428 : vector<8x384xf32>
    %cst_214 = arith.constant 1.000000e+00 : f32
    %430 = vector.broadcast %cst_214 : f32 to vector<8x384xf32>
    %431 = arith.addf %430, %429 : vector<8x384xf32>
    %432 = arith.divf %430, %431 : vector<8x384xf32>
    %433 = vector.extract_strided_slice %432 {offsets = [0, 0], sizes = [8, 128], strides = [1, 1]} : vector<8x384xf32> to vector<8x128xf32>
    %434 = vector.extract_strided_slice %432 {offsets = [0, 128], sizes = [8, 128], strides = [1, 1]} : vector<8x384xf32> to vector<8x128xf32>
    %435 = vector.extract_strided_slice %432 {offsets = [0, 256], sizes = [8, 128], strides = [1, 1]} : vector<8x384xf32> to vector<8x128xf32>
    %436 = vector.extract_strided_slice %426 {offsets = [0, 384], sizes = [8, 128], strides = [1, 1]} : vector<8x512xf32> to vector<8x128xf32>
    %437 = math.tanh %436 : vector<8x128xf32>
    %c0_215 = arith.constant 0 : index
    %c0_216 = arith.constant 0 : index
    %438 = vector.load %arg16[%c0_215, %c0_216] : memref<8x128xf32, #tpu.memory_space<vmem>>, vector<8x128xf32>
    %439 = arith.mulf %434, %438 : vector<8x128xf32>
    %440 = arith.mulf %433, %437 : vector<8x128xf32>
    %441 = arith.addf %439, %440 : vector<8x128xf32>
    %442 = math.tanh %441 : vector<8x128xf32>
    %443 = arith.mulf %435, %442 : vector<8x128xf32>
    %c0_217 = arith.constant 0 : index
    %c0_218 = arith.constant 0 : index
    %444 = vector.load %arg16[%c0_217, %c0_218] : memref<8x128xf32, #tpu.memory_space<vmem>>, vector<8x128xf32>
    tpu.vector_store %arg16[%c0_217, %c0_218], %441 {strides = array<i32>} : memref<8x128xf32, #tpu.memory_space<vmem>>, vector<8x128xf32>,
    %c0_219 = arith.constant 0 : index
    %c0_220 = arith.constant 0 : index
    %445 = vector.load %arg15[%c0_219, %c0_220] : memref<8x128xf32, #tpu.memory_space<vmem>>, vector<8x128xf32>
    tpu.vector_store %arg15[%c0_219, %c0_220], %443 {strides = array<i32>} : memref<8x128xf32, #tpu.memory_space<vmem>>, vector<8x128xf32>,
    %446 = arith.addi %263, %421 : i32
    %447 = tpu.assume_multiple %446, 8 : i32
    %448 = arith.index_cast %447 : i32 to index
    %c0_221 = arith.constant 0 : index
    %449 = vector.load %arg12[%448, %c0_221] : memref<64x128xf32, #tpu.memory_space<vmem>>, vector<8x128xf32>
    tpu.vector_store %arg12[%448, %c0_221], %443 {strides = array<i32>} : memref<64x128xf32, #tpu.memory_space<vmem>>, vector<8x128xf32>,
    %c6_i32_222 = arith.constant 6 : i32
    %c8_i32_223 = arith.constant 8 : i32
    %450 = arith.muli %c6_i32_222, %c8_i32_223 : i32
    %451 = tpu.assume_multiple %450, 8 : i32
    %452 = arith.index_cast %451 : i32 to index
    %c0_224 = arith.constant 0 : index
    %453 = vector.load %arg14[%452, %c0_224] : memref<64x512xf32, #tpu.memory_space<vmem>>, vector<8x512xf32>
    %c0_225 = arith.constant 0 : index
    %c0_226 = arith.constant 0 : index
    %454 = vector.load %arg15[%c0_225, %c0_226] : memref<8x128xf32, #tpu.memory_space<vmem>>, vector<8x128xf32>
    %cst_227 = arith.constant dense<0.000000e+00> : vector<8x512xf32>
    %455 = tpu.matmul %454, %260, %cst_227 {dimension_numbers = #tpu.dot_dimension_numbers<[1], [0], [0], [1], [0, 0, 1, 1], [], []>} : vector<8x128xf32>, vector<128x512xf32>, vector<8x512xf32> -> vector<8x512xf32>
    %456 = arith.addf %453, %455 : vector<8x512xf32>
    %457 = vector.extract_strided_slice %456 {offsets = [0, 0], sizes = [8, 384], strides = [1, 1]} : vector<8x512xf32> to vector<8x384xf32>
    %458 = arith.negf %457 : vector<8x384xf32>
    %459 = math.exp %458 : vector<8x384xf32>
    %cst_228 = arith.constant 1.000000e+00 : f32
    %460 = vector.broadcast %cst_228 : f32 to vector<8x384xf32>
    %461 = arith.addf %460, %459 : vector<8x384xf32>
    %462 = arith.divf %460, %461 : vector<8x384xf32>
    %463 = vector.extract_strided_slice %462 {offsets = [0, 0], sizes = [8, 128], strides = [1, 1]} : vector<8x384xf32> to vector<8x128xf32>
    %464 = vector.extract_strided_slice %462 {offsets = [0, 128], sizes = [8, 128], strides = [1, 1]} : vector<8x384xf32> to vector<8x128xf32>
    %465 = vector.extract_strided_slice %462 {offsets = [0, 256], sizes = [8, 128], strides = [1, 1]} : vector<8x384xf32> to vector<8x128xf32>
    %466 = vector.extract_strided_slice %456 {offsets = [0, 384], sizes = [8, 128], strides = [1, 1]} : vector<8x512xf32> to vector<8x128xf32>
    %467 = math.tanh %466 : vector<8x128xf32>
    %c0_229 = arith.constant 0 : index
    %c0_230 = arith.constant 0 : index
    %468 = vector.load %arg16[%c0_229, %c0_230] : memref<8x128xf32, #tpu.memory_space<vmem>>, vector<8x128xf32>
    %469 = arith.mulf %464, %468 : vector<8x128xf32>
    %470 = arith.mulf %463, %467 : vector<8x128xf32>
    %471 = arith.addf %469, %470 : vector<8x128xf32>
    %472 = math.tanh %471 : vector<8x128xf32>
    %473 = arith.mulf %465, %472 : vector<8x128xf32>
    %c0_231 = arith.constant 0 : index
    %c0_232 = arith.constant 0 : index
    %474 = vector.load %arg16[%c0_231, %c0_232] : memref<8x128xf32, #tpu.memory_space<vmem>>, vector<8x128xf32>
    tpu.vector_store %arg16[%c0_231, %c0_232], %471 {strides = array<i32>} : memref<8x128xf32, #tpu.memory_space<vmem>>, vector<8x128xf32>,
    %c0_233 = arith.constant 0 : index
    %c0_234 = arith.constant 0 : index
    %475 = vector.load %arg15[%c0_233, %c0_234] : memref<8x128xf32, #tpu.memory_space<vmem>>, vector<8x128xf32>
    tpu.vector_store %arg15[%c0_233, %c0_234], %473 {strides = array<i32>} : memref<8x128xf32, #tpu.memory_space<vmem>>, vector<8x128xf32>,
    %476 = arith.addi %263, %451 : i32
    %477 = tpu.assume_multiple %476, 8 : i32
    %478 = arith.index_cast %477 : i32 to index
    %c0_235 = arith.constant 0 : index
    %479 = vector.load %arg12[%478, %c0_235] : memref<64x128xf32, #tpu.memory_space<vmem>>, vector<8x128xf32>
    tpu.vector_store %arg12[%478, %c0_235], %473 {strides = array<i32>} : memref<64x128xf32, #tpu.memory_space<vmem>>, vector<8x128xf32>,
    %c7_i32_236 = arith.constant 7 : i32
    %c8_i32_237 = arith.constant 8 : i32
    %480 = arith.muli %c7_i32_236, %c8_i32_237 : i32
    %481 = tpu.assume_multiple %480, 8 : i32
    %482 = arith.index_cast %481 : i32 to index
    %c0_238 = arith.constant 0 : index
    %483 = vector.load %arg14[%482, %c0_238] : memref<64x512xf32, #tpu.memory_space<vmem>>, vector<8x512xf32>
    %c0_239 = arith.constant 0 : index
    %c0_240 = arith.constant 0 : index
    %484 = vector.load %arg15[%c0_239, %c0_240] : memref<8x128xf32, #tpu.memory_space<vmem>>, vector<8x128xf32>
    %cst_241 = arith.constant dense<0.000000e+00> : vector<8x512xf32>
    %485 = tpu.matmul %484, %260, %cst_241 {dimension_numbers = #tpu.dot_dimension_numbers<[1], [0], [0], [1], [0, 0, 1, 1], [], []>} : vector<8x128xf32>, vector<128x512xf32>, vector<8x512xf32> -> vector<8x512xf32>
    %486 = arith.addf %483, %485 : vector<8x512xf32>
    %487 = vector.extract_strided_slice %486 {offsets = [0, 0], sizes = [8, 384], strides = [1, 1]} : vector<8x512xf32> to vector<8x384xf32>
    %488 = arith.negf %487 : vector<8x384xf32>
    %489 = math.exp %488 : vector<8x384xf32>
    %cst_242 = arith.constant 1.000000e+00 : f32
    %490 = vector.broadcast %cst_242 : f32 to vector<8x384xf32>
    %491 = arith.addf %490, %489 : vector<8x384xf32>
    %492 = arith.divf %490, %491 : vector<8x384xf32>
    %493 = vector.extract_strided_slice %492 {offsets = [0, 0], sizes = [8, 128], strides = [1, 1]} : vector<8x384xf32> to vector<8x128xf32>
    %494 = vector.extract_strided_slice %492 {offsets = [0, 128], sizes = [8, 128], strides = [1, 1]} : vector<8x384xf32> to vector<8x128xf32>
    %495 = vector.extract_strided_slice %492 {offsets = [0, 256], sizes = [8, 128], strides = [1, 1]} : vector<8x384xf32> to vector<8x128xf32>
    %496 = vector.extract_strided_slice %486 {offsets = [0, 384], sizes = [8, 128], strides = [1, 1]} : vector<8x512xf32> to vector<8x128xf32>
    %497 = math.tanh %496 : vector<8x128xf32>
    %c0_243 = arith.constant 0 : index
    %c0_244 = arith.constant 0 : index
    %498 = vector.load %arg16[%c0_243, %c0_244] : memref<8x128xf32, #tpu.memory_space<vmem>>, vector<8x128xf32>
    %499 = arith.mulf %494, %498 : vector<8x128xf32>
    %500 = arith.mulf %493, %497 : vector<8x128xf32>
    %501 = arith.addf %499, %500 : vector<8x128xf32>
    %502 = math.tanh %501 : vector<8x128xf32>
    %503 = arith.mulf %495, %502 : vector<8x128xf32>
    %c0_245 = arith.constant 0 : index
    %c0_246 = arith.constant 0 : index
    %504 = vector.load %arg16[%c0_245, %c0_246] : memref<8x128xf32, #tpu.memory_space<vmem>>, vector<8x128xf32>
    tpu.vector_store %arg16[%c0_245, %c0_246], %501 {strides = array<i32>} : memref<8x128xf32, #tpu.memory_space<vmem>>, vector<8x128xf32>,
    %c0_247 = arith.constant 0 : index
    %c0_248 = arith.constant 0 : index
    %505 = vector.load %arg15[%c0_247, %c0_248] : memref<8x128xf32, #tpu.memory_space<vmem>>, vector<8x128xf32>
    tpu.vector_store %arg15[%c0_247, %c0_248], %503 {strides = array<i32>} : memref<8x128xf32, #tpu.memory_space<vmem>>, vector<8x128xf32>,
    %506 = arith.addi %263, %481 : i32
    %507 = tpu.assume_multiple %506, 8 : i32
    %508 = arith.index_cast %507 : i32 to index
    %c0_249 = arith.constant 0 : index
    %509 = vector.load %arg12[%508, %c0_249] : memref<64x128xf32, #tpu.memory_space<vmem>>, vector<8x128xf32>
    tpu.vector_store %arg12[%508, %c0_249], %503 {strides = array<i32>} : memref<64x128xf32, #tpu.memory_space<vmem>>, vector<8x128xf32>,
    %c8_i32_250 = arith.constant 8 : i32
    %c1_i32_251 = arith.constant 1 : i32
    %cst_252 = arith.constant 0.000000e+00 : f32
    %510 = vector.broadcast %cst_252 : f32 to vector<8x128xf32>
    %c0_253 = arith.constant 0 : index
    %c0_254 = arith.constant 0 : index
    %511 = vector.load %arg15[%c0_253, %c0_254] : memref<8x128xf32, #tpu.memory_space<vmem>>, vector<8x128xf32>
    tpu.vector_store %arg15[%c0_253, %c0_254], %510 {strides = array<i32>} : memref<8x128xf32, #tpu.memory_space<vmem>>, vector<8x128xf32>,
    %cst_255 = arith.constant 0.000000e+00 : f32
    %512 = vector.broadcast %cst_255 : f32 to vector<8x128xf32>
    %c0_256 = arith.constant 0 : index
    %c0_257 = arith.constant 0 : index
    %513 = vector.load %arg16[%c0_256, %c0_257] : memref<8x128xf32, #tpu.memory_space<vmem>>, vector<8x128xf32>
    tpu.vector_store %arg16[%c0_256, %c0_257], %512 {strides = array<i32>} : memref<8x128xf32, #tpu.memory_space<vmem>>, vector<8x128xf32>,
    %c0_258 = arith.constant 0 : index
    %c0_259 = arith.constant 0 : index
    %514 = vector.load %arg7[%c0_258, %c0_259] : memref<128x512xf32, #tpu.memory_space<vmem>>, vector<128x512xf32>
    %c0_260 = arith.constant 0 : index
    %c0_261 = arith.constant 0 : index
    %515 = vector.load %arg8[%c0_260, %c0_261] : memref<128x512xf32, #tpu.memory_space<vmem>>, vector<128x512xf32>
    %c0_262 = arith.constant 0 : index
    %c0_263 = arith.constant 0 : index
    %516 = vector.load %arg9[%c0_262, %c0_263] : memref<1x512xf32, #tpu.memory_space<vmem>>, vector<1x512xf32>
    %c0_i32_264 = arith.constant 0 : i32
    %c64_i32_265 = arith.constant 64 : i32
    %517 = arith.muli %c0_i32_264, %c64_i32_265 : i32
    %518 = tpu.assume_multiple %517, 64 : i32
    %519 = arith.index_cast %518 : i32 to index
    %c0_266 = arith.constant 0 : index
    %520 = vector.load %arg12[%519, %c0_266] : memref<64x128xf32, #tpu.memory_space<vmem>>, vector<64x128xf32>
    %cst_267 = arith.constant dense<0.000000e+00> : vector<64x512xf32>
    %521 = tpu.matmul %520, %514, %cst_267 {dimension_numbers = #tpu.dot_dimension_numbers<[1], [0], [0], [1], [0, 0, 1, 1], [], []>} : vector<64x128xf32>, vector<128x512xf32>, vector<64x512xf32> -> vector<64x512xf32>
    %522 = vector.broadcast %516 : vector<1x512xf32> to vector<64x512xf32>
    %523 = arith.addf %521, %522 : vector<64x512xf32>
    %c0_268 = arith.constant 0 : index
    %c0_269 = arith.constant 0 : index
    %524 = vector.load %arg14[%c0_268, %c0_269] : memref<64x512xf32, #tpu.memory_space<vmem>>, vector<64x512xf32>
    tpu.vector_store %arg14[%c0_268, %c0_269], %523 {strides = array<i32>} : memref<64x512xf32, #tpu.memory_space<vmem>>, vector<64x512xf32>,
    %c0_i32_270 = arith.constant 0 : i32
    %c8_i32_271 = arith.constant 8 : i32
    %525 = arith.muli %c0_i32_270, %c8_i32_271 : i32
    %526 = tpu.assume_multiple %525, 8 : i32
    %527 = arith.index_cast %526 : i32 to index
    %c0_272 = arith.constant 0 : index
    %528 = vector.load %arg14[%527, %c0_272] : memref<64x512xf32, #tpu.memory_space<vmem>>, vector<8x512xf32>
    %c0_273 = arith.constant 0 : index
    %c0_274 = arith.constant 0 : index
    %529 = vector.load %arg15[%c0_273, %c0_274] : memref<8x128xf32, #tpu.memory_space<vmem>>, vector<8x128xf32>
    %cst_275 = arith.constant dense<0.000000e+00> : vector<8x512xf32>
    %530 = tpu.matmul %529, %515, %cst_275 {dimension_numbers = #tpu.dot_dimension_numbers<[1], [0], [0], [1], [0, 0, 1, 1], [], []>} : vector<8x128xf32>, vector<128x512xf32>, vector<8x512xf32> -> vector<8x512xf32>
    %531 = arith.addf %528, %530 : vector<8x512xf32>
    %532 = vector.extract_strided_slice %531 {offsets = [0, 0], sizes = [8, 384], strides = [1, 1]} : vector<8x512xf32> to vector<8x384xf32>
    %533 = arith.negf %532 : vector<8x384xf32>
    %534 = math.exp %533 : vector<8x384xf32>
    %cst_276 = arith.constant 1.000000e+00 : f32
    %535 = vector.broadcast %cst_276 : f32 to vector<8x384xf32>
    %536 = arith.addf %535, %534 : vector<8x384xf32>
    %537 = arith.divf %535, %536 : vector<8x384xf32>
    %538 = vector.extract_strided_slice %537 {offsets = [0, 0], sizes = [8, 128], strides = [1, 1]} : vector<8x384xf32> to vector<8x128xf32>
    %539 = vector.extract_strided_slice %537 {offsets = [0, 128], sizes = [8, 128], strides = [1, 1]} : vector<8x384xf32> to vector<8x128xf32>
    %540 = vector.extract_strided_slice %537 {offsets = [0, 256], sizes = [8, 128], strides = [1, 1]} : vector<8x384xf32> to vector<8x128xf32>
    %541 = vector.extract_strided_slice %531 {offsets = [0, 384], sizes = [8, 128], strides = [1, 1]} : vector<8x512xf32> to vector<8x128xf32>
    %542 = math.tanh %541 : vector<8x128xf32>
    %c0_277 = arith.constant 0 : index
    %c0_278 = arith.constant 0 : index
    %543 = vector.load %arg16[%c0_277, %c0_278] : memref<8x128xf32, #tpu.memory_space<vmem>>, vector<8x128xf32>
    %544 = arith.mulf %539, %543 : vector<8x128xf32>
    %545 = arith.mulf %538, %542 : vector<8x128xf32>
    %546 = arith.addf %544, %545 : vector<8x128xf32>
    %547 = math.tanh %546 : vector<8x128xf32>
    %548 = arith.mulf %540, %547 : vector<8x128xf32>
    %c0_279 = arith.constant 0 : index
    %c0_280 = arith.constant 0 : index
    %549 = vector.load %arg16[%c0_279, %c0_280] : memref<8x128xf32, #tpu.memory_space<vmem>>, vector<8x128xf32>
    tpu.vector_store %arg16[%c0_279, %c0_280], %546 {strides = array<i32>} : memref<8x128xf32, #tpu.memory_space<vmem>>, vector<8x128xf32>,
    %c0_281 = arith.constant 0 : index
    %c0_282 = arith.constant 0 : index
    %550 = vector.load %arg15[%c0_281, %c0_282] : memref<8x128xf32, #tpu.memory_space<vmem>>, vector<8x128xf32>
    tpu.vector_store %arg15[%c0_281, %c0_282], %548 {strides = array<i32>} : memref<8x128xf32, #tpu.memory_space<vmem>>, vector<8x128xf32>,
    %551 = arith.addi %518, %526 : i32
    %552 = tpu.assume_multiple %551, 8 : i32
    %553 = arith.index_cast %552 : i32 to index
    %c0_283 = arith.constant 0 : index
    %554 = vector.load %arg12[%553, %c0_283] : memref<64x128xf32, #tpu.memory_space<vmem>>, vector<8x128xf32>
    tpu.vector_store %arg12[%553, %c0_283], %548 {strides = array<i32>} : memref<64x128xf32, #tpu.memory_space<vmem>>, vector<8x128xf32>,
    %c1_i32_284 = arith.constant 1 : i32
    %c8_i32_285 = arith.constant 8 : i32
    %555 = arith.muli %c1_i32_284, %c8_i32_285 : i32
    %556 = tpu.assume_multiple %555, 8 : i32
    %557 = arith.index_cast %556 : i32 to index
    %c0_286 = arith.constant 0 : index
    %558 = vector.load %arg14[%557, %c0_286] : memref<64x512xf32, #tpu.memory_space<vmem>>, vector<8x512xf32>
    %c0_287 = arith.constant 0 : index
    %c0_288 = arith.constant 0 : index
    %559 = vector.load %arg15[%c0_287, %c0_288] : memref<8x128xf32, #tpu.memory_space<vmem>>, vector<8x128xf32>
    %cst_289 = arith.constant dense<0.000000e+00> : vector<8x512xf32>
    %560 = tpu.matmul %559, %515, %cst_289 {dimension_numbers = #tpu.dot_dimension_numbers<[1], [0], [0], [1], [0, 0, 1, 1], [], []>} : vector<8x128xf32>, vector<128x512xf32>, vector<8x512xf32> -> vector<8x512xf32>
    %561 = arith.addf %558, %560 : vector<8x512xf32>
    %562 = vector.extract_strided_slice %561 {offsets = [0, 0], sizes = [8, 384], strides = [1, 1]} : vector<8x512xf32> to vector<8x384xf32>
    %563 = arith.negf %562 : vector<8x384xf32>
    %564 = math.exp %563 : vector<8x384xf32>
    %cst_290 = arith.constant 1.000000e+00 : f32
    %565 = vector.broadcast %cst_290 : f32 to vector<8x384xf32>
    %566 = arith.addf %565, %564 : vector<8x384xf32>
    %567 = arith.divf %565, %566 : vector<8x384xf32>
    %568 = vector.extract_strided_slice %567 {offsets = [0, 0], sizes = [8, 128], strides = [1, 1]} : vector<8x384xf32> to vector<8x128xf32>
    %569 = vector.extract_strided_slice %567 {offsets = [0, 128], sizes = [8, 128], strides = [1, 1]} : vector<8x384xf32> to vector<8x128xf32>
    %570 = vector.extract_strided_slice %567 {offsets = [0, 256], sizes = [8, 128], strides = [1, 1]} : vector<8x384xf32> to vector<8x128xf32>
    %571 = vector.extract_strided_slice %561 {offsets = [0, 384], sizes = [8, 128], strides = [1, 1]} : vector<8x512xf32> to vector<8x128xf32>
    %572 = math.tanh %571 : vector<8x128xf32>
    %c0_291 = arith.constant 0 : index
    %c0_292 = arith.constant 0 : index
    %573 = vector.load %arg16[%c0_291, %c0_292] : memref<8x128xf32, #tpu.memory_space<vmem>>, vector<8x128xf32>
    %574 = arith.mulf %569, %573 : vector<8x128xf32>
    %575 = arith.mulf %568, %572 : vector<8x128xf32>
    %576 = arith.addf %574, %575 : vector<8x128xf32>
    %577 = math.tanh %576 : vector<8x128xf32>
    %578 = arith.mulf %570, %577 : vector<8x128xf32>
    %c0_293 = arith.constant 0 : index
    %c0_294 = arith.constant 0 : index
    %579 = vector.load %arg16[%c0_293, %c0_294] : memref<8x128xf32, #tpu.memory_space<vmem>>, vector<8x128xf32>
    tpu.vector_store %arg16[%c0_293, %c0_294], %576 {strides = array<i32>} : memref<8x128xf32, #tpu.memory_space<vmem>>, vector<8x128xf32>,
    %c0_295 = arith.constant 0 : index
    %c0_296 = arith.constant 0 : index
    %580 = vector.load %arg15[%c0_295, %c0_296] : memref<8x128xf32, #tpu.memory_space<vmem>>, vector<8x128xf32>
    tpu.vector_store %arg15[%c0_295, %c0_296], %578 {strides = array<i32>} : memref<8x128xf32, #tpu.memory_space<vmem>>, vector<8x128xf32>,
    %581 = arith.addi %518, %556 : i32
    %582 = tpu.assume_multiple %581, 8 : i32
    %583 = arith.index_cast %582 : i32 to index
    %c0_297 = arith.constant 0 : index
    %584 = vector.load %arg12[%583, %c0_297] : memref<64x128xf32, #tpu.memory_space<vmem>>, vector<8x128xf32>
    tpu.vector_store %arg12[%583, %c0_297], %578 {strides = array<i32>} : memref<64x128xf32, #tpu.memory_space<vmem>>, vector<8x128xf32>,
    %c2_i32_298 = arith.constant 2 : i32
    %c8_i32_299 = arith.constant 8 : i32
    %585 = arith.muli %c2_i32_298, %c8_i32_299 : i32
    %586 = tpu.assume_multiple %585, 8 : i32
    %587 = arith.index_cast %586 : i32 to index
    %c0_300 = arith.constant 0 : index
    %588 = vector.load %arg14[%587, %c0_300] : memref<64x512xf32, #tpu.memory_space<vmem>>, vector<8x512xf32>
    %c0_301 = arith.constant 0 : index
    %c0_302 = arith.constant 0 : index
    %589 = vector.load %arg15[%c0_301, %c0_302] : memref<8x128xf32, #tpu.memory_space<vmem>>, vector<8x128xf32>
    %cst_303 = arith.constant dense<0.000000e+00> : vector<8x512xf32>
    %590 = tpu.matmul %589, %515, %cst_303 {dimension_numbers = #tpu.dot_dimension_numbers<[1], [0], [0], [1], [0, 0, 1, 1], [], []>} : vector<8x128xf32>, vector<128x512xf32>, vector<8x512xf32> -> vector<8x512xf32>
    %591 = arith.addf %588, %590 : vector<8x512xf32>
    %592 = vector.extract_strided_slice %591 {offsets = [0, 0], sizes = [8, 384], strides = [1, 1]} : vector<8x512xf32> to vector<8x384xf32>
    %593 = arith.negf %592 : vector<8x384xf32>
    %594 = math.exp %593 : vector<8x384xf32>
    %cst_304 = arith.constant 1.000000e+00 : f32
    %595 = vector.broadcast %cst_304 : f32 to vector<8x384xf32>
    %596 = arith.addf %595, %594 : vector<8x384xf32>
    %597 = arith.divf %595, %596 : vector<8x384xf32>
    %598 = vector.extract_strided_slice %597 {offsets = [0, 0], sizes = [8, 128], strides = [1, 1]} : vector<8x384xf32> to vector<8x128xf32>
    %599 = vector.extract_strided_slice %597 {offsets = [0, 128], sizes = [8, 128], strides = [1, 1]} : vector<8x384xf32> to vector<8x128xf32>
    %600 = vector.extract_strided_slice %597 {offsets = [0, 256], sizes = [8, 128], strides = [1, 1]} : vector<8x384xf32> to vector<8x128xf32>
    %601 = vector.extract_strided_slice %591 {offsets = [0, 384], sizes = [8, 128], strides = [1, 1]} : vector<8x512xf32> to vector<8x128xf32>
    %602 = math.tanh %601 : vector<8x128xf32>
    %c0_305 = arith.constant 0 : index
    %c0_306 = arith.constant 0 : index
    %603 = vector.load %arg16[%c0_305, %c0_306] : memref<8x128xf32, #tpu.memory_space<vmem>>, vector<8x128xf32>
    %604 = arith.mulf %599, %603 : vector<8x128xf32>
    %605 = arith.mulf %598, %602 : vector<8x128xf32>
    %606 = arith.addf %604, %605 : vector<8x128xf32>
    %607 = math.tanh %606 : vector<8x128xf32>
    %608 = arith.mulf %600, %607 : vector<8x128xf32>
    %c0_307 = arith.constant 0 : index
    %c0_308 = arith.constant 0 : index
    %609 = vector.load %arg16[%c0_307, %c0_308] : memref<8x128xf32, #tpu.memory_space<vmem>>, vector<8x128xf32>
    tpu.vector_store %arg16[%c0_307, %c0_308], %606 {strides = array<i32>} : memref<8x128xf32, #tpu.memory_space<vmem>>, vector<8x128xf32>,
    %c0_309 = arith.constant 0 : index
    %c0_310 = arith.constant 0 : index
    %610 = vector.load %arg15[%c0_309, %c0_310] : memref<8x128xf32, #tpu.memory_space<vmem>>, vector<8x128xf32>
    tpu.vector_store %arg15[%c0_309, %c0_310], %608 {strides = array<i32>} : memref<8x128xf32, #tpu.memory_space<vmem>>, vector<8x128xf32>,
    %611 = arith.addi %518, %586 : i32
    %612 = tpu.assume_multiple %611, 8 : i32
    %613 = arith.index_cast %612 : i32 to index
    %c0_311 = arith.constant 0 : index
    %614 = vector.load %arg12[%613, %c0_311] : memref<64x128xf32, #tpu.memory_space<vmem>>, vector<8x128xf32>
    tpu.vector_store %arg12[%613, %c0_311], %608 {strides = array<i32>} : memref<64x128xf32, #tpu.memory_space<vmem>>, vector<8x128xf32>,
    %c3_i32_312 = arith.constant 3 : i32
    %c8_i32_313 = arith.constant 8 : i32
    %615 = arith.muli %c3_i32_312, %c8_i32_313 : i32
    %616 = tpu.assume_multiple %615, 8 : i32
    %617 = arith.index_cast %616 : i32 to index
    %c0_314 = arith.constant 0 : index
    %618 = vector.load %arg14[%617, %c0_314] : memref<64x512xf32, #tpu.memory_space<vmem>>, vector<8x512xf32>
    %c0_315 = arith.constant 0 : index
    %c0_316 = arith.constant 0 : index
    %619 = vector.load %arg15[%c0_315, %c0_316] : memref<8x128xf32, #tpu.memory_space<vmem>>, vector<8x128xf32>
    %cst_317 = arith.constant dense<0.000000e+00> : vector<8x512xf32>
    %620 = tpu.matmul %619, %515, %cst_317 {dimension_numbers = #tpu.dot_dimension_numbers<[1], [0], [0], [1], [0, 0, 1, 1], [], []>} : vector<8x128xf32>, vector<128x512xf32>, vector<8x512xf32> -> vector<8x512xf32>
    %621 = arith.addf %618, %620 : vector<8x512xf32>
    %622 = vector.extract_strided_slice %621 {offsets = [0, 0], sizes = [8, 384], strides = [1, 1]} : vector<8x512xf32> to vector<8x384xf32>
    %623 = arith.negf %622 : vector<8x384xf32>
    %624 = math.exp %623 : vector<8x384xf32>
    %cst_318 = arith.constant 1.000000e+00 : f32
    %625 = vector.broadcast %cst_318 : f32 to vector<8x384xf32>
    %626 = arith.addf %625, %624 : vector<8x384xf32>
    %627 = arith.divf %625, %626 : vector<8x384xf32>
    %628 = vector.extract_strided_slice %627 {offsets = [0, 0], sizes = [8, 128], strides = [1, 1]} : vector<8x384xf32> to vector<8x128xf32>
    %629 = vector.extract_strided_slice %627 {offsets = [0, 128], sizes = [8, 128], strides = [1, 1]} : vector<8x384xf32> to vector<8x128xf32>
    %630 = vector.extract_strided_slice %627 {offsets = [0, 256], sizes = [8, 128], strides = [1, 1]} : vector<8x384xf32> to vector<8x128xf32>
    %631 = vector.extract_strided_slice %621 {offsets = [0, 384], sizes = [8, 128], strides = [1, 1]} : vector<8x512xf32> to vector<8x128xf32>
    %632 = math.tanh %631 : vector<8x128xf32>
    %c0_319 = arith.constant 0 : index
    %c0_320 = arith.constant 0 : index
    %633 = vector.load %arg16[%c0_319, %c0_320] : memref<8x128xf32, #tpu.memory_space<vmem>>, vector<8x128xf32>
    %634 = arith.mulf %629, %633 : vector<8x128xf32>
    %635 = arith.mulf %628, %632 : vector<8x128xf32>
    %636 = arith.addf %634, %635 : vector<8x128xf32>
    %637 = math.tanh %636 : vector<8x128xf32>
    %638 = arith.mulf %630, %637 : vector<8x128xf32>
    %c0_321 = arith.constant 0 : index
    %c0_322 = arith.constant 0 : index
    %639 = vector.load %arg16[%c0_321, %c0_322] : memref<8x128xf32, #tpu.memory_space<vmem>>, vector<8x128xf32>
    tpu.vector_store %arg16[%c0_321, %c0_322], %636 {strides = array<i32>} : memref<8x128xf32, #tpu.memory_space<vmem>>, vector<8x128xf32>,
    %c0_323 = arith.constant 0 : index
    %c0_324 = arith.constant 0 : index
    %640 = vector.load %arg15[%c0_323, %c0_324] : memref<8x128xf32, #tpu.memory_space<vmem>>, vector<8x128xf32>
    tpu.vector_store %arg15[%c0_323, %c0_324], %638 {strides = array<i32>} : memref<8x128xf32, #tpu.memory_space<vmem>>, vector<8x128xf32>,
    %641 = arith.addi %518, %616 : i32
    %642 = tpu.assume_multiple %641, 8 : i32
    %643 = arith.index_cast %642 : i32 to index
    %c0_325 = arith.constant 0 : index
    %644 = vector.load %arg12[%643, %c0_325] : memref<64x128xf32, #tpu.memory_space<vmem>>, vector<8x128xf32>
    tpu.vector_store %arg12[%643, %c0_325], %638 {strides = array<i32>} : memref<64x128xf32, #tpu.memory_space<vmem>>, vector<8x128xf32>,
    %c4_i32_326 = arith.constant 4 : i32
    %c8_i32_327 = arith.constant 8 : i32
    %645 = arith.muli %c4_i32_326, %c8_i32_327 : i32
    %646 = tpu.assume_multiple %645, 8 : i32
    %647 = arith.index_cast %646 : i32 to index
    %c0_328 = arith.constant 0 : index
    %648 = vector.load %arg14[%647, %c0_328] : memref<64x512xf32, #tpu.memory_space<vmem>>, vector<8x512xf32>
    %c0_329 = arith.constant 0 : index
    %c0_330 = arith.constant 0 : index
    %649 = vector.load %arg15[%c0_329, %c0_330] : memref<8x128xf32, #tpu.memory_space<vmem>>, vector<8x128xf32>
    %cst_331 = arith.constant dense<0.000000e+00> : vector<8x512xf32>
    %650 = tpu.matmul %649, %515, %cst_331 {dimension_numbers = #tpu.dot_dimension_numbers<[1], [0], [0], [1], [0, 0, 1, 1], [], []>} : vector<8x128xf32>, vector<128x512xf32>, vector<8x512xf32> -> vector<8x512xf32>
    %651 = arith.addf %648, %650 : vector<8x512xf32>
    %652 = vector.extract_strided_slice %651 {offsets = [0, 0], sizes = [8, 384], strides = [1, 1]} : vector<8x512xf32> to vector<8x384xf32>
    %653 = arith.negf %652 : vector<8x384xf32>
    %654 = math.exp %653 : vector<8x384xf32>
    %cst_332 = arith.constant 1.000000e+00 : f32
    %655 = vector.broadcast %cst_332 : f32 to vector<8x384xf32>
    %656 = arith.addf %655, %654 : vector<8x384xf32>
    %657 = arith.divf %655, %656 : vector<8x384xf32>
    %658 = vector.extract_strided_slice %657 {offsets = [0, 0], sizes = [8, 128], strides = [1, 1]} : vector<8x384xf32> to vector<8x128xf32>
    %659 = vector.extract_strided_slice %657 {offsets = [0, 128], sizes = [8, 128], strides = [1, 1]} : vector<8x384xf32> to vector<8x128xf32>
    %660 = vector.extract_strided_slice %657 {offsets = [0, 256], sizes = [8, 128], strides = [1, 1]} : vector<8x384xf32> to vector<8x128xf32>
    %661 = vector.extract_strided_slice %651 {offsets = [0, 384], sizes = [8, 128], strides = [1, 1]} : vector<8x512xf32> to vector<8x128xf32>
    %662 = math.tanh %661 : vector<8x128xf32>
    %c0_333 = arith.constant 0 : index
    %c0_334 = arith.constant 0 : index
    %663 = vector.load %arg16[%c0_333, %c0_334] : memref<8x128xf32, #tpu.memory_space<vmem>>, vector<8x128xf32>
    %664 = arith.mulf %659, %663 : vector<8x128xf32>
    %665 = arith.mulf %658, %662 : vector<8x128xf32>
    %666 = arith.addf %664, %665 : vector<8x128xf32>
    %667 = math.tanh %666 : vector<8x128xf32>
    %668 = arith.mulf %660, %667 : vector<8x128xf32>
    %c0_335 = arith.constant 0 : index
    %c0_336 = arith.constant 0 : index
    %669 = vector.load %arg16[%c0_335, %c0_336] : memref<8x128xf32, #tpu.memory_space<vmem>>, vector<8x128xf32>
    tpu.vector_store %arg16[%c0_335, %c0_336], %666 {strides = array<i32>} : memref<8x128xf32, #tpu.memory_space<vmem>>, vector<8x128xf32>,
    %c0_337 = arith.constant 0 : index
    %c0_338 = arith.constant 0 : index
    %670 = vector.load %arg15[%c0_337, %c0_338] : memref<8x128xf32, #tpu.memory_space<vmem>>, vector<8x128xf32>
    tpu.vector_store %arg15[%c0_337, %c0_338], %668 {strides = array<i32>} : memref<8x128xf32, #tpu.memory_space<vmem>>, vector<8x128xf32>,
    %671 = arith.addi %518, %646 : i32
    %672 = tpu.assume_multiple %671, 8 : i32
    %673 = arith.index_cast %672 : i32 to index
    %c0_339 = arith.constant 0 : index
    %674 = vector.load %arg12[%673, %c0_339] : memref<64x128xf32, #tpu.memory_space<vmem>>, vector<8x128xf32>
    tpu.vector_store %arg12[%673, %c0_339], %668 {strides = array<i32>} : memref<64x128xf32, #tpu.memory_space<vmem>>, vector<8x128xf32>,
    %c5_i32_340 = arith.constant 5 : i32
    %c8_i32_341 = arith.constant 8 : i32
    %675 = arith.muli %c5_i32_340, %c8_i32_341 : i32
    %676 = tpu.assume_multiple %675, 8 : i32
    %677 = arith.index_cast %676 : i32 to index
    %c0_342 = arith.constant 0 : index
    %678 = vector.load %arg14[%677, %c0_342] : memref<64x512xf32, #tpu.memory_space<vmem>>, vector<8x512xf32>
    %c0_343 = arith.constant 0 : index
    %c0_344 = arith.constant 0 : index
    %679 = vector.load %arg15[%c0_343, %c0_344] : memref<8x128xf32, #tpu.memory_space<vmem>>, vector<8x128xf32>
    %cst_345 = arith.constant dense<0.000000e+00> : vector<8x512xf32>
    %680 = tpu.matmul %679, %515, %cst_345 {dimension_numbers = #tpu.dot_dimension_numbers<[1], [0], [0], [1], [0, 0, 1, 1], [], []>} : vector<8x128xf32>, vector<128x512xf32>, vector<8x512xf32> -> vector<8x512xf32>
    %681 = arith.addf %678, %680 : vector<8x512xf32>
    %682 = vector.extract_strided_slice %681 {offsets = [0, 0], sizes = [8, 384], strides = [1, 1]} : vector<8x512xf32> to vector<8x384xf32>
    %683 = arith.negf %682 : vector<8x384xf32>
    %684 = math.exp %683 : vector<8x384xf32>
    %cst_346 = arith.constant 1.000000e+00 : f32
    %685 = vector.broadcast %cst_346 : f32 to vector<8x384xf32>
    %686 = arith.addf %685, %684 : vector<8x384xf32>
    %687 = arith.divf %685, %686 : vector<8x384xf32>
    %688 = vector.extract_strided_slice %687 {offsets = [0, 0], sizes = [8, 128], strides = [1, 1]} : vector<8x384xf32> to vector<8x128xf32>
    %689 = vector.extract_strided_slice %687 {offsets = [0, 128], sizes = [8, 128], strides = [1, 1]} : vector<8x384xf32> to vector<8x128xf32>
    %690 = vector.extract_strided_slice %687 {offsets = [0, 256], sizes = [8, 128], strides = [1, 1]} : vector<8x384xf32> to vector<8x128xf32>
    %691 = vector.extract_strided_slice %681 {offsets = [0, 384], sizes = [8, 128], strides = [1, 1]} : vector<8x512xf32> to vector<8x128xf32>
    %692 = math.tanh %691 : vector<8x128xf32>
    %c0_347 = arith.constant 0 : index
    %c0_348 = arith.constant 0 : index
    %693 = vector.load %arg16[%c0_347, %c0_348] : memref<8x128xf32, #tpu.memory_space<vmem>>, vector<8x128xf32>
    %694 = arith.mulf %689, %693 : vector<8x128xf32>
    %695 = arith.mulf %688, %692 : vector<8x128xf32>
    %696 = arith.addf %694, %695 : vector<8x128xf32>
    %697 = math.tanh %696 : vector<8x128xf32>
    %698 = arith.mulf %690, %697 : vector<8x128xf32>
    %c0_349 = arith.constant 0 : index
    %c0_350 = arith.constant 0 : index
    %699 = vector.load %arg16[%c0_349, %c0_350] : memref<8x128xf32, #tpu.memory_space<vmem>>, vector<8x128xf32>
    tpu.vector_store %arg16[%c0_349, %c0_350], %696 {strides = array<i32>} : memref<8x128xf32, #tpu.memory_space<vmem>>, vector<8x128xf32>,
    %c0_351 = arith.constant 0 : index
    %c0_352 = arith.constant 0 : index
    %700 = vector.load %arg15[%c0_351, %c0_352] : memref<8x128xf32, #tpu.memory_space<vmem>>, vector<8x128xf32>
    tpu.vector_store %arg15[%c0_351, %c0_352], %698 {strides = array<i32>} : memref<8x128xf32, #tpu.memory_space<vmem>>, vector<8x128xf32>,
    %701 = arith.addi %518, %676 : i32
    %702 = tpu.assume_multiple %701, 8 : i32
    %703 = arith.index_cast %702 : i32 to index
    %c0_353 = arith.constant 0 : index
    %704 = vector.load %arg12[%703, %c0_353] : memref<64x128xf32, #tpu.memory_space<vmem>>, vector<8x128xf32>
    tpu.vector_store %arg12[%703, %c0_353], %698 {strides = array<i32>} : memref<64x128xf32, #tpu.memory_space<vmem>>, vector<8x128xf32>,
    %c6_i32_354 = arith.constant 6 : i32
    %c8_i32_355 = arith.constant 8 : i32
    %705 = arith.muli %c6_i32_354, %c8_i32_355 : i32
    %706 = tpu.assume_multiple %705, 8 : i32
    %707 = arith.index_cast %706 : i32 to index
    %c0_356 = arith.constant 0 : index
    %708 = vector.load %arg14[%707, %c0_356] : memref<64x512xf32, #tpu.memory_space<vmem>>, vector<8x512xf32>
    %c0_357 = arith.constant 0 : index
    %c0_358 = arith.constant 0 : index
    %709 = vector.load %arg15[%c0_357, %c0_358] : memref<8x128xf32, #tpu.memory_space<vmem>>, vector<8x128xf32>
    %cst_359 = arith.constant dense<0.000000e+00> : vector<8x512xf32>
    %710 = tpu.matmul %709, %515, %cst_359 {dimension_numbers = #tpu.dot_dimension_numbers<[1], [0], [0], [1], [0, 0, 1, 1], [], []>} : vector<8x128xf32>, vector<128x512xf32>, vector<8x512xf32> -> vector<8x512xf32>
    %711 = arith.addf %708, %710 : vector<8x512xf32>
    %712 = vector.extract_strided_slice %711 {offsets = [0, 0], sizes = [8, 384], strides = [1, 1]} : vector<8x512xf32> to vector<8x384xf32>
    %713 = arith.negf %712 : vector<8x384xf32>
    %714 = math.exp %713 : vector<8x384xf32>
    %cst_360 = arith.constant 1.000000e+00 : f32
    %715 = vector.broadcast %cst_360 : f32 to vector<8x384xf32>
    %716 = arith.addf %715, %714 : vector<8x384xf32>
    %717 = arith.divf %715, %716 : vector<8x384xf32>
    %718 = vector.extract_strided_slice %717 {offsets = [0, 0], sizes = [8, 128], strides = [1, 1]} : vector<8x384xf32> to vector<8x128xf32>
    %719 = vector.extract_strided_slice %717 {offsets = [0, 128], sizes = [8, 128], strides = [1, 1]} : vector<8x384xf32> to vector<8x128xf32>
    %720 = vector.extract_strided_slice %717 {offsets = [0, 256], sizes = [8, 128], strides = [1, 1]} : vector<8x384xf32> to vector<8x128xf32>
    %721 = vector.extract_strided_slice %711 {offsets = [0, 384], sizes = [8, 128], strides = [1, 1]} : vector<8x512xf32> to vector<8x128xf32>
    %722 = math.tanh %721 : vector<8x128xf32>
    %c0_361 = arith.constant 0 : index
    %c0_362 = arith.constant 0 : index
    %723 = vector.load %arg16[%c0_361, %c0_362] : memref<8x128xf32, #tpu.memory_space<vmem>>, vector<8x128xf32>
    %724 = arith.mulf %719, %723 : vector<8x128xf32>
    %725 = arith.mulf %718, %722 : vector<8x128xf32>
    %726 = arith.addf %724, %725 : vector<8x128xf32>
    %727 = math.tanh %726 : vector<8x128xf32>
    %728 = arith.mulf %720, %727 : vector<8x128xf32>
    %c0_363 = arith.constant 0 : index
    %c0_364 = arith.constant 0 : index
    %729 = vector.load %arg16[%c0_363, %c0_364] : memref<8x128xf32, #tpu.memory_space<vmem>>, vector<8x128xf32>
    tpu.vector_store %arg16[%c0_363, %c0_364], %726 {strides = array<i32>} : memref<8x128xf32, #tpu.memory_space<vmem>>, vector<8x128xf32>,
    %c0_365 = arith.constant 0 : index
    %c0_366 = arith.constant 0 : index
    %730 = vector.load %arg15[%c0_365, %c0_366] : memref<8x128xf32, #tpu.memory_space<vmem>>, vector<8x128xf32>
    tpu.vector_store %arg15[%c0_365, %c0_366], %728 {strides = array<i32>} : memref<8x128xf32, #tpu.memory_space<vmem>>, vector<8x128xf32>,
    %731 = arith.addi %518, %706 : i32
    %732 = tpu.assume_multiple %731, 8 : i32
    %733 = arith.index_cast %732 : i32 to index
    %c0_367 = arith.constant 0 : index
    %734 = vector.load %arg12[%733, %c0_367] : memref<64x128xf32, #tpu.memory_space<vmem>>, vector<8x128xf32>
    tpu.vector_store %arg12[%733, %c0_367], %728 {strides = array<i32>} : memref<64x128xf32, #tpu.memory_space<vmem>>, vector<8x128xf32>,
    %c7_i32_368 = arith.constant 7 : i32
    %c8_i32_369 = arith.constant 8 : i32
    %735 = arith.muli %c7_i32_368, %c8_i32_369 : i32
    %736 = tpu.assume_multiple %735, 8 : i32
    %737 = arith.index_cast %736 : i32 to index
    %c0_370 = arith.constant 0 : index
    %738 = vector.load %arg14[%737, %c0_370] : memref<64x512xf32, #tpu.memory_space<vmem>>, vector<8x512xf32>
    %c0_371 = arith.constant 0 : index
    %c0_372 = arith.constant 0 : index
    %739 = vector.load %arg15[%c0_371, %c0_372] : memref<8x128xf32, #tpu.memory_space<vmem>>, vector<8x128xf32>
    %cst_373 = arith.constant dense<0.000000e+00> : vector<8x512xf32>
    %740 = tpu.matmul %739, %515, %cst_373 {dimension_numbers = #tpu.dot_dimension_numbers<[1], [0], [0], [1], [0, 0, 1, 1], [], []>} : vector<8x128xf32>, vector<128x512xf32>, vector<8x512xf32> -> vector<8x512xf32>
    %741 = arith.addf %738, %740 : vector<8x512xf32>
    %742 = vector.extract_strided_slice %741 {offsets = [0, 0], sizes = [8, 384], strides = [1, 1]} : vector<8x512xf32> to vector<8x384xf32>
    %743 = arith.negf %742 : vector<8x384xf32>
    %744 = math.exp %743 : vector<8x384xf32>
    %cst_374 = arith.constant 1.000000e+00 : f32
    %745 = vector.broadcast %cst_374 : f32 to vector<8x384xf32>
    %746 = arith.addf %745, %744 : vector<8x384xf32>
    %747 = arith.divf %745, %746 : vector<8x384xf32>
    %748 = vector.extract_strided_slice %747 {offsets = [0, 0], sizes = [8, 128], strides = [1, 1]} : vector<8x384xf32> to vector<8x128xf32>
    %749 = vector.extract_strided_slice %747 {offsets = [0, 128], sizes = [8, 128], strides = [1, 1]} : vector<8x384xf32> to vector<8x128xf32>
    %750 = vector.extract_strided_slice %747 {offsets = [0, 256], sizes = [8, 128], strides = [1, 1]} : vector<8x384xf32> to vector<8x128xf32>
    %751 = vector.extract_strided_slice %741 {offsets = [0, 384], sizes = [8, 128], strides = [1, 1]} : vector<8x512xf32> to vector<8x128xf32>
    %752 = math.tanh %751 : vector<8x128xf32>
    %c0_375 = arith.constant 0 : index
    %c0_376 = arith.constant 0 : index
    %753 = vector.load %arg16[%c0_375, %c0_376] : memref<8x128xf32, #tpu.memory_space<vmem>>, vector<8x128xf32>
    %754 = arith.mulf %749, %753 : vector<8x128xf32>
    %755 = arith.mulf %748, %752 : vector<8x128xf32>
    %756 = arith.addf %754, %755 : vector<8x128xf32>
    %757 = math.tanh %756 : vector<8x128xf32>
    %758 = arith.mulf %750, %757 : vector<8x128xf32>
    %c0_377 = arith.constant 0 : index
    %c0_378 = arith.constant 0 : index
    %759 = vector.load %arg16[%c0_377, %c0_378] : memref<8x128xf32, #tpu.memory_space<vmem>>, vector<8x128xf32>
    tpu.vector_store %arg16[%c0_377, %c0_378], %756 {strides = array<i32>} : memref<8x128xf32, #tpu.memory_space<vmem>>, vector<8x128xf32>,
    %c0_379 = arith.constant 0 : index
    %c0_380 = arith.constant 0 : index
    %760 = vector.load %arg15[%c0_379, %c0_380] : memref<8x128xf32, #tpu.memory_space<vmem>>, vector<8x128xf32>
    tpu.vector_store %arg15[%c0_379, %c0_380], %758 {strides = array<i32>} : memref<8x128xf32, #tpu.memory_space<vmem>>, vector<8x128xf32>,
    %761 = arith.addi %518, %736 : i32
    %762 = tpu.assume_multiple %761, 8 : i32
    %763 = arith.index_cast %762 : i32 to index
    %c0_381 = arith.constant 0 : index
    %764 = vector.load %arg12[%763, %c0_381] : memref<64x128xf32, #tpu.memory_space<vmem>>, vector<8x128xf32>
    tpu.vector_store %arg12[%763, %c0_381], %758 {strides = array<i32>} : memref<64x128xf32, #tpu.memory_space<vmem>>, vector<8x128xf32>,
    %c8_i32_382 = arith.constant 8 : i32
    %c1_i32_383 = arith.constant 1 : i32
    %c56 = arith.constant 56 : index
    %c0_384 = arith.constant 0 : index
    %765 = vector.load %arg12[%c56, %c0_384] : memref<64x128xf32, #tpu.memory_space<vmem>>, vector<8x128xf32>
    %c0_385 = arith.constant 0 : index
    %c0_386 = arith.constant 0 : index
    %766 = vector.load %arg10[%c0_385, %c0_386] : memref<128x128xf32, #tpu.memory_space<vmem>>, vector<128x128xf32>
    %cst_387 = arith.constant dense<0.000000e+00> : vector<8x128xf32>
    %767 = tpu.matmul %765, %766, %cst_387 {dimension_numbers = #tpu.dot_dimension_numbers<[1], [0], [0], [1], [0, 0, 1, 1], [], []>} : vector<8x128xf32>, vector<128x128xf32>, vector<8x128xf32> -> vector<8x128xf32>
    %c0_388 = arith.constant 0 : index
    %c0_389 = arith.constant 0 : index
    %768 = vector.load %arg11[%c0_388, %c0_389] : memref<1x128xf32, #tpu.memory_space<vmem>>, vector<1x128xf32>
    %769 = vector.broadcast %768 : vector<1x128xf32> to vector<8x128xf32>
    %770 = arith.addf %767, %769 : vector<8x128xf32>
    %c0_390 = arith.constant 0 : index
    %c0_391 = arith.constant 0 : index
    %771 = vector.load %arg13[%c0_390, %c0_391] : memref<8x128xf32, #tpu.memory_space<vmem>>, vector<8x128xf32>
    tpu.vector_store %arg13[%c0_390, %c0_391], %770 {strides = array<i32>} : memref<8x128xf32, #tpu.memory_space<vmem>>, vector<8x128xf32>,
    return
  }
}

</mosaic_0001>

<bundles_post_ra>
// kernel: tpu_custom_call.1
= control target key start
LH: loop header
LB: loop body
LE: loop exit
PB: predicated region body
PF: predicated region fallthrough
CT: control target
= control target key end

     0   :  { %19 = vsyncpa [#allocation6], 0  ;;  %s10106_s0 = inlined_call_operand.vmem [shape: f32[64,4], index: 0, kind: input, shape index: {}]   ;;  %s10107_s1 = inlined_call_operand.vmem [shape: f32[4,512], index: 1, kind: input, shape index: {}]   ;;  %s10108_s2 = inlined_call_operand.hbm [shape: f32[128,512], index: 2, kind: input, shape index: {}]   ;;  %s10109_s3 = inlined_call_operand.vmem [shape: f32[1,512], index: 3, kind: input, shape index: {}]   ;;  %s10110_s4 = inlined_call_operand.hbm [shape: f32[128,512], index: 4, kind: input, shape index: {}]   ;;  %s10111_s5 = inlined_call_operand.hbm [shape: f32[128,512], index: 5, kind: input, shape index: {}]   ;;  %s10112_s6 = inlined_call_operand.vmem [shape: f32[1,512], index: 6, kind: input, shape index: {}]   ;;  %s10113_s7 = inlined_call_operand.hbm [shape: f32[128,512], index: 7, kind: input, shape index: {}]   ;;  %s10114_s8 = inlined_call_operand.hbm [shape: f32[128,512], index: 8, kind: input, shape index: {}]   ;;  %s10115_s9 = inlined_call_operand.vmem [shape: f32[1,512], index: 9, kind: input, shape index: {}]   ;;  %s10116_s10 = inlined_call_operand.hbm [shape: f32[128,128], index: 10, kind: input, shape index: {}]   ;;  %s10117_s11 = inlined_call_operand.vmem [shape: f32[1,128], index: 11, kind: input, shape index: {}]   ;;  %s10118_s12 = inlined_call_operand.hbm [shape: f32[64,128], index: 12, kind: output, shape index: {0}]   ;;  %s10119_s13 = inlined_call_operand.hbm [shape: f32[8,128], index: 13, kind: output, shape index: {1}]  }
   0x1   :  { %20 = vsyncpa [#allocation9], 0 }
   0x2   :  { %21 = vsyncpa [#allocation12], 0 }
   0x3   :  { %22 = vsyncpa [#allocation15], 0 }
   0x4   :  { %23 = vsyncpa [#allocation7], 0 }
   0x5   :  { %24 = vsyncpa [#allocation18], 0  ;;  %s8450_s25 = smov [#allocation8]   ;;  %s8451_s27 = smov [#allocation11]  }
   0x6   :  { %s48_s26 = sshll.u32 %s8450_s25, 4  ;;  %s74_s28 = sshll.u32 %s8451_s27, 4  ;;  %s49_s26 = int_to_ptr.vmem [resolvable:$true] %s48_s26  ;;  %s8535_s28 = int_to_ptr.vmem [resolvable:$true] %s74_s28 }
   0x7   :  { %s8262_s14 = scalar_lea.hbm %s10110_s4, 8192 }
   0x8   :  { %p8263_p0 = scmp.ne.s32.totalorder %s10110_s4, %s8262_s14  ;;  %p8266_p1 = scmp.lt.u32.totalorder %s8262_s14, %s10110_s4 }
   0xa   :  { %p8268_p2 = pnand %p8266_p1, %p8263_p0 }
   0xc   :  { %8271 = shalt.err (!%p8268_p2)
}
   0xd   :  { %s8272_s19 = scalar_lea.vmem %s49_s26, 8192  ;;  %p8277_p4 = scmp.lt.s32.totalorder %s49_s26, %s49_s26 }
   0xe   :  { %p8273_p3 = scmp.ne.s32.totalorder %s49_s26, %s8272_s19  ;;  %p8278_p5 = scmp.lt.s32.totalorder %s8272_s19, %s8272_s19 }
  0x10   :  { %p8279_p6 = por %p8278_p5, %p8277_p4 }
  0x12   :  { %p8280_p7 = pnand %p8279_p6, %p8273_p3 }
  0x14   :  { %8283 = shalt.err (!%p8280_p7)
}
  0x15   :  { %s8452_s20 = smov 512   ;;  %s8453_s21 = smov 32  }
  0x16   :  { %54 = dma.hbm_to_vmem [thread:$0]  %s10110_s4, 8192, %s49_s26, [#allocation9], %s8452_s20, %s8452_s20, %s8453_s21  }
  0x17   :  { %s8284_s27 = scalar_lea.hbm %s10113_s7, 8192 }
  0x18   :  { %p8285_p8 = scmp.ne.s32.totalorder %s10113_s7, %s8284_s27  ;;  %p8288_p9 = scmp.lt.u32.totalorder %s8284_s27, %s10113_s7 }
  0x1a   :  { %p8290_p10 = pnand %p8288_p9, %p8285_p8 }
  0x1c   :  { %8293 = shalt.err (!%p8290_p10)
}
  0x1d   :  { %s8294_s16 = scalar_lea.vmem %s8535_s28, 8192  ;;  %p8299_p12 = scmp.lt.s32.totalorder %s8535_s28, %s8535_s28 }
  0x1e   :  { %p8295_p11 = scmp.ne.s32.totalorder %s8535_s28, %s8294_s16  ;;  %p8300_p13 = scmp.lt.s32.totalorder %s8294_s16, %s8294_s16 }
  0x20   :  { %p8301_p0 = por %p8300_p13, %p8299_p12 }
  0x22   :  { %p8302_p1 = pnand %p8301_p0, %p8295_p11 }
  0x24   :  { %8305 = shalt.err (!%p8302_p1)
}
  0x25   :  { %80 = dma.hbm_to_vmem [thread:$0]  %s10113_s7, 8192, %s8535_s28, [#allocation12], %s8452_s20, %s8452_s20, %s8453_s21  }
  0x26   :  { %s8454_s17 = smov [#allocation5]   ;;  %s8455_s19 = smov [#allocation10]  }
  0x27   :  { %s34_s18 = sshll.u32 %s8454_s17, 4  ;;  %s60_s22 = sshll.u32 %s8455_s19, 4  ;;  %s35_s18 = int_to_ptr.vmem [resolvable:$true] %s34_s18  ;;  %s8572_s22 = int_to_ptr.vmem [resolvable:$true] %s60_s22 }
  0x28   :  { %s8306_s25 = scalar_lea.hbm %s10108_s2, 8192 }
  0x29   :  { %p8307_p2 = scmp.ne.s32.totalorder %s10108_s2, %s8306_s25  ;;  %p8310_p3 = scmp.lt.u32.totalorder %s8306_s25, %s10108_s2 }
  0x2b   :  { %p8312_p4 = pnand %p8310_p3, %p8307_p2 }
  0x2d   :  { %8315 = shalt.err (!%p8312_p4)
}
  0x2e   :  { %s8316_s7 = scalar_lea.vmem %s35_s18, 8192  ;;  %p8321_p6 = scmp.lt.s32.totalorder %s35_s18, %s35_s18 }
  0x2f   :  { %p8317_p5 = scmp.ne.s32.totalorder %s35_s18, %s8316_s7  ;;  %p8322_p7 = scmp.lt.s32.totalorder %s8316_s7, %s8316_s7 }
  0x31   :  { %p8323_p8 = por %p8322_p7, %p8321_p6 }
  0x33   :  { %p8324_p9 = pnand %p8323_p8, %p8317_p5 }
  0x35   :  { %8327 = shalt.err (!%p8324_p9)
}
  0x36   :  { %40 = dma.hbm_to_vmem [thread:$0]  %s10108_s2, 8192, %s35_s18, [#allocation6], %s8452_s20, %s8452_s20, %s8453_s21  }
  0x37   :  { %s8328_s26 = scalar_lea.hbm %s10111_s5, 8192 }
  0x38   :  { %p8329_p10 = scmp.ne.s32.totalorder %s10111_s5, %s8328_s26  ;;  %p8332_p11 = scmp.lt.u32.totalorder %s8328_s26, %s10111_s5 }
  0x3a   :  { %p8334_p12 = pnand %p8332_p11, %p8329_p10 }
  0x3c   :  { %8337 = shalt.err (!%p8334_p12)
}
  0x3d   :  { %s8338_s25 = scalar_lea.vmem %s8572_s22, 8192  ;;  %p8343_p0 = scmp.lt.s32.totalorder %s8572_s22, %s8572_s22 }
  0x3e   :  { %p8339_p13 = scmp.ne.s32.totalorder %s8572_s22, %s8338_s25  ;;  %p8344_p1 = scmp.lt.s32.totalorder %s8338_s25, %s8338_s25 }
  0x40   :  { %p8345_p2 = por %p8344_p1, %p8343_p0 }
  0x42   :  { %p8346_p3 = pnand %p8345_p2, %p8339_p13 }
  0x44   :  { %8349 = shalt.err (!%p8346_p3)
}
  0x45   :  { %66 = dma.hbm_to_vmem [thread:$0]  %s10111_s5, 8192, %s8572_s22, [#allocation9], %s8452_s20, %s8452_s20, %s8453_s21  }
  0x46   :  { %s8456_s27 = smov [#allocation13]   ;;  %s8457_s30 = smov [#allocation14]  }
  0x47   :  { %s86_s29 = sshll.u32 %s8456_s27, 4  ;;  %s100_s14 = sshll.u32 %s8457_s30, 4  ;;  %s87_s29 = int_to_ptr.vmem [resolvable:$true] %s86_s29  ;;  %s8609_s14 = int_to_ptr.vmem [resolvable:$true] %s100_s14 }
  0x48   :  { %s8350_s15 = scalar_lea.hbm %s10114_s8, 8192 }
  0x49   :  { %p8351_p4 = scmp.ne.s32.totalorder %s10114_s8, %s8350_s15  ;;  %p8354_p5 = scmp.lt.u32.totalorder %s8350_s15, %s10114_s8 }
  0x4b   :  { %p8356_p6 = pnand %p8354_p5, %p8351_p4 }
  0x4d   :  { %8359 = shalt.err (!%p8356_p6)
}
  0x4e   :  { %s8360_s5 = scalar_lea.vmem %s87_s29, 8192  ;;  %p8365_p8 = scmp.lt.s32.totalorder %s87_s29, %s87_s29 }
  0x4f   :  { %p8361_p7 = scmp.ne.s32.totalorder %s87_s29, %s8360_s5  ;;  %p8366_p9 = scmp.lt.s32.totalorder %s8360_s5, %s8360_s5 }
  0x51   :  { %p8367_p10 = por %p8366_p9, %p8365_p8 }
  0x53   :  { %p8368_p11 = pnand %p8367_p10, %p8361_p7 }
  0x55   :  { %8371 = shalt.err (!%p8368_p11)
}
  0x56   :  { %92 = dma.hbm_to_vmem [thread:$0]  %s10114_s8, 8192, %s87_s29, [#allocation12], %s8452_s20, %s8452_s20, %s8453_s21  }
  0x57   :  { %s8372_s25 = scalar_lea.hbm %s10116_s10, 2048 }
  0x58   :  { %p8373_p12 = scmp.ne.s32.totalorder %s10116_s10, %s8372_s25  ;;  %p8376_p13 = scmp.lt.u32.totalorder %s8372_s25, %s10116_s10 }
  0x5a   :  { %p8378_p0 = pnand %p8376_p13, %p8373_p12 }
  0x5c   :  { %8381 = shalt.err (!%p8378_p0)
}
  0x5d   :  { %s8382_s7 = scalar_lea.vmem %s8609_s14, 2048  ;;  %p8387_p2 = scmp.lt.s32.totalorder %s8609_s14, %s8609_s14 }
  0x5e   :  { %p8383_p1 = scmp.ne.s32.totalorder %s8609_s14, %s8382_s7  ;;  %p8388_p3 = scmp.lt.s32.totalorder %s8382_s7, %s8382_s7 }
  0x60   :  { %p8389_p4 = por %p8388_p3, %p8387_p2 }
  0x62   :  { %p8390_p5 = pnand %p8389_p4, %p8383_p1 }
  0x64   :  { %8393 = shalt.err (!%p8390_p5)
}
  0x65   :  { %s8458_s8 = smov 128   ;;  %s8459_s20 = smov 8  }
  0x66   :  { %106 = dma.hbm_to_vmem [thread:$0]  %s10116_s10, 2048, %s8609_s14, [#allocation15], %s8458_s8, %s8458_s8, %s8459_s20  }
  0x67   :  { %8438 = dma.done.wait [#allocation6], 8192  }
  0x68   :  { %8439 = vsyncadd [#allocation6], 4294959104 }
  0x69   :  { %8440 = dma.done.wait [#allocation9], 16384  }
  0x6a   :  { %8441 = vsyncadd [#allocation9], 4294950912 }
  0x6b   :  { %8442 = dma.done.wait [#allocation12], 16384  }
  0x6c   :  { %8443 = vsyncadd [#allocation12], 4294950912 }
  0x6d   :  { %8444 = dma.done.wait [#allocation15], 2048  }
  0x6e   :  { %8445 = vsyncadd [#allocation15], 4294965248  ;;  %v8460_v0 = vmov 0.0   ;;  %v129_v1 = vld [vmem:[%s10107_s1] sm:$0xff]  ;;  %vm254_vm0 = vcmask 1043456   ;;  %v130_v2 = vld [vmem:[%s10107_s1 + $0x8] sm:$0xff] }
  0x6f   :  { %327 = vmatprep.mubr.f32.mxu0 %v8460_v0  ;;  %440 = vmatprep.mubr.f32.mxu1 %v8460_v0  ;;  %v196_v3 = vld [vmem:[%s10106_s0] sm:$0xff]  ;;  %v227_v4 = vcombine.high %v129_v1, %v129_v1  ;;  %v228_v5 = vcombine.high %v130_v2, %v130_v2  ;;  %v132_v6 = vld [vmem:[#allocation5 + $0x8] sm:$0xff]  ;;  %vm229_vm1 = vcmask 31744   ;;  %v131_v11 = vld [vmem:[#allocation5] sm:$0xff]  ;;  %vm8462_vm2 = vmmov 0  }
  0x70   :  { %v136_v7 = vld [vmem:[#allocation5 + $0x28] sm:$0xff]  ;;  %v134_v8 = vld [vmem:[#allocation5 + $0x18] sm:$0xff]  ;;  %v135_v12 = vld [vmem:[#allocation5 + $0x20] sm:$0xff] }
  0x71   :  { %v8657_v9 = vpack.c.bf16 %v136_v7, %v132_v6  ;;  %v138_v10 = vld [vmem:[#allocation5 + $0x38] sm:$0xff]  ;;  %5836 = vmatprep.subr.msk.mxu0 %vm254_vm0, %v227_v4  ;;  %5846 = vmatprep.subr.msk.mxu1 %vm254_vm0, %v228_v5  ;;  %v8663_v14 = vpack.c.bf16 %v135_v12, %v131_v11  ;;  %v133_v15 = vld [vmem:[#allocation5 + $0x10] sm:$0xff]  ;;  %v140_v18 = vld [vmem:[#allocation5 + $0x48] sm:$0xff] }
  0x72   :  { %v8661_v13 = vpack.c.bf16 %v138_v10, %v134_v8  ;;  %v137_v16 = vld [vmem:[#allocation5 + $0x30] sm:$0xff]  ;;  %5837 = vmatpush1.msk.msra.mxu0 %vm254_vm0, %v129_v1  ;;  %5847 = vmatpush1.msk.msra.mxu1 %vm254_vm0, %v130_v2  ;;  %v144_v19 = vld [vmem:[#allocation5 + $0x68] sm:$0xff]  ;;  %v142_v20 = vld [vmem:[#allocation5 + $0x58] sm:$0xff] }
  0x73   :  { %v8667_v17 = vpack.c.bf16 %v137_v16, %v133_v15  ;;  %5838 = vmatmul.mubr.msk.f32.vlgmr.msra.gmra.mrb[0].mxu0 %vm229_vm1, %v196_v3  ;;  %5848 = vmatmul.mubr.msk.f32.vlgmr.msra.gmra.mrb[0].mxu1 %vm229_vm1, %v196_v3  ;;  %v146_v21 = vld [vmem:[#allocation5 + $0x78] sm:$0xff]  ;;  %v139_v22 = vld [vmem:[#allocation5 + $0x40] sm:$0xff]  ;;  %v8676_v25 = vpack.c.bf16 %v144_v19, %v140_v18  ;;  %v141_v27 = vld [vmem:[#allocation5 + $0x50] sm:$0xff] }
  0x74   :  { %v143_v23 = vld [vmem:[#allocation5 + $0x60] sm:$0xff]  ;;  %5982 = vmatprep.subr.bf16.mxu0 %v8657_v9  ;;  %6014 = vmatprep.subr.bf16.mxu1 %v8661_v13  ;;  %v8678_v26 = vpack.c.bf16 %v146_v21, %v142_v20  ;;  %v145_v28 = vld [vmem:[#allocation5 + $0x70] sm:$0xff]  ;;  %v148_v31 = vld [vmem:[#allocation5 + $0x88] sm:$0xff] }
  0x75   :  { %v197_v24 = vld [vmem:[%s10106_s0 + $0x8] sm:$0xff]  ;;  %5984 = vmatpush1.bf16.msra.mxu0 %v8663_v14  ;;  %6016 = vmatpush1.bf16.msra.mxu1 %v8667_v17  ;;  %v8682_v29 = vpack.c.bf16 %v143_v23, %v139_v22  ;;  %v8684_v30 = vpack.c.bf16 %v145_v28, %v141_v27  ;;  %v152_v32 = vld [vmem:[#allocation5 + $0xa8] sm:$0xff]  ;;  %v150_v33 = vld [vmem:[#allocation5 + $0x98] sm:$0xff] }
  0x76   :  { %333 = vmatprep.mubr.f32.mxu0 %v8460_v0  ;;  %446 = vmatprep.mubr.f32.mxu1 %v8460_v0  ;;  %v154_v34 = vld [vmem:[#allocation5 + $0xb8] sm:$0xff]  ;;  %v147_v35 = vld [vmem:[#allocation5 + $0x80] sm:$0xff]  ;;  %v149_v37 = vld [vmem:[#allocation5 + $0x90] sm:$0xff]  ;;  %v8695_v40 = vpack.c.bf16 %v152_v32, %v148_v31 }
  0x77   :  { %v151_v36 = vld [vmem:[#allocation5 + $0xa0] sm:$0xff]  ;;  %5839 = vmatmul.mubr.msk.f32.gmra.mrb[2].mxu0 %vm229_vm1, %v197_v24  ;;  %5849 = vmatmul.mubr.msk.f32.gmra.mrb[2].mxu1 %vm229_vm1, %v197_v24  ;;  %v153_v38 = vld [vmem:[#allocation5 + $0xb0] sm:$0xff]  ;;  %v198_v39 = vld [vmem:[%s10106_s0 + $0x10] sm:$0xff]  ;;  %v8697_v41 = vpack.c.bf16 %v154_v34, %v150_v33 }
  0x78   :  { %5986 = vmatprep.subr.bf16.mxu0 %v8676_v25  ;;  %6018 = vmatprep.subr.bf16.mxu1 %v8678_v26  ;;  %v156_v42 = vld [vmem:[#allocation5 + $0xc8] sm:$0xff]  ;;  %v8701_v44 = vpack.c.bf16 %v151_v36, %v147_v35  ;;  %v8703_v45 = vpack.c.bf16 %v153_v38, %v149_v37  ;;  %v158_v46 = vld [vmem:[#allocation5 + $0xd8] sm:$0xff]  ;;  %v155_v48 = vld [vmem:[#allocation5 + $0xc0] sm:$0xff] }
  0x79   :  { %v160_v43 = vld [vmem:[#allocation5 + $0xe8] sm:$0xff]  ;;  %5988 = vmatpush1.bf16.msra.mxu0 %v8682_v29  ;;  %6020 = vmatpush1.bf16.msra.mxu1 %v8684_v30  ;;  %v162_v47 = vld [vmem:[#allocation5 + $0xf8] sm:$0xff]  ;;  %v159_v49 = vld [vmem:[#allocation5 + $0xe0] sm:$0xff] }
  0x7a   :  { %339 = vmatprep.mubr.f32.mxu0 %v8460_v0  ;;  %452 = vmatprep.mubr.f32.mxu1 %v8460_v0  ;;  %v157_v50 = vld [vmem:[#allocation5 + $0xd0] sm:$0xff]  ;;  %v8714_v53 = vpack.c.bf16 %v160_v43, %v156_v42  ;;  %v8716_v54 = vpack.c.bf16 %v162_v47, %v158_v46  ;;  %v164_v55 = vld [vmem:[#allocation5 + $0x108] sm:$0xff]  ;;  %v8720_v57 = vpack.c.bf16 %v159_v49, %v155_v48  ;;  %v166_v59 = vld [vmem:[#allocation5 + $0x118] sm:$0xff] }
  0x7b   :  { %v161_v51 = vld [vmem:[#allocation5 + $0xf0] sm:$0xff]  ;;  %5840 = vmatmul.mubr.msk.f32.gmra.mrb[4].mxu0 %vm229_vm1, %v198_v39  ;;  %5850 = vmatmul.mubr.msk.f32.gmra.mrb[4].mxu1 %vm229_vm1, %v198_v39  ;;  %v168_v56 = vld [vmem:[#allocation5 + $0x128] sm:$0xff]  ;;  %v170_v60 = vld [vmem:[#allocation5 + $0x138] sm:$0xff] }
  0x7c   :  { %5990 = vmatprep.subr.bf16.mxu0 %v8695_v40  ;;  %6022 = vmatprep.subr.bf16.mxu1 %v8697_v41  ;;  %v199_v52 = vld [vmem:[%s10106_s0 + $0x18] sm:$0xff]  ;;  %v8722_v58 = vpack.c.bf16 %v161_v51, %v157_v50  ;;  %v163_v61 = vld [vmem:[#allocation5 + $0x100] sm:$0xff]  ;;  %v200_v2 = vld [vmem:[%s10106_s0 + $0x20] sm:$0xff]  ;;  %v8733_v3 = vpack.c.bf16 %v168_v56, %v164_v55  ;;  %v8735_v4 = vpack.c.bf16 %v170_v60, %v166_v59 }
  0x7d   :  { %5992 = vmatpush1.bf16.msra.mxu0 %v8701_v44  ;;  %6024 = vmatpush1.bf16.msra.mxu1 %v8703_v45  ;;  %v167_v62 = vld [vmem:[#allocation5 + $0x120] sm:$0xff]  ;;  %v165_v63 = vld [vmem:[#allocation5 + $0x110] sm:$0xff]  ;;  %v172_v5 = vld [vmem:[#allocation5 + $0x148] sm:$0xff] }
  0x7e   :  { %345 = vmatprep.mubr.f32.mxu0 %v8460_v0  ;;  %458 = vmatprep.mubr.f32.mxu1 %v8460_v0  ;;  %v169_v1 = vld [vmem:[#allocation5 + $0x130] sm:$0xff]  ;;  %v176_v6 = vld [vmem:[#allocation5 + $0x168] sm:$0xff]  ;;  %v8739_v7 = vpack.c.bf16 %v167_v62, %v163_v61  ;;  %v174_v10 = vld [vmem:[#allocation5 + $0x158] sm:$0xff]  ;;  %v205_v62 = vlaneseq }
  0x7f   :  { %5841 = vmatmul.mubr.msk.f32.gmra.mrb[6].mxu0 %vm229_vm1, %v199_v52  ;;  %5851 = vmatmul.mubr.msk.f32.gmra.mrb[6].mxu1 %vm229_vm1, %v199_v52  ;;  %v8741_v8 = vpack.c.bf16 %v169_v1, %v165_v63  ;;  %v178_v11 = vld [vmem:[#allocation5 + $0x178] sm:$0xff]  ;;  %v171_v12 = vld [vmem:[#allocation5 + $0x140] sm:$0xff]  ;;  %v173_v16 = vld [vmem:[#allocation5 + $0x150] sm:$0xff]  ;;  %v8752_v20 = vpack.c.bf16 %v176_v6, %v172_v5 }
  0x80   :  { %5994 = vmatprep.subr.bf16.mxu0 %v8714_v53  ;;  %6026 = vmatprep.subr.bf16.mxu1 %v8716_v54  ;;  %v175_v15 = vld [vmem:[#allocation5 + $0x160] sm:$0xff]  ;;  %v177_v18 = vld [vmem:[#allocation5 + $0x170] sm:$0xff]  ;;  %v8754_v21 = vpack.c.bf16 %v178_v11, %v174_v10  ;;  %v180_v22 = vld [vmem:[#allocation5 + $0x188] sm:$0xff]  ;;  %v206_v63 = vshrl.u32 %v205_v62, 7 }
  0x81   :  { %5996 = vmatpush1.bf16.msra.mxu0 %v8720_v57  ;;  %6028 = vmatpush1.bf16.msra.mxu1 %v8722_v58  ;;  %v201_v19 = vld [vmem:[%s10106_s0 + $0x28] sm:$0xff]  ;;  %v184_v23 = vld [vmem:[#allocation5 + $0x1a8] sm:$0xff]  ;;  %v8758_v24 = vpack.c.bf16 %v175_v15, %v171_v12  ;;  %v8760_v27 = vpack.c.bf16 %v177_v18, %v173_v16  ;;  %v182_v28 = vld [vmem:[#allocation5 + $0x198] sm:$0xff] }
  0x82   :  { %351 = vmatprep.mubr.f32.mxu0 %v8460_v0  ;;  %464 = vmatprep.mubr.f32.mxu1 %v8460_v0  ;;  %v186_v31 = vld [vmem:[#allocation5 + $0x1b8] sm:$0xff]  ;;  %v179_v32 = vld [vmem:[#allocation5 + $0x180] sm:$0xff]  ;;  %v181_v34 = vld [vmem:[#allocation5 + $0x190] sm:$0xff]  ;;  %v8771_v37 = vpack.c.bf16 %v184_v23, %v180_v22  ;;  %v8848_v1 = vsub.s32 0, %v206_v63  ;;  %v8853_v5 = vsub.s32 1, %v206_v63  ;;  %v8862_v16 = vsub.s32 2, %v206_v63 }
  0x83   :  { %5842 = vmatmul.mubr.msk.f32.gmra.mrb[8].mxu0 %vm229_vm1, %v200_v2  ;;  %5852 = vmatmul.mubr.msk.f32.gmra.mrb[8].mxu1 %vm229_vm1, %v200_v2  ;;  %v183_v33 = vld [vmem:[#allocation5 + $0x1a0] sm:$0xff]  ;;  %v185_v35 = vld [vmem:[#allocation5 + $0x1b0] sm:$0xff]  ;;  %v202_v36 = vld [vmem:[%s10106_s0 + $0x30] sm:$0xff]  ;;  %v8773_v38 = vpack.c.bf16 %v186_v31, %v182_v28  ;;  %v8865_v31 = vsub.s32 3, %v206_v63 }
  0x84   :  { %5998 = vmatprep.subr.bf16.mxu0 %v8733_v3  ;;  %6030 = vmatprep.subr.bf16.mxu1 %v8735_v4  ;;  %v188_v39 = vld [vmem:[#allocation5 + $0x1c8] sm:$0xff]  ;;  %v8777_v43 = vpack.c.bf16 %v183_v33, %v179_v32  ;;  %v8779_v46 = vpack.c.bf16 %v185_v35, %v181_v34  ;;  %v190_v47 = vld [vmem:[#allocation5 + $0x1d8] sm:$0xff]  ;;  %v187_v49 = vld [vmem:[#allocation5 + $0x1c0] sm:$0xff] }
  0x85   :  { %6000 = vmatpush1.bf16.msra.mxu0 %v8739_v7  ;;  %6032 = vmatpush1.bf16.msra.mxu1 %v8741_v8  ;;  %v192_v42 = vld [vmem:[#allocation5 + $0x1e8] sm:$0xff]  ;;  %v194_v48 = vld [vmem:[#allocation5 + $0x1f8] sm:$0xff]  ;;  %v191_v50 = vld [vmem:[#allocation5 + $0x1e0] sm:$0xff] }
  0x86   :  { %357 = vmatprep.mubr.f32.mxu0 %v8460_v0  ;;  %470 = vmatprep.mubr.f32.mxu1 %v8460_v0  ;;  %v189_v51 = vld [vmem:[#allocation5 + $0x1d0] sm:$0xff]  ;;  %v8790_v56 = vpack.c.bf16 %v192_v42, %v188_v39  ;;  %v8792_v59 = vpack.c.bf16 %v194_v48, %v190_v47  ;;  %v8796_v60 = vpack.c.bf16 %v191_v50, %v187_v49  ;;  %v195_v2 = vld [vmem:[%s10109_s3] sm:$0xf] }
  0x87   :  { %5843 = vmatmul.mubr.msk.f32.gmra.mrb[10].mxu0 %vm229_vm1, %v201_v19  ;;  %5853 = vmatmul.mubr.msk.f32.gmra.mrb[10].mxu1 %vm229_vm1, %v201_v19  ;;  %v193_v52 = vld [vmem:[#allocation5 + $0x1f0] sm:$0xff]  ;;  %v8856_v6 = vrot.slane %v195_v2, %v8848_v1  ;;  %v8859_v10 = vrot.slane %v195_v2, %v8853_v5  ;;  %v8868_v32 = vrot.slane %v195_v2, %v8862_v16 }
  0x88   :  { %6002 = vmatprep.subr.bf16.mxu0 %v8752_v20  ;;  %6034 = vmatprep.subr.bf16.mxu1 %v8754_v21  ;;  %v203_v55 = vld [vmem:[%s10106_s0 + $0x38] sm:$0xff]  ;;  %v8798_v61 = vpack.c.bf16 %v193_v52, %v189_v51  ;;  %v8871_v33 = vrot.slane %v195_v2, %v8865_v31 }
  0x89   :  { %6004 = vmatpush1.bf16.msra.mxu0 %v8758_v24  ;;  %6036 = vmatpush1.bf16.msra.mxu1 %v8760_v27 }
  0x8a   :  { %363 = vmatprep.mubr.f32.mxu0 %v8460_v0  ;;  %476 = vmatprep.mubr.f32.mxu1 %v8460_v0 }
  0x8b   :  { %5844 = vmatmul.mubr.msk.f32.gmra.mrb[12].mxu0 %vm229_vm1, %v202_v36  ;;  %5854 = vmatmul.mubr.msk.f32.gmra.mrb[12].mxu1 %vm229_vm1, %v202_v36 }
  0x8c   :  { %6006 = vmatprep.subr.bf16.mxu0 %v8771_v37  ;;  %6038 = vmatprep.subr.bf16.mxu1 %v8773_v38 }
  0x8d   :  { %6008 = vmatpush1.bf16.msra.mxu0 %v8777_v43  ;;  %6040 = vmatpush1.bf16.msra.mxu1 %v8779_v46 }
  0x8e   :  { %369 = vmatprep.mubr.f32.mxu0 %v8460_v0  ;;  %482 = vmatprep.mubr.f32.mxu1 %v8460_v0 }
  0x8f   :  { %5845 = vmatmul.mubr.msk.f32.gmra.mrb[14].mxu0 %vm229_vm1, %v203_v55  ;;  %5855 = vmatmul.mubr.msk.f32.gmra.mrb[14].mxu1 %vm229_vm1, %v203_v55 }
  0x90   :  { %6010 = vmatprep.subr.bf16.mxu0 %v8790_v56  ;;  %6042 = vmatprep.subr.bf16.mxu1 %v8792_v59 }
  0x91   :  { %6012 = vmatpush1.bf16.msra.mxu0 %v8796_v60  ;;  %6044 = vmatpush1.bf16.msra.mxu1 %v8798_v61 }
  0x92   :  { %593 = vmatprep.mubr.f32.mxu0 %v8460_v0  ;;  %664 = vmatprep.mubr.f32.mxu1 %v8460_v0 }
  0x93   :  { %6046 = vmatprep.subr.bf16.mxu0 %v8657_v9  ;;  %6078 = vmatprep.subr.bf16.mxu1 %v8661_v13 }
  0x94   :  { %594 = vmatmul.mubr.f32.vlgmr.msra.gmra.mrb[0].mxu0 %v8460_v0  ;;  %665 = vmatmul.mubr.f32.vlgmr.msra.gmra.mrb[0].mxu1 %v8460_v0 }
  0x95   :  { %6048 = vmatpush1.bf16.msra.mxu0 %v8663_v14  ;;  %6080 = vmatpush1.bf16.msra.mxu1 %v8667_v17 }
  0x96   :  { %6050 = vmatprep.subr.bf16.mxu0 %v8676_v25  ;;  %6082 = vmatprep.subr.bf16.mxu1 %v8678_v26 }
  0x97   :  { %777 = vmatprep.mubr.f32.mxu0 %v8460_v0  ;;  %848 = vmatprep.mubr.f32.mxu1 %v8460_v0 }
  0x99   :  { %6052 = vmatpush1.bf16.msra.mxu0 %v8682_v29  ;;  %6084 = vmatpush1.bf16.msra.mxu1 %v8684_v30 }
  0x9a   :  { %6054 = vmatprep.subr.bf16.mxu0 %v8695_v40  ;;  %6086 = vmatprep.subr.bf16.mxu1 %v8697_v41 }
  0x9d   :  { %6056 = vmatpush1.bf16.msra.mxu0 %v8701_v44  ;;  %6088 = vmatpush1.bf16.msra.mxu1 %v8703_v45 }
  0x9e   :  { %6058 = vmatprep.subr.bf16.mxu0 %v8714_v53  ;;  %6090 = vmatprep.subr.bf16.mxu1 %v8716_v54 }
  0xa1   :  { %6060 = vmatpush1.bf16.msra.mxu0 %v8720_v57  ;;  %6092 = vmatpush1.bf16.msra.mxu1 %v8722_v58 }
  0xa2   :  { %6062 = vmatprep.subr.bf16.mxu0 %v8733_v3  ;;  %6094 = vmatprep.subr.bf16.mxu1 %v8735_v4 }
  0xa5   :  { %6064 = vmatpush1.bf16.msra.mxu0 %v8739_v7  ;;  %6096 = vmatpush1.bf16.msra.mxu1 %v8741_v8 }
  0xa6   :  { %6066 = vmatprep.subr.bf16.mxu0 %v8752_v20  ;;  %6098 = vmatprep.subr.bf16.mxu1 %v8754_v21 }
  0xa9   :  { %6068 = vmatpush1.bf16.msra.mxu0 %v8758_v24  ;;  %6100 = vmatpush1.bf16.msra.mxu1 %v8760_v27 }
  0xaa   :  { %6070 = vmatprep.subr.bf16.mxu0 %v8771_v37  ;;  %6102 = vmatprep.subr.bf16.mxu1 %v8773_v38 }
  0xad   :  { %6072 = vmatpush1.bf16.msra.mxu0 %v8777_v43  ;;  %6104 = vmatpush1.bf16.msra.mxu1 %v8779_v46 }
  0xae   :  { %6074 = vmatprep.subr.bf16.mxu0 %v8790_v56  ;;  %6106 = vmatprep.subr.bf16.mxu1 %v8792_v59 }
  0xb1   :  { %6076 = vmatpush1.bf16.msra.mxu0 %v8796_v60  ;;  %6108 = vmatpush1.bf16.msra.mxu1 %v8798_v61 }
  0xb2   :  { %6110 = vmatprep.subr.bf16.mxu0 %v8657_v9  ;;  %6142 = vmatprep.subr.bf16.mxu1 %v8661_v13 }
 0x167   :  { %v595_v11 = vpop.f32.mrb[0].mxu0  ;;  %v666_v12 = vpop.f32.mrb[0].mxu1 }
 0x168   :  { %v7669_v15 = vadd.f32 %v595_v11, %v8856_v6  ;;  %v597_v18 = vpop.f32.mrb[1].mxu0  ;;  %v668_v19 = vpop.f32.mrb[1].mxu1  ;;  %v7685_v34 = vadd.f32 %v666_v12, %v8868_v32 }
 0x169   :  { %v7670_v22 = vadd.f32 %v597_v18, %v8859_v10  ;;  %v7686_v35 = vadd.f32 %v668_v19, %v8871_v33 }
 0x16a   :  { %v5856_v23 = vmul.f32 -1.442695, %v7669_v15  ;;  %v5858_v36 = vmul.f32 -1.442695, %v7685_v34 }
 0x16b   :  { %v5857_v28 = vmul.f32 -1.442695, %v7670_v22 }
 0x16c   :  { %7878 = vpow2.f32 %v5856_v23 }
 0x16d   :  { %7880 = vpow2.f32 %v5857_v28 }
 0x16e   :  { %7882 = vtanh.f32 %v7686_v35 }
 0x16f   :  { %7884 = vpow2.f32 %v5858_v36 }
 0x176   :  { %v7879_v39 = vpop.eup %7878 }
 0x177   :  { %v684_v42 = vadd.f32 1.0, %v7879_v39  ;;  %v7881_v47 = vpop.eup %7880 }
 0x178   :  { %v685_v48 = vadd.f32 1.0, %v7881_v47  ;;  %v7883_v49 = vpop.eup %7882 }
 0x179   :  { %7886 = vrcp.f32 %v684_v42  ;;  %v7885_v50 = vpop.eup %7884 }
 0x17a   :  { %7888 = vrcp.f32 %v685_v48  ;;  %v686_v62 = vadd.f32 1.0, %v7885_v50 }
 0x17c   :  { %7890 = vrcp.f32 %v686_v62 }
 0x183   :  { %v7887_v51 = vpop.eup %7886 }
 0x184   :  { %v696_v52 = vmul.f32 %v7887_v51, %v7883_v49  ;;  %v7889_v55 = vpop.eup %7888 }
 0x185   :  { %v695_v63 = vmul.f32 0.0, %v7889_v55 }
 0x186   :  { %v7891_v11 = vpop.eup %7890 }
 0x187   :  { %v8875_v2 = vadd.f32 %v696_v52, %v695_v63 }
 0x189   :  { %7892 = vtanh.f32 %v8875_v2 }
 0x193   :  { %v7893_v12 = vpop.eup %7892 }
 0x194   :  { %v8878_v15 = vmul.f32 %v7893_v12, %v7891_v11 }
 0x196   :  { %778 = vmatmul.mubr.f32.vlgmr.msra.gmra.mrb[2].mxu0 %v8878_v15  ;;  %849 = vmatmul.mubr.f32.vlgmr.msra.gmra.mrb[2].mxu1 %v8878_v15 }
 0x197   :  { %6112 = vmatpush1.bf16.msra.mxu0 %v8663_v14  ;;  %6144 = vmatpush1.bf16.msra.mxu1 %v8667_v17 }
 0x198   :  { %6114 = vmatprep.subr.bf16.mxu0 %v8676_v25  ;;  %6146 = vmatprep.subr.bf16.mxu1 %v8678_v26 }
 0x199   :  { %961 = vmatprep.mubr.f32.mxu0 %v8460_v0  ;;  %1032 = vmatprep.mubr.f32.mxu1 %v8460_v0 }
 0x19b   :  { %6116 = vmatpush1.bf16.msra.mxu0 %v8682_v29  ;;  %6148 = vmatpush1.bf16.msra.mxu1 %v8684_v30 }
 0x19c   :  { %6118 = vmatprep.subr.bf16.mxu0 %v8695_v40  ;;  %6150 = vmatprep.subr.bf16.mxu1 %v8697_v41 }
 0x19f   :  { %6120 = vmatpush1.bf16.msra.mxu0 %v8701_v44  ;;  %6152 = vmatpush1.bf16.msra.mxu1 %v8703_v45 }
 0x1a0   :  { %6122 = vmatprep.subr.bf16.mxu0 %v8714_v53  ;;  %6154 = vmatprep.subr.bf16.mxu1 %v8716_v54 }
 0x1a3   :  { %6124 = vmatpush1.bf16.msra.mxu0 %v8720_v57  ;;  %6156 = vmatpush1.bf16.msra.mxu1 %v8722_v58 }
 0x1a4   :  { %6126 = vmatprep.subr.bf16.mxu0 %v8733_v3  ;;  %6158 = vmatprep.subr.bf16.mxu1 %v8735_v4 }
 0x1a7   :  { %6128 = vmatpush1.bf16.msra.mxu0 %v8739_v7  ;;  %6160 = vmatpush1.bf16.msra.mxu1 %v8741_v8 }
 0x1a8   :  { %6130 = vmatprep.subr.bf16.mxu0 %v8752_v20  ;;  %6162 = vmatprep.subr.bf16.mxu1 %v8754_v21 }
 0x1ab   :  { %6132 = vmatpush1.bf16.msra.mxu0 %v8758_v24  ;;  %6164 = vmatpush1.bf16.msra.mxu1 %v8760_v27 }
 0x1ac   :  { %6134 = vmatprep.subr.bf16.mxu0 %v8771_v37  ;;  %6166 = vmatprep.subr.bf16.mxu1 %v8773_v38 }
 0x1af   :  { %6136 = vmatpush1.bf16.msra.mxu0 %v8777_v43  ;;  %6168 = vmatpush1.bf16.msra.mxu1 %v8779_v46 }
 0x1b0   :  { %6138 = vmatprep.subr.bf16.mxu0 %v8790_v56  ;;  %6170 = vmatprep.subr.bf16.mxu1 %v8792_v59 }
 0x1b3   :  { %6140 = vmatpush1.bf16.msra.mxu0 %v8796_v60  ;;  %6172 = vmatpush1.bf16.msra.mxu1 %v8798_v61 }
 0x1b4   :  { %6174 = vmatprep.subr.bf16.mxu0 %v8657_v9  ;;  %6206 = vmatprep.subr.bf16.mxu1 %v8661_v13 }
 0x269   :  { %v779_v18 = vpop.f32.mrb[2].mxu0  ;;  %v850_v19 = vpop.f32.mrb[2].mxu1 }
 0x26a   :  { %v7671_v22 = vadd.f32 %v779_v18, %v8856_v6  ;;  %v781_v23 = vpop.f32.mrb[3].mxu0  ;;  %v852_v28 = vpop.f32.mrb[3].mxu1  ;;  %v7687_v39 = vadd.f32 %v850_v19, %v8868_v32 }
 0x26b   :  { %v7672_v34 = vadd.f32 %v781_v23, %v8859_v10  ;;  %v7688_v42 = vadd.f32 %v852_v28, %v8871_v33 }
 0x26c   :  { %v5859_v35 = vmul.f32 -1.442695, %v7671_v22  ;;  %v5861_v47 = vmul.f32 -1.442695, %v7687_v39 }
 0x26d   :  { %v5860_v36 = vmul.f32 -1.442695, %v7672_v34 }
 0x26e   :  { %7894 = vpow2.f32 %v5859_v35 }
 0x26f   :  { %7896 = vpow2.f32 %v5860_v36 }
 0x270   :  { %7898 = vtanh.f32 %v7688_v42 }
 0x271   :  { %7900 = vpow2.f32 %v5861_v47 }
 0x278   :  { %v7895_v48 = vpop.eup %7894 }
 0x279   :  { %v868_v49 = vadd.f32 1.0, %v7895_v48  ;;  %v7897_v50 = vpop.eup %7896 }
 0x27a   :  { %v869_v51 = vadd.f32 1.0, %v7897_v50  ;;  %v7899_v52 = vpop.eup %7898 }
 0x27b   :  { %7902 = vrcp.f32 %v868_v49  ;;  %v7901_v55 = vpop.eup %7900 }
 0x27c   :  { %7904 = vrcp.f32 %v869_v51  ;;  %v870_v12 = vadd.f32 1.0, %v7901_v55 }
 0x27e   :  { %7906 = vrcp.f32 %v870_v12 }
 0x285   :  { %v7903_v62 = vpop.eup %7902 }
 0x286   :  { %v880_v63 = vmul.f32 %v7903_v62, %v7899_v52  ;;  %v7905_v11 = vpop.eup %7904 }
 0x287   :  { %v879_v18 = vmul.f32 %v7905_v11, %v8875_v2 }
 0x288   :  { %v7907_v22 = vpop.eup %7906 }
 0x289   :  { %v8921_v19 = vadd.f32 %v880_v63, %v879_v18 }
 0x28b   :  { %7908 = vtanh.f32 %v8921_v19 }
 0x295   :  { %v7909_v23 = vpop.eup %7908 }
 0x296   :  { %v8924_v28 = vmul.f32 %v7909_v23, %v7907_v22 }
 0x298   :  { %962 = vmatmul.mubr.f32.vlgmr.msra.gmra.mrb[4].mxu0 %v8924_v28  ;;  %1033 = vmatmul.mubr.f32.vlgmr.msra.gmra.mrb[4].mxu1 %v8924_v28 }
 0x299   :  { %6176 = vmatpush1.bf16.msra.mxu0 %v8663_v14  ;;  %6208 = vmatpush1.bf16.msra.mxu1 %v8667_v17 }
 0x29a   :  { %6178 = vmatprep.subr.bf16.mxu0 %v8676_v25  ;;  %6210 = vmatprep.subr.bf16.mxu1 %v8678_v26 }
 0x29b   :  { %1145 = vmatprep.mubr.f32.mxu0 %v8460_v0  ;;  %1216 = vmatprep.mubr.f32.mxu1 %v8460_v0 }
 0x29d   :  { %6180 = vmatpush1.bf16.msra.mxu0 %v8682_v29  ;;  %6212 = vmatpush1.bf16.msra.mxu1 %v8684_v30 }
 0x29e   :  { %6182 = vmatprep.subr.bf16.mxu0 %v8695_v40  ;;  %6214 = vmatprep.subr.bf16.mxu1 %v8697_v41 }
 0x2a1   :  { %6184 = vmatpush1.bf16.msra.mxu0 %v8701_v44  ;;  %6216 = vmatpush1.bf16.msra.mxu1 %v8703_v45 }
 0x2a2   :  { %6186 = vmatprep.subr.bf16.mxu0 %v8714_v53  ;;  %6218 = vmatprep.subr.bf16.mxu1 %v8716_v54 }
 0x2a5   :  { %6188 = vmatpush1.bf16.msra.mxu0 %v8720_v57  ;;  %6220 = vmatpush1.bf16.msra.mxu1 %v8722_v58 }
 0x2a6   :  { %6190 = vmatprep.subr.bf16.mxu0 %v8733_v3  ;;  %6222 = vmatprep.subr.bf16.mxu1 %v8735_v4 }
 0x2a9   :  { %6192 = vmatpush1.bf16.msra.mxu0 %v8739_v7  ;;  %6224 = vmatpush1.bf16.msra.mxu1 %v8741_v8 }
 0x2aa   :  { %6194 = vmatprep.subr.bf16.mxu0 %v8752_v20  ;;  %6226 = vmatprep.subr.bf16.mxu1 %v8754_v21 }
 0x2ad   :  { %6196 = vmatpush1.bf16.msra.mxu0 %v8758_v24  ;;  %6228 = vmatpush1.bf16.msra.mxu1 %v8760_v27 }
 0x2ae   :  { %6198 = vmatprep.subr.bf16.mxu0 %v8771_v37  ;;  %6230 = vmatprep.subr.bf16.mxu1 %v8773_v38 }
 0x2b1   :  { %6200 = vmatpush1.bf16.msra.mxu0 %v8777_v43  ;;  %6232 = vmatpush1.bf16.msra.mxu1 %v8779_v46 }
 0x2b2   :  { %6202 = vmatprep.subr.bf16.mxu0 %v8790_v56  ;;  %6234 = vmatprep.subr.bf16.mxu1 %v8792_v59 }
 0x2b5   :  { %6204 = vmatpush1.bf16.msra.mxu0 %v8796_v60  ;;  %6236 = vmatpush1.bf16.msra.mxu1 %v8798_v61 }
 0x2b6   :  { %6238 = vmatprep.subr.bf16.mxu0 %v8657_v9  ;;  %6270 = vmatprep.subr.bf16.mxu1 %v8661_v13 }
 0x36b   :  { %v963_v2 = vpop.f32.mrb[4].mxu0  ;;  %v1034_v34 = vpop.f32.mrb[4].mxu1 }
 0x36c   :  { %v7673_v35 = vadd.f32 %v963_v2, %v8856_v6  ;;  %v965_v36 = vpop.f32.mrb[5].mxu0  ;;  %v1036_v39 = vpop.f32.mrb[5].mxu1  ;;  %v7689_v49 = vadd.f32 %v1034_v34, %v8868_v32 }
 0x36d   :  { %v7674_v42 = vadd.f32 %v965_v36, %v8859_v10  ;;  %v7690_v50 = vadd.f32 %v1036_v39, %v8871_v33 }
 0x36e   :  { %v5862_v47 = vmul.f32 -1.442695, %v7673_v35  ;;  %v5864_v51 = vmul.f32 -1.442695, %v7689_v49 }
 0x36f   :  { %v5863_v48 = vmul.f32 -1.442695, %v7674_v42 }
 0x370   :  { %7910 = vpow2.f32 %v5862_v47 }
 0x371   :  { %7912 = vpow2.f32 %v5863_v48 }
 0x372   :  { %7914 = vtanh.f32 %v7690_v50 }
 0x373   :  { %7916 = vpow2.f32 %v5864_v51 }
 0x37a   :  { %v7911_v52 = vpop.eup %7910 }
 0x37b   :  { %v1052_v55 = vadd.f32 1.0, %v7911_v52  ;;  %v7913_v62 = vpop.eup %7912 }
 0x37c   :  { %v1053_v63 = vadd.f32 1.0, %v7913_v62  ;;  %v7915_v11 = vpop.eup %7914 }
 0x37d   :  { %7918 = vrcp.f32 %v1052_v55  ;;  %v7917_v12 = vpop.eup %7916 }
 0x37e   :  { %7920 = vrcp.f32 %v1053_v63  ;;  %v1054_v2 = vadd.f32 1.0, %v7917_v12 }
 0x380   :  { %7922 = vrcp.f32 %v1054_v2 }
 0x387   :  { %v7919_v18 = vpop.eup %7918 }
 0x388   :  { %v1064_v22 = vmul.f32 %v7919_v18, %v7915_v11  ;;  %v7921_v23 = vpop.eup %7920 }
 0x389   :  { %v1063_v35 = vmul.f32 %v7921_v23, %v8921_v19 }
 0x38a   :  { %v7923_v36 = vpop.eup %7922 }
 0x38b   :  { %v8967_v34 = vadd.f32 %v1064_v22, %v1063_v35 }
 0x38d   :  { %7924 = vtanh.f32 %v8967_v34 }
 0x397   :  { %v7925_v39 = vpop.eup %7924 }
 0x398   :  { %v8970_v42 = vmul.f32 %v7925_v39, %v7923_v36 }
 0x39a   :  { %1146 = vmatmul.mubr.f32.vlgmr.msra.gmra.mrb[6].mxu0 %v8970_v42  ;;  %1217 = vmatmul.mubr.f32.vlgmr.msra.gmra.mrb[6].mxu1 %v8970_v42 }
 0x39b   :  { %6240 = vmatpush1.bf16.msra.mxu0 %v8663_v14  ;;  %6272 = vmatpush1.bf16.msra.mxu1 %v8667_v17 }
 0x39c   :  { %6242 = vmatprep.subr.bf16.mxu0 %v8676_v25  ;;  %6274 = vmatprep.subr.bf16.mxu1 %v8678_v26 }
 0x39d   :  { %1329 = vmatprep.mubr.f32.mxu0 %v8460_v0  ;;  %1400 = vmatprep.mubr.f32.mxu1 %v8460_v0 }
 0x39f   :  { %6244 = vmatpush1.bf16.msra.mxu0 %v8682_v29  ;;  %6276 = vmatpush1.bf16.msra.mxu1 %v8684_v30 }
 0x3a0   :  { %6246 = vmatprep.subr.bf16.mxu0 %v8695_v40  ;;  %6278 = vmatprep.subr.bf16.mxu1 %v8697_v41 }
 0x3a3   :  { %6248 = vmatpush1.bf16.msra.mxu0 %v8701_v44  ;;  %6280 = vmatpush1.bf16.msra.mxu1 %v8703_v45 }
 0x3a4   :  { %6250 = vmatprep.subr.bf16.mxu0 %v8714_v53  ;;  %6282 = vmatprep.subr.bf16.mxu1 %v8716_v54 }
 0x3a7   :  { %6252 = vmatpush1.bf16.msra.mxu0 %v8720_v57  ;;  %6284 = vmatpush1.bf16.msra.mxu1 %v8722_v58 }
 0x3a8   :  { %6254 = vmatprep.subr.bf16.mxu0 %v8733_v3  ;;  %6286 = vmatprep.subr.bf16.mxu1 %v8735_v4 }
 0x3ab   :  { %6256 = vmatpush1.bf16.msra.mxu0 %v8739_v7  ;;  %6288 = vmatpush1.bf16.msra.mxu1 %v8741_v8 }
 0x3ac   :  { %6258 = vmatprep.subr.bf16.mxu0 %v8752_v20  ;;  %6290 = vmatprep.subr.bf16.mxu1 %v8754_v21 }
 0x3af   :  { %6260 = vmatpush1.bf16.msra.mxu0 %v8758_v24  ;;  %6292 = vmatpush1.bf16.msra.mxu1 %v8760_v27 }
 0x3b0   :  { %6262 = vmatprep.subr.bf16.mxu0 %v8771_v37  ;;  %6294 = vmatprep.subr.bf16.mxu1 %v8773_v38 }
 0x3b3   :  { %6264 = vmatpush1.bf16.msra.mxu0 %v8777_v43  ;;  %6296 = vmatpush1.bf16.msra.mxu1 %v8779_v46 }
 0x3b4   :  { %6266 = vmatprep.subr.bf16.mxu0 %v8790_v56  ;;  %6298 = vmatprep.subr.bf16.mxu1 %v8792_v59 }
 0x3b7   :  { %6268 = vmatpush1.bf16.msra.mxu0 %v8796_v60  ;;  %6300 = vmatpush1.bf16.msra.mxu1 %v8798_v61 }
 0x3b8   :  { %6302 = vmatprep.subr.bf16.mxu0 %v8657_v9  ;;  %6334 = vmatprep.subr.bf16.mxu1 %v8661_v13 }
 0x46d   :  { %v1147_v19 = vpop.f32.mrb[6].mxu0  ;;  %v1218_v47 = vpop.f32.mrb[6].mxu1 }
 0x46e   :  { %v7675_v48 = vadd.f32 %v1147_v19, %v8856_v6  ;;  %v1149_v49 = vpop.f32.mrb[7].mxu0  ;;  %v1220_v50 = vpop.f32.mrb[7].mxu1  ;;  %v7691_v62 = vadd.f32 %v1218_v47, %v8868_v32 }
 0x46f   :  { %v7676_v51 = vadd.f32 %v1149_v49, %v8859_v10  ;;  %v7692_v63 = vadd.f32 %v1220_v50, %v8871_v33 }
 0x470   :  { %v5865_v52 = vmul.f32 -1.442695, %v7675_v48  ;;  %v5867_v11 = vmul.f32 -1.442695, %v7691_v62 }
 0x471   :  { %v5866_v55 = vmul.f32 -1.442695, %v7676_v51 }
 0x472   :  { %7926 = vpow2.f32 %v5865_v52 }
 0x473   :  { %7928 = vpow2.f32 %v5866_v55 }
 0x474   :  { %7930 = vtanh.f32 %v7692_v63 }
 0x475   :  { %7932 = vpow2.f32 %v5867_v11 }
 0x47c   :  { %v7927_v12 = vpop.eup %7926 }
 0x47d   :  { %v1236_v18 = vadd.f32 1.0, %v7927_v12  ;;  %v7929_v22 = vpop.eup %7928 }
 0x47e   :  { %v1237_v23 = vadd.f32 1.0, %v7929_v22  ;;  %v7931_v2 = vpop.eup %7930 }
 0x47f   :  { %7934 = vrcp.f32 %v1236_v18  ;;  %v7933_v35 = vpop.eup %7932 }
 0x480   :  { %7936 = vrcp.f32 %v1237_v23  ;;  %v1238_v48 = vadd.f32 1.0, %v7933_v35 }
 0x482   :  { %7938 = vrcp.f32 %v1238_v48 }
 0x489   :  { %v7935_v36 = vpop.eup %7934 }
 0x48a   :  { %v1248_v39 = vmul.f32 %v7935_v36, %v7931_v2  ;;  %v7937_v19 = vpop.eup %7936 }
 0x48b   :  { %v1247_v49 = vmul.f32 %v7937_v19, %v8967_v34 }
 0x48c   :  { %v7939_v50 = vpop.eup %7938 }
 0x48d   :  { %v9013_v47 = vadd.f32 %v1248_v39, %v1247_v49 }
 0x48f   :  { %7940 = vtanh.f32 %v9013_v47 }
 0x499   :  { %v7941_v51 = vpop.eup %7940 }
 0x49a   :  { %v9016_v52 = vmul.f32 %v7941_v51, %v7939_v50 }
 0x49c   :  { %1330 = vmatmul.mubr.f32.vlgmr.msra.gmra.mrb[8].mxu0 %v9016_v52  ;;  %1401 = vmatmul.mubr.f32.vlgmr.msra.gmra.mrb[8].mxu1 %v9016_v52 }
 0x49d   :  { %6304 = vmatpush1.bf16.msra.mxu0 %v8663_v14  ;;  %6336 = vmatpush1.bf16.msra.mxu1 %v8667_v17 }
 0x49e   :  { %6306 = vmatprep.subr.bf16.mxu0 %v8676_v25  ;;  %6338 = vmatprep.subr.bf16.mxu1 %v8678_v26 }
 0x49f   :  { %1513 = vmatprep.mubr.f32.mxu0 %v8460_v0  ;;  %1584 = vmatprep.mubr.f32.mxu1 %v8460_v0 }
 0x4a1   :  { %6308 = vmatpush1.bf16.msra.mxu0 %v8682_v29  ;;  %6340 = vmatpush1.bf16.msra.mxu1 %v8684_v30 }
 0x4a2   :  { %6310 = vmatprep.subr.bf16.mxu0 %v8695_v40  ;;  %6342 = vmatprep.subr.bf16.mxu1 %v8697_v41 }
 0x4a5   :  { %6312 = vmatpush1.bf16.msra.mxu0 %v8701_v44  ;;  %6344 = vmatpush1.bf16.msra.mxu1 %v8703_v45 }
 0x4a6   :  { %6314 = vmatprep.subr.bf16.mxu0 %v8714_v53  ;;  %6346 = vmatprep.subr.bf16.mxu1 %v8716_v54 }
 0x4a9   :  { %6316 = vmatpush1.bf16.msra.mxu0 %v8720_v57  ;;  %6348 = vmatpush1.bf16.msra.mxu1 %v8722_v58 }
 0x4aa   :  { %6318 = vmatprep.subr.bf16.mxu0 %v8733_v3  ;;  %6350 = vmatprep.subr.bf16.mxu1 %v8735_v4 }
 0x4ad   :  { %6320 = vmatpush1.bf16.msra.mxu0 %v8739_v7  ;;  %6352 = vmatpush1.bf16.msra.mxu1 %v8741_v8 }
 0x4ae   :  { %6322 = vmatprep.subr.bf16.mxu0 %v8752_v20  ;;  %6354 = vmatprep.subr.bf16.mxu1 %v8754_v21 }
 0x4b1   :  { %6324 = vmatpush1.bf16.msra.mxu0 %v8758_v24  ;;  %6356 = vmatpush1.bf16.msra.mxu1 %v8760_v27 }
 0x4b2   :  { %6326 = vmatprep.subr.bf16.mxu0 %v8771_v37  ;;  %6358 = vmatprep.subr.bf16.mxu1 %v8773_v38 }
 0x4b5   :  { %6328 = vmatpush1.bf16.msra.mxu0 %v8777_v43  ;;  %6360 = vmatpush1.bf16.msra.mxu1 %v8779_v46 }
 0x4b6   :  { %6330 = vmatprep.subr.bf16.mxu0 %v8790_v56  ;;  %6362 = vmatprep.subr.bf16.mxu1 %v8792_v59 }
 0x4b9   :  { %6332 = vmatpush1.bf16.msra.mxu0 %v8796_v60  ;;  %6364 = vmatpush1.bf16.msra.mxu1 %v8798_v61 }
 0x4ba   :  { %6366 = vmatprep.subr.bf16.mxu0 %v8657_v9  ;;  %6398 = vmatprep.subr.bf16.mxu1 %v8661_v13 }
 0x56f   :  { %v1331_v34 = vpop.f32.mrb[8].mxu0  ;;  %v1402_v55 = vpop.f32.mrb[8].mxu1 }
 0x570   :  { %v7677_v62 = vadd.f32 %v1331_v34, %v8856_v6  ;;  %v1333_v63 = vpop.f32.mrb[9].mxu0  ;;  %v1404_v11 = vpop.f32.mrb[9].mxu1  ;;  %v7693_v23 = vadd.f32 %v1402_v55, %v8868_v32 }
 0x571   :  { %v7678_v12 = vadd.f32 %v1333_v63, %v8859_v10  ;;  %v7694_v2 = vadd.f32 %v1404_v11, %v8871_v33 }
 0x572   :  { %v5868_v18 = vmul.f32 -1.442695, %v7677_v62  ;;  %v5870_v35 = vmul.f32 -1.442695, %v7693_v23 }
 0x573   :  { %v5869_v22 = vmul.f32 -1.442695, %v7678_v12 }
 0x574   :  { %7942 = vpow2.f32 %v5868_v18 }
 0x575   :  { %7944 = vpow2.f32 %v5869_v22 }
 0x576   :  { %7946 = vtanh.f32 %v7694_v2 }
 0x577   :  { %7948 = vpow2.f32 %v5870_v35 }
 0x57e   :  { %v7943_v36 = vpop.eup %7942 }
 0x57f   :  { %v1420_v39 = vadd.f32 1.0, %v7943_v36  ;;  %v7945_v19 = vpop.eup %7944 }
 0x580   :  { %v1421_v48 = vadd.f32 1.0, %v7945_v19  ;;  %v7947_v49 = vpop.eup %7946 }
 0x581   :  { %7950 = vrcp.f32 %v1420_v39  ;;  %v7949_v50 = vpop.eup %7948 }
 0x582   :  { %7952 = vrcp.f32 %v1421_v48  ;;  %v1422_v63 = vadd.f32 1.0, %v7949_v50 }
 0x584   :  { %7954 = vrcp.f32 %v1422_v63 }
 0x58b   :  { %v7951_v51 = vpop.eup %7950 }
 0x58c   :  { %v1432_v34 = vmul.f32 %v7951_v51, %v7947_v49  ;;  %v7953_v62 = vpop.eup %7952 }
 0x58d   :  { %v1431_v12 = vmul.f32 %v7953_v62, %v9013_v47 }
 0x58e   :  { %v7955_v11 = vpop.eup %7954 }
 0x58f   :  { %v9059_v55 = vadd.f32 %v1432_v34, %v1431_v12 }
 0x591   :  { %7956 = vtanh.f32 %v9059_v55 }
 0x59b   :  { %v7957_v18 = vpop.eup %7956 }
 0x59c   :  { %v9062_v22 = vmul.f32 %v7957_v18, %v7955_v11 }
 0x59e   :  { %1514 = vmatmul.mubr.f32.vlgmr.msra.gmra.mrb[10].mxu0 %v9062_v22  ;;  %1585 = vmatmul.mubr.f32.vlgmr.msra.gmra.mrb[10].mxu1 %v9062_v22 }
 0x59f   :  { %6368 = vmatpush1.bf16.msra.mxu0 %v8663_v14  ;;  %6400 = vmatpush1.bf16.msra.mxu1 %v8667_v17 }
 0x5a0   :  { %6370 = vmatprep.subr.bf16.mxu0 %v8676_v25  ;;  %6402 = vmatprep.subr.bf16.mxu1 %v8678_v26 }
 0x5a1   :  { %1697 = vmatprep.mubr.f32.mxu0 %v8460_v0  ;;  %1768 = vmatprep.mubr.f32.mxu1 %v8460_v0 }
 0x5a3   :  { %6372 = vmatpush1.bf16.msra.mxu0 %v8682_v29  ;;  %6404 = vmatpush1.bf16.msra.mxu1 %v8684_v30 }
 0x5a4   :  { %6374 = vmatprep.subr.bf16.mxu0 %v8695_v40  ;;  %6406 = vmatprep.subr.bf16.mxu1 %v8697_v41 }
 0x5a7   :  { %6376 = vmatpush1.bf16.msra.mxu0 %v8701_v44  ;;  %6408 = vmatpush1.bf16.msra.mxu1 %v8703_v45 }
 0x5a8   :  { %6378 = vmatprep.subr.bf16.mxu0 %v8714_v53  ;;  %6410 = vmatprep.subr.bf16.mxu1 %v8716_v54 }
 0x5ab   :  { %6380 = vmatpush1.bf16.msra.mxu0 %v8720_v57  ;;  %6412 = vmatpush1.bf16.msra.mxu1 %v8722_v58 }
 0x5ac   :  { %6382 = vmatprep.subr.bf16.mxu0 %v8733_v3  ;;  %6414 = vmatprep.subr.bf16.mxu1 %v8735_v4 }
 0x5af   :  { %6384 = vmatpush1.bf16.msra.mxu0 %v8739_v7  ;;  %6416 = vmatpush1.bf16.msra.mxu1 %v8741_v8 }
 0x5b0   :  { %6386 = vmatprep.subr.bf16.mxu0 %v8752_v20  ;;  %6418 = vmatprep.subr.bf16.mxu1 %v8754_v21 }
 0x5b3   :  { %6388 = vmatpush1.bf16.msra.mxu0 %v8758_v24  ;;  %6420 = vmatpush1.bf16.msra.mxu1 %v8760_v27 }
 0x5b4   :  { %6390 = vmatprep.subr.bf16.mxu0 %v8771_v37  ;;  %6422 = vmatprep.subr.bf16.mxu1 %v8773_v38 }
 0x5b7   :  { %6392 = vmatpush1.bf16.msra.mxu0 %v8777_v43  ;;  %6424 = vmatpush1.bf16.msra.mxu1 %v8779_v46 }
 0x5b8   :  { %6394 = vmatprep.subr.bf16.mxu0 %v8790_v56  ;;  %6426 = vmatprep.subr.bf16.mxu1 %v8792_v59 }
 0x5bb   :  { %6396 = vmatpush1.bf16.msra.mxu0 %v8796_v60  ;;  %6428 = vmatpush1.bf16.msra.mxu1 %v8798_v61 }
 0x5bc   :  { %6430 = vmatprep.subr.bf16.mxu0 %v8657_v9  ;;  %6462 = vmatprep.subr.bf16.mxu1 %v8661_v13 }
 0x671   :  { %v1515_v47 = vpop.f32.mrb[10].mxu0  ;;  %v1586_v23 = vpop.f32.mrb[10].mxu1 }
 0x672   :  { %v7679_v2 = vadd.f32 %v1515_v47, %v8856_v6  ;;  %v1517_v35 = vpop.f32.mrb[11].mxu0  ;;  %v1588_v36 = vpop.f32.mrb[11].mxu1  ;;  %v7695_v49 = vadd.f32 %v1586_v23, %v8868_v32 }
 0x673   :  { %v7680_v39 = vadd.f32 %v1517_v35, %v8859_v10  ;;  %v7696_v50 = vadd.f32 %v1588_v36, %v8871_v33 }
 0x674   :  { %v5871_v19 = vmul.f32 -1.442695, %v7679_v2  ;;  %v5873_v51 = vmul.f32 -1.442695, %v7695_v49  ;;  %v2001_v49 = vld [vmem:[#allocation8 + $0x30] sm:$0xff] }
 0x675   :  { %v5872_v48 = vmul.f32 -1.442695, %v7680_v39 }
 0x676   :  { %7958 = vpow2.f32 %v5871_v19 }
 0x677   :  { %7960 = vpow2.f32 %v5872_v48  ;;  %v1997_v48 = vld [vmem:[#allocation8 + $0x10] sm:$0xff] }
 0x678   :  { %7962 = vtanh.f32 %v7696_v50  ;;  %v2004_v50 = vld [vmem:[#allocation8 + $0x48] sm:$0xff] }
 0x679   :  { %7964 = vpow2.f32 %v5873_v51  ;;  %v2008_v51 = vld [vmem:[#allocation8 + $0x68] sm:$0xff] }
 0x680   :  { %v7959_v9 = vpop.eup %7958 }
 0x681   :  { %v1604_v34 = vadd.f32 1.0, %v7959_v9  ;;  %v7961_v13 = vpop.eup %7960  ;;  %v2006_v9 = vld [vmem:[#allocation8 + $0x58] sm:$0xff] }
 0x682   :  { %v1605_v62 = vadd.f32 1.0, %v7961_v13  ;;  %v7963_v63 = vpop.eup %7962 }
 0x683   :  { %7966 = vrcp.f32 %v1604_v34  ;;  %v7965_v12 = vpop.eup %7964  ;;  %v2010_v34 = vld [vmem:[#allocation8 + $0x78] sm:$0xff] }
 0x684   :  { %7968 = vrcp.f32 %v1605_v62  ;;  %v1606_v2 = vadd.f32 1.0, %v7965_v12  ;;  %v6527_v12 = vpack.c.bf16 %v2001_v49, %v1997_v48  ;;  %v2031_v48 = vld [vmem:[#allocation8 + $0x120] sm:$0xff] }
 0x686   :  { %7970 = vrcp.f32 %v1606_v2  ;;  %v6497_v2 = vpack.c.bf16 %v2008_v51, %v2004_v50  ;;  %v2029_v51 = vld [vmem:[#allocation8 + $0x110] sm:$0xff] }
 0x68d   :  { %v7967_v11 = vpop.eup %7966 }
 0x68e   :  { %v1616_v18 = vmul.f32 %v7967_v11, %v7963_v63  ;;  %v7969_v47 = vpop.eup %7968  ;;  %v2003_v11 = vld [vmem:[#allocation8 + $0x40] sm:$0xff] }
 0x68f   :  { %v1615_v35 = vmul.f32 %v7969_v47, %v9059_v55  ;;  %v1999_v55 = vld [vmem:[#allocation8 + $0x20] sm:$0xff] }
 0x690   :  { %v7971_v36 = vpop.eup %7970 }
 0x691   :  { %v9105_v23 = vadd.f32 %v1616_v18, %v1615_v35  ;;  %v2007_v18 = vld [vmem:[#allocation8 + $0x60] sm:$0xff]  ;;  %v6529_v35 = vpack.c.bf16 %v2010_v34, %v2006_v9  ;;  %v2033_v9 = vld [vmem:[#allocation8 + $0x130] sm:$0xff]  ;;  %v2036_v34 = vld [vmem:[#allocation8 + $0x148] sm:$0xff] }
 0x693   :  { %7972 = vtanh.f32 %v9105_v23 }
 0x69d   :  { %v7973_v39 = vpop.eup %7972 }
 0x69e   :  { %v9108_v19 = vmul.f32 %v7973_v39, %v7971_v36  ;;  %v2009_v36 = vld [vmem:[#allocation8 + $0x70] sm:$0xff]  ;;  %v2012_v39 = vld [vmem:[#allocation8 + $0x88] sm:$0xff] }
 0x6a0   :  { %1698 = vmatmul.mubr.f32.vlgmr.msra.gmra.mrb[12].mxu0 %v9108_v19  ;;  %1769 = vmatmul.mubr.f32.vlgmr.msra.gmra.mrb[12].mxu1 %v9108_v19 }
 0x6a1   :  { %6432 = vmatpush1.bf16.msra.mxu0 %v8663_v14  ;;  %6464 = vmatpush1.bf16.msra.mxu1 %v8667_v17  ;;  %v1996_v14 = vld [vmem:[#allocation8 + $0x8] sm:$0xff] }
 0x6a2   :  { %6434 = vmatprep.subr.bf16.mxu0 %v8676_v25  ;;  %6466 = vmatprep.subr.bf16.mxu1 %v8678_v26  ;;  %v2000_v17 = vld [vmem:[#allocation8 + $0x28] sm:$0xff]  ;;  %v1998_v25 = vld [vmem:[#allocation8 + $0x18] sm:$0xff] }
 0x6a3   :  { %1881 = vmatprep.mubr.f32.mxu0 %v8460_v0  ;;  %1952 = vmatprep.mubr.f32.mxu1 %v8460_v0  ;;  %v6493_v26 = vpack.c.bf16 %v2000_v17, %v1996_v14  ;;  %v2016_v14 = vld [vmem:[#allocation8 + $0xa8] sm:$0xff]  ;;  %v2014_v17 = vld [vmem:[#allocation8 + $0x98] sm:$0xff] }
 0x6a5   :  { %6436 = vmatpush1.bf16.msra.mxu0 %v8682_v29  ;;  %6468 = vmatpush1.bf16.msra.mxu1 %v8684_v30  ;;  %v2002_v29 = vld [vmem:[#allocation8 + $0x38] sm:$0xff] }
 0x6a6   :  { %6438 = vmatprep.subr.bf16.mxu0 %v8695_v40  ;;  %6470 = vmatprep.subr.bf16.mxu1 %v8697_v41  ;;  %v6525_v30 = vpack.c.bf16 %v2002_v29, %v1998_v25  ;;  %v2018_v25 = vld [vmem:[#allocation8 + $0xb8] sm:$0xff] }
 0x6a9   :  { %6440 = vmatpush1.bf16.msra.mxu0 %v8701_v44  ;;  %6472 = vmatpush1.bf16.msra.mxu1 %v8703_v45 }
 0x6aa   :  { %6442 = vmatprep.subr.bf16.mxu0 %v8714_v53  ;;  %6474 = vmatprep.subr.bf16.mxu1 %v8716_v54 }
 0x6ad   :  { %6444 = vmatpush1.bf16.msra.mxu0 %v8720_v57  ;;  %6476 = vmatpush1.bf16.msra.mxu1 %v8722_v58 }
 0x6ae   :  { %6446 = vmatprep.subr.bf16.mxu0 %v8733_v3  ;;  %6478 = vmatprep.subr.bf16.mxu1 %v8735_v4 }
 0x6b1   :  { %6448 = vmatpush1.bf16.msra.mxu0 %v8739_v7  ;;  %6480 = vmatpush1.bf16.msra.mxu1 %v8741_v8 }
 0x6b2   :  { %6450 = vmatprep.subr.bf16.mxu0 %v8752_v20  ;;  %6482 = vmatprep.subr.bf16.mxu1 %v8754_v21 }
 0x6b5   :  { %6452 = vmatpush1.bf16.msra.mxu0 %v8758_v24  ;;  %6484 = vmatpush1.bf16.msra.mxu1 %v8760_v27 }
 0x6b6   :  { %6454 = vmatprep.subr.bf16.mxu0 %v8771_v37  ;;  %6486 = vmatprep.subr.bf16.mxu1 %v8773_v38 }
 0x6b9   :  { %6456 = vmatpush1.bf16.msra.mxu0 %v8777_v43  ;;  %6488 = vmatpush1.bf16.msra.mxu1 %v8779_v46 }
 0x6ba   :  { %6458 = vmatprep.subr.bf16.mxu0 %v8790_v56  ;;  %6490 = vmatprep.subr.bf16.mxu1 %v8792_v59 }
 0x6bd   :  { %6460 = vmatpush1.bf16.msra.mxu0 %v8796_v60  ;;  %6492 = vmatpush1.bf16.msra.mxu1 %v8798_v61  ;;  %v1995_v61 = vld [vmem:[#allocation8] sm:$0xff] }
 0x6be   :  { %6494 = vmatprep.subr.bf16.mxu0 %v6493_v26  ;;  %6526 = vmatprep.subr.bf16.mxu1 %v6525_v30  ;;  %v6495_v63 = vpack.c.bf16 %v1999_v55, %v1995_v61  ;;  %v6499_v26 = vpack.c.bf16 %v2007_v18, %v2003_v11  ;;  %v2011_v30 = vld [vmem:[#allocation8 + $0x80] sm:$0xff]  ;;  %v6543_v11 = vpack.c.bf16 %v2033_v9, %v2029_v51  ;;  %v2070_v51 = vld [vmem:[#allocation10 + $0x58] sm:$0xff] }
 0x6bf   :  { %v2027_v55 = vld [vmem:[#allocation8 + $0x100] sm:$0xff] }
 0x6c0   :  { %v2035_v18 = vld [vmem:[#allocation8 + $0x140] sm:$0xff] }
 0x773   :  { %v1699_v40 = vpop.f32.mrb[12].mxu0  ;;  %v1770_v41 = vpop.f32.mrb[12].mxu1 }
 0x774   :  { %v7681_v44 = vadd.f32 %v1699_v40, %v8856_v6  ;;  %v1701_v45 = vpop.f32.mrb[13].mxu0  ;;  %v1772_v53 = vpop.f32.mrb[13].mxu1  ;;  %v7697_v3 = vadd.f32 %v1770_v41, %v8868_v32  ;;  %v2015_v40 = vld [vmem:[#allocation8 + $0xa0] sm:$0xff]  ;;  %v6501_v41 = vpack.c.bf16 %v2016_v14, %v2012_v39  ;;  %v2041_v39 = vld [vmem:[#allocation8 + $0x170] sm:$0xff]  ;;  %v2044_v14 = vld [vmem:[#allocation8 + $0x188] sm:$0xff] }
 0x775   :  { %v7682_v54 = vadd.f32 %v1701_v45, %v8859_v10  ;;  %v7698_v4 = vadd.f32 %v1772_v53, %v8871_v33  ;;  %v2013_v45 = vld [vmem:[#allocation8 + $0x90] sm:$0xff] }
 0x776   :  { %v5874_v57 = vmul.f32 -1.442695, %v7681_v44  ;;  %v5876_v7 = vmul.f32 -1.442695, %v7697_v3  ;;  %v6533_v44 = vpack.c.bf16 %v2018_v25, %v2014_v17  ;;  %v2017_v53 = vld [vmem:[#allocation8 + $0xb0] sm:$0xff]  ;;  %v2026_v3 = vld [vmem:[#allocation8 + $0xf8] sm:$0xff] }
 0x777   :  { %v5875_v58 = vmul.f32 -1.442695, %v7682_v54  ;;  %v2020_v54 = vld [vmem:[#allocation8 + $0xc8] sm:$0xff]  ;;  %v2046_v25 = vld [vmem:[#allocation8 + $0x198] sm:$0xff] }
 0x778   :  { %7974 = vpow2.f32 %v5874_v57  ;;  %v2024_v57 = vld [vmem:[#allocation8 + $0xe8] sm:$0xff] }
 0x779   :  { %7976 = vpow2.f32 %v5875_v58  ;;  %v2022_v58 = vld [vmem:[#allocation8 + $0xd8] sm:$0xff]  ;;  %v2048_v17 = vld [vmem:[#allocation8 + $0x1a8] sm:$0xff] }
 0x77a   :  { %7978 = vtanh.f32 %v7698_v4  ;;  %v6503_v4 = vpack.c.bf16 %v2015_v40, %v2011_v30  ;;  %v2043_v40 = vld [vmem:[#allocation8 + $0x180] sm:$0xff] }
 0x77b   :  { %7980 = vpow2.f32 %v5876_v7  ;;  %v6535_v7 = vpack.c.bf16 %v2017_v53, %v2013_v45  ;;  %v2045_v53 = vld [vmem:[#allocation8 + $0x190] sm:$0xff] }
 0x782   :  { %v7975_v8 = vpop.eup %7974 }
 0x783   :  { %v1788_v20 = vadd.f32 1.0, %v7975_v8  ;;  %v7977_v21 = vpop.eup %7976  ;;  %v2019_v8 = vld [vmem:[#allocation8 + $0xc0] sm:$0xff] }
 0x784   :  { %v1789_v24 = vadd.f32 1.0, %v7977_v21  ;;  %v7979_v27 = vpop.eup %7978  ;;  %v6505_v21 = vpack.c.bf16 %v2024_v57, %v2020_v54  ;;  %v2049_v54 = vld [vmem:[#allocation8 + $0x1b0] sm:$0xff]  ;;  %v2052_v57 = vld [vmem:[#allocation8 + $0x1c8] sm:$0xff] }
 0x785   :  { %7982 = vrcp.f32 %v1788_v20  ;;  %v7981_v37 = vpop.eup %7980  ;;  %v2023_v20 = vld [vmem:[#allocation8 + $0xe0] sm:$0xff] }
 0x786   :  { %7984 = vrcp.f32 %v1789_v24  ;;  %v1790_v56 = vadd.f32 1.0, %v7981_v37  ;;  %v6537_v24 = vpack.c.bf16 %v2026_v3, %v2022_v58  ;;  %v2025_v37 = vld [vmem:[#allocation8 + $0xf0] sm:$0xff]  ;;  %v2056_v58 = vld [vmem:[#allocation8 + $0x1e8] sm:$0xff]  ;;  %v2054_v3 = vld [vmem:[#allocation8 + $0x1d8] sm:$0xff] }
 0x788   :  { %7986 = vrcp.f32 %v1790_v56  ;;  %v2034_v56 = vld [vmem:[#allocation8 + $0x138] sm:$0xff] }
 0x78f   :  { %v7983_v38 = vpop.eup %7982 }
 0x790   :  { %v1800_v43 = vmul.f32 %v7983_v38, %v7979_v27  ;;  %v7985_v46 = vpop.eup %7984  ;;  %v2021_v27 = vld [vmem:[#allocation8 + $0xd0] sm:$0xff]  ;;  %v2028_v38 = vld [vmem:[#allocation8 + $0x108] sm:$0xff] }
 0x791   :  { %v1799_v59 = vmul.f32 %v7985_v46, %v9105_v23  ;;  %v2005_v23 = vld [vmem:[#allocation8 + $0x50] sm:$0xff]  ;;  %v2030_v46 = vld [vmem:[#allocation8 + $0x118] sm:$0xff]  ;;  %v6539_v61 = vpack.c.bf16 %v2025_v37, %v2021_v27  ;;  %v2055_v27 = vld [vmem:[#allocation8 + $0x1e0] sm:$0xff] }
 0x792   :  { %v7987_v13 = vpop.eup %7986  ;;  %v6531_v29 = vpack.c.bf16 %v2009_v36, %v2005_v23  ;;  %v6541_v50 = vpack.c.bf16 %v2034_v56, %v2030_v46  ;;  %v2037_v36 = vld [vmem:[#allocation8 + $0x150] sm:$0xff]  ;;  %v2059_v56 = vld [vmem:[#allocation10] sm:$0xff] }
 0x793   :  { %v9149_v60 = vadd.f32 %v1800_v43, %v1799_v59  ;;  %v2032_v43 = vld [vmem:[#allocation8 + $0x128] sm:$0xff]  ;;  %v6507_v59 = vpack.c.bf16 %v2023_v20, %v2019_v8  ;;  %v6547_v30 = vpack.c.bf16 %v2041_v39, %v2037_v36  ;;  %v6551_v8 = vpack.c.bf16 %v2049_v54, %v2045_v53  ;;  %v2051_v20 = vld [vmem:[#allocation8 + $0x1c0] sm:$0xff]  ;;  %v2053_v37 = vld [vmem:[#allocation8 + $0x1d0] sm:$0xff] }
 0x794   :  { %v6509_v49 = vpack.c.bf16 %v2032_v43, %v2028_v38  ;;  %v2057_v38 = vld [vmem:[#allocation8 + $0x1f0] sm:$0xff]  ;;  %v6523_v43 = vpack.c.bf16 %v2055_v27, %v2051_v20  ;;  %v2078_v36 = vld [vmem:[#allocation10 + $0x98] sm:$0xff]  ;;  %v2096_v27 = vld [vmem:[#allocation10 + $0x128] sm:$0xff] }
 0x795   :  { %7988 = vtanh.f32 %v9149_v60  ;;  %v6555_v46 = vpack.c.bf16 %v2057_v38, %v2053_v37  ;;  %v2086_v53 = vld [vmem:[#allocation10 + $0xd8] sm:$0xff]  ;;  %v2089_v20 = vld [vmem:[#allocation10 + $0xf0] sm:$0xff] }
 0x796   :  { %v2094_v37 = vld [vmem:[#allocation10 + $0x118] sm:$0xff] }
 0x79f   :  { %v7989_v62 = vpop.eup %7988 }
 0x7a0   :  { %v9152_v47 = vmul.f32 %v7989_v62, %v7987_v13  ;;  %v2040_v13 = vld [vmem:[#allocation8 + $0x168] sm:$0xff]  ;;  %v2038_v62 = vld [vmem:[#allocation8 + $0x158] sm:$0xff] }
 0x7a2   :  { %1882 = vmatmul.mubr.f32.vlgmr.msra.gmra.mrb[14].mxu0 %v9152_v47  ;;  %1953 = vmatmul.mubr.f32.vlgmr.msra.gmra.mrb[14].mxu1 %v9152_v47 }
 0x7a3   :  { %6496 = vmatpush1.bf16.msra.mxu0 %v6495_v63  ;;  %6528 = vmatpush1.bf16.msra.mxu1 %v6527_v12  ;;  %v2042_v63 = vld [vmem:[#allocation8 + $0x178] sm:$0xff]  ;;  %v6511_v12 = vpack.c.bf16 %v2031_v48, %v2027_v55  ;;  %v2061_v55 = vld [vmem:[#allocation10 + $0x10] sm:$0xff] }
 0x7a4   :  { %6498 = vmatprep.subr.bf16.mxu0 %v6497_v2  ;;  %6530 = vmatprep.subr.bf16.mxu1 %v6529_v35  ;;  %v2039_v2 = vld [vmem:[#allocation8 + $0x160] sm:$0xff]  ;;  %v6513_v35 = vpack.c.bf16 %v2040_v13, %v2036_v34  ;;  %v6545_v23 = vpack.c.bf16 %v2042_v63, %v2038_v62  ;;  %v2065_v48 = vld [vmem:[#allocation10 + $0x30] sm:$0xff]  ;;  %v2074_v34 = vld [vmem:[#allocation10 + $0x78] sm:$0xff] }
 0x7a5   :  { %2217 = vmatprep.mubr.f32.mxu0 %v8460_v0  ;;  %2330 = vmatprep.mubr.f32.mxu1 %v8460_v0  ;;  %v2067_v13 = vld [vmem:[#allocation10 + $0x40] sm:$0xff]  ;;  %v9200_v63 = vpack.c.bf16 %v2074_v34, %v2070_v51  ;;  %v2106_v51 = vld [vmem:[#allocation10 + $0x178] sm:$0xff] }
 0x7a6   :  { %v2071_v62 = vld [vmem:[#allocation10 + $0x60] sm:$0xff] }
 0x7a7   :  { %6500 = vmatpush1.bf16.msra.mxu0 %v6499_v26  ;;  %6532 = vmatpush1.bf16.msra.mxu1 %v6531_v29  ;;  %v2050_v26 = vld [vmem:[#allocation8 + $0x1b8] sm:$0xff]  ;;  %v6515_v29 = vpack.c.bf16 %v2039_v2, %v2035_v18  ;;  %v2073_v18 = vld [vmem:[#allocation10 + $0x70] sm:$0xff]  ;;  %v2099_v34 = vld [vmem:[#allocation10 + $0x140] sm:$0xff] }
 0x7a8   :  { %6502 = vmatprep.subr.bf16.mxu0 %v6501_v41  ;;  %6534 = vmatprep.subr.bf16.mxu1 %v6533_v44  ;;  %v2047_v41 = vld [vmem:[#allocation8 + $0x1a0] sm:$0xff]  ;;  %v6517_v44 = vpack.c.bf16 %v2048_v17, %v2044_v14  ;;  %v6549_v45 = vpack.c.bf16 %v2050_v26, %v2046_v25  ;;  %v2082_v14 = vld [vmem:[#allocation10 + $0xb8] sm:$0xff] }
 0x7a9   :  { %v2075_v17 = vld [vmem:[#allocation10 + $0x80] sm:$0xff]  ;;  %v9212_v26 = vpack.c.bf16 %v2082_v14, %v2078_v36  ;;  %v2108_v36 = vld [vmem:[#allocation10 + $0x188] sm:$0xff] }
 0x7aa   :  { %v2079_v25 = vld [vmem:[#allocation10 + $0xa0] sm:$0xff]  ;;  %v2112_v14 = vld [vmem:[#allocation10 + $0x1a8] sm:$0xff] }
 0x7ab   :  { %6504 = vmatpush1.bf16.msra.mxu0 %v6503_v4  ;;  %6536 = vmatpush1.bf16.msra.mxu1 %v6535_v7  ;;  %v2058_v4 = vld [vmem:[#allocation8 + $0x1f8] sm:$0xff]  ;;  %v6519_v7 = vpack.c.bf16 %v2047_v41, %v2043_v40  ;;  %v2081_v40 = vld [vmem:[#allocation10 + $0xb0] sm:$0xff] }
 0x7ac   :  { %6506 = vmatprep.subr.bf16.mxu0 %v6505_v21  ;;  %6538 = vmatprep.subr.bf16.mxu1 %v6537_v24  ;;  %v6521_v21 = vpack.c.bf16 %v2056_v58, %v2052_v57  ;;  %v6553_v24 = vpack.c.bf16 %v2058_v4, %v2054_v3  ;;  %v2090_v57 = vld [vmem:[#allocation10 + $0xf8] sm:$0xff]  ;;  %v2083_v58 = vld [vmem:[#allocation10 + $0xc0] sm:$0xff] }
 0x7ad   :  { %v2087_v3 = vld [vmem:[#allocation10 + $0xe0] sm:$0xff]  ;;  %v9224_v4 = vpack.c.bf16 %v2090_v57, %v2086_v53  ;;  %v2109_v57 = vld [vmem:[#allocation10 + $0x190] sm:$0xff] }
 0x7af   :  { %6508 = vmatpush1.bf16.msra.mxu0 %v6507_v59  ;;  %6540 = vmatpush1.bf16.msra.mxu1 %v6539_v61 }
 0x7b0   :  { %6510 = vmatprep.subr.bf16.mxu0 %v6509_v49  ;;  %6542 = vmatprep.subr.bf16.mxu1 %v6541_v50  ;;  %v2068_v49 = vld [vmem:[#allocation10 + $0x48] sm:$0xff] }
 0x7b1   :  { %v2072_v50 = vld [vmem:[#allocation10 + $0x68] sm:$0xff] }
 0x7b2   :  { %v9198_v9 = vpack.c.bf16 %v2072_v50, %v2068_v49  ;;  %v2102_v49 = vld [vmem:[#allocation10 + $0x158] sm:$0xff] }
 0x7b3   :  { %6512 = vmatpush1.bf16.msra.mxu0 %v6511_v12  ;;  %6544 = vmatpush1.bf16.msra.mxu1 %v6543_v11  ;;  %v9202_v12 = vpack.c.bf16 %v2071_v62, %v2067_v13  ;;  %v2069_v11 = vld [vmem:[#allocation10 + $0x50] sm:$0xff]  ;;  %v2103_v13 = vld [vmem:[#allocation10 + $0x160] sm:$0xff]  ;;  %v9248_v62 = vpack.c.bf16 %v2106_v51, %v2102_v49 }
 0x7b4   :  { %6514 = vmatprep.subr.bf16.mxu0 %v6513_v35  ;;  %6546 = vmatprep.subr.bf16.mxu1 %v6545_v23  ;;  %v9205_v2 = vpack.c.bf16 %v2073_v18, %v2069_v11  ;;  %v2076_v35 = vld [vmem:[#allocation10 + $0x88] sm:$0xff]  ;;  %v9250_v11 = vpack.c.bf16 %v2103_v13, %v2099_v34  ;;  %v2101_v18 = vld [vmem:[#allocation10 + $0x150] sm:$0xff] }
 0x7b5   :  { %v2080_v23 = vld [vmem:[#allocation10 + $0xa8] sm:$0xff] }
 0x7b6   :  { %v9210_v39 = vpack.c.bf16 %v2080_v23, %v2076_v35  ;;  %v2105_v35 = vld [vmem:[#allocation10 + $0x170] sm:$0xff] }
 0x7b7   :  { %6516 = vmatpush1.bf16.msra.mxu0 %v6515_v29  ;;  %6548 = vmatpush1.bf16.msra.mxu1 %v6547_v30  ;;  %v9214_v29 = vpack.c.bf16 %v2079_v25, %v2075_v17  ;;  %v2077_v30 = vld [vmem:[#allocation10 + $0x90] sm:$0xff]  ;;  %v9253_v23 = vpack.c.bf16 %v2105_v35, %v2101_v18  ;;  %v2110_v17 = vld [vmem:[#allocation10 + $0x198] sm:$0xff]  ;;  %v9258_v25 = vpack.c.bf16 %v2112_v14, %v2108_v36 }
 0x7b8   :  { %6518 = vmatprep.subr.bf16.mxu0 %v6517_v44  ;;  %6550 = vmatprep.subr.bf16.mxu1 %v6549_v45  ;;  %v9217_v41 = vpack.c.bf16 %v2081_v40, %v2077_v30  ;;  %v2084_v44 = vld [vmem:[#allocation10 + $0xc8] sm:$0xff]  ;;  %v2114_v30 = vld [vmem:[#allocation10 + $0x1b8] sm:$0xff]  ;;  %v2107_v40 = vld [vmem:[#allocation10 + $0x180] sm:$0xff] }
 0x7b9   :  { %v2088_v45 = vld [vmem:[#allocation10 + $0xe8] sm:$0xff] }
 0x7ba   :  { %v9222_v54 = vpack.c.bf16 %v2088_v45, %v2084_v44  ;;  %v2111_v44 = vld [vmem:[#allocation10 + $0x1a0] sm:$0xff]  ;;  %v9260_v45 = vpack.c.bf16 %v2114_v30, %v2110_v17 }
 0x7bb   :  { %6520 = vmatpush1.bf16.msra.mxu0 %v6519_v7  ;;  %6552 = vmatpush1.bf16.msra.mxu1 %v6551_v8  ;;  %v9226_v7 = vpack.c.bf16 %v2087_v3, %v2083_v58  ;;  %v2085_v8 = vld [vmem:[#allocation10 + $0xd0] sm:$0xff]  ;;  %v9262_v53 = vpack.c.bf16 %v2111_v44, %v2107_v40 }
 0x7bc   :  { %6522 = vmatprep.subr.bf16.mxu0 %v6521_v21  ;;  %6554 = vmatprep.subr.bf16.mxu1 %v6553_v24  ;;  %v9229_v21 = vpack.c.bf16 %v2089_v20, %v2085_v8  ;;  %v2092_v24 = vld [vmem:[#allocation10 + $0x108] sm:$0xff]  ;;  %v2113_v58 = vld [vmem:[#allocation10 + $0x1b0] sm:$0xff] }
 0x7bd   :  { %v9234_v38 = vpack.c.bf16 %v2096_v27, %v2092_v24  ;;  %v9265_v3 = vpack.c.bf16 %v2113_v58, %v2109_v57  ;;  %v2116_v8 = vld [vmem:[#allocation10 + $0x1c8] sm:$0xff]  ;;  %v2118_v24 = vld [vmem:[#allocation10 + $0x1d8] sm:$0xff] }
 0x7be   :  { %v2120_v20 = vld [vmem:[#allocation10 + $0x1e8] sm:$0xff] }
 0x7bf   :  { %6524 = vmatpush1.bf16.msra.mxu0 %v6523_v43  ;;  %6556 = vmatpush1.bf16.msra.mxu1 %v6555_v46  ;;  %v2098_v43 = vld [vmem:[#allocation10 + $0x138] sm:$0xff]  ;;  %v2091_v46 = vld [vmem:[#allocation10 + $0x100] sm:$0xff]  ;;  %v9270_v27 = vpack.c.bf16 %v2120_v20, %v2116_v8 }
 0x7c2   :  { %2218 = vmatmul.mubr.f32.vlgmr.msra.gmra.mrb[16].mxu0 %v8878_v15  ;;  %2331 = vmatmul.mubr.f32.vlgmr.msra.gmra.mrb[16].mxu1 %v8878_v15  ;;  %v2060_v15 = vld [vmem:[#allocation10 + $0x8] sm:$0xff] }
 0x7c3   :  { %2223 = vmatprep.mubr.f32.mxu0 %v8460_v0  ;;  %2336 = vmatprep.mubr.f32.mxu1 %v8460_v0 }
 0x7c6   :  { %2224 = vmatmul.mubr.f32.gmra.mrb[18].mxu0 %v8924_v28  ;;  %2337 = vmatmul.mubr.f32.gmra.mrb[18].mxu1 %v8924_v28  ;;  %v2064_v28 = vld [vmem:[#allocation10 + $0x28] sm:$0xff] }
 0x7c7   :  { %2229 = vmatprep.mubr.f32.mxu0 %v8460_v0  ;;  %2342 = vmatprep.mubr.f32.mxu1 %v8460_v0 }
 0x7ca   :  { %2230 = vmatmul.mubr.f32.gmra.mrb[20].mxu0 %v8970_v42  ;;  %2343 = vmatmul.mubr.f32.gmra.mrb[20].mxu1 %v8970_v42  ;;  %v2062_v42 = vld [vmem:[#allocation10 + $0x18] sm:$0xff] }
 0x7cb   :  { %2235 = vmatprep.mubr.f32.mxu0 %v8460_v0  ;;  %2348 = vmatprep.mubr.f32.mxu1 %v8460_v0 }
 0x7ce   :  { %2236 = vmatmul.mubr.f32.gmra.mrb[22].mxu0 %v9016_v52  ;;  %2349 = vmatmul.mubr.f32.gmra.mrb[22].mxu1 %v9016_v52  ;;  %v9186_v52 = vpack.c.bf16 %v2064_v28, %v2060_v15  ;;  %v2095_v15 = vld [vmem:[#allocation10 + $0x120] sm:$0xff]  ;;  %v9236_v28 = vpack.c.bf16 %v2098_v43, %v2094_v37  ;;  %v2122_v37 = vld [vmem:[#allocation10 + $0x1f8] sm:$0xff] }
 0x7cf   :  { %2241 = vmatprep.mubr.f32.mxu0 %v8460_v0  ;;  %2354 = vmatprep.mubr.f32.mxu1 %v8460_v0  ;;  %v2115_v43 = vld [vmem:[#allocation10 + $0x1c0] sm:$0xff] }
 0x7d0   :  { %6558 = vmatprep.subr.bf16.mxu0 %v9186_v52 }
 0x7d2   :  { %2242 = vmatmul.mubr.f32.gmra.mrb[24].mxu0 %v9062_v22  ;;  %2355 = vmatmul.mubr.f32.gmra.mrb[24].mxu1 %v9062_v22  ;;  %v2066_v22 = vld [vmem:[#allocation10 + $0x38] sm:$0xff] }
 0x7d3   :  { %2247 = vmatprep.mubr.f32.mxu0 %v8460_v0  ;;  %2360 = vmatprep.mubr.f32.mxu1 %v8460_v0  ;;  %v9188_v59 = vpack.c.bf16 %v2066_v22, %v2062_v42  ;;  %v9238_v42 = vpack.c.bf16 %v2095_v15, %v2091_v46  ;;  %v2093_v22 = vld [vmem:[#allocation10 + $0x110] sm:$0xff]  ;;  %v2119_v46 = vld [vmem:[#allocation10 + $0x1e0] sm:$0xff]  ;;  %v9272_v15 = vpack.c.bf16 %v2122_v37, %v2118_v24 }
 0x7d5   :  { %6590 = vmatprep.subr.bf16.mxu1 %v9188_v59 }
 0x7d6   :  { %2248 = vmatmul.mubr.f32.gmra.mrb[26].mxu0 %v9108_v19  ;;  %2361 = vmatmul.mubr.f32.gmra.mrb[26].mxu1 %v9108_v19  ;;  %v2063_v19 = vld [vmem:[#allocation10 + $0x20] sm:$0xff] }
 0x7d7   :  { %2253 = vmatprep.mubr.f32.mxu0 %v8460_v0  ;;  %2366 = vmatprep.mubr.f32.mxu1 %v8460_v0  ;;  %v9190_v61 = vpack.c.bf16 %v2063_v19, %v2059_v56  ;;  %v2097_v56 = vld [vmem:[#allocation10 + $0x130] sm:$0xff] }
 0x7d8   :  { %v9241_v19 = vpack.c.bf16 %v2097_v56, %v2093_v22  ;;  %v9274_v22 = vpack.c.bf16 %v2119_v46, %v2115_v43  ;;  %v2117_v56 = vld [vmem:[#allocation10 + $0x1d0] sm:$0xff] }
 0x7d9   :  { %6560 = vmatpush1.bf16.msra.mxu0 %v9190_v61 }
 0x7da   :  { %2254 = vmatmul.mubr.f32.gmra.mrb[28].mxu0 %v9152_v47  ;;  %2367 = vmatmul.mubr.f32.gmra.mrb[28].mxu1 %v9152_v47  ;;  %v9193_v47 = vpack.c.bf16 %v2065_v48, %v2061_v55  ;;  %v2100_v55 = vld [vmem:[#allocation10 + $0x148] sm:$0xff] }
 0x7db   :  { %2259 = vmatprep.mubr.f32.mxu0 %v8460_v0  ;;  %2372 = vmatprep.mubr.f32.mxu1 %v8460_v0  ;;  %v2104_v48 = vld [vmem:[#allocation10 + $0x168] sm:$0xff] }
 0x7dc   :  { %6592 = vmatpush1.bf16.msra.mxu1 %v9193_v47  ;;  %6562 = vmatprep.subr.bf16.mxu0 %v9198_v9  ;;  %v9246_v50 = vpack.c.bf16 %v2104_v48, %v2100_v55  ;;  %v2121_v55 = vld [vmem:[#allocation10 + $0x1f0] sm:$0xff] }
 0x7dd   :  { %6594 = vmatprep.subr.bf16.mxu1 %v9200_v63  ;;  %6564 = vmatpush1.bf16.msra.mxu0 %v9202_v12  ;;  %v9277_v48 = vpack.c.bf16 %v2121_v55, %v2117_v56 }
 0x7de   :  { %6566 = vmatprep.subr.bf16.mxu0 %v9210_v39 }
 0x7e0   :  { %6596 = vmatpush1.bf16.msra.mxu1 %v9205_v2 }
 0x7e1   :  { %6598 = vmatprep.subr.bf16.mxu1 %v9212_v26  ;;  %6568 = vmatpush1.bf16.msra.mxu0 %v9214_v29 }
 0x7e2   :  { %6570 = vmatprep.subr.bf16.mxu0 %v9222_v54 }
 0x7e4   :  { %6600 = vmatpush1.bf16.msra.mxu1 %v9217_v41 }
 0x7e5   :  { %6602 = vmatprep.subr.bf16.mxu1 %v9224_v4  ;;  %6572 = vmatpush1.bf16.msra.mxu0 %v9226_v7 }
 0x7e6   :  { %6574 = vmatprep.subr.bf16.mxu0 %v9234_v38 }
 0x7e8   :  { %6604 = vmatpush1.bf16.msra.mxu1 %v9229_v21 }
 0x7e9   :  { %6606 = vmatprep.subr.bf16.mxu1 %v9236_v28  ;;  %6576 = vmatpush1.bf16.msra.mxu0 %v9238_v42 }
 0x7ea   :  { %6578 = vmatprep.subr.bf16.mxu0 %v9246_v50 }
 0x7ec   :  { %6608 = vmatpush1.bf16.msra.mxu1 %v9241_v19 }
 0x7ed   :  { %6610 = vmatprep.subr.bf16.mxu1 %v9248_v62  ;;  %6580 = vmatpush1.bf16.msra.mxu0 %v9250_v11 }
 0x7ee   :  { %6582 = vmatprep.subr.bf16.mxu0 %v9258_v25 }
 0x7f0   :  { %6612 = vmatpush1.bf16.msra.mxu1 %v9253_v23 }
 0x7f1   :  { %6614 = vmatprep.subr.bf16.mxu1 %v9260_v45  ;;  %6584 = vmatpush1.bf16.msra.mxu0 %v9262_v53 }
 0x7f2   :  { %6586 = vmatprep.subr.bf16.mxu0 %v9270_v27 }
 0x7f4   :  { %6616 = vmatpush1.bf16.msra.mxu1 %v9265_v3 }
 0x7f5   :  { %6618 = vmatprep.subr.bf16.mxu1 %v9272_v15  ;;  %6588 = vmatpush1.bf16.msra.mxu0 %v9274_v22 }
 0x7f6   :  { %6622 = vmatprep.subr.bf16.mxu0 %v9186_v52 }
 0x7f8   :  { %6620 = vmatpush1.bf16.msra.mxu1 %v9277_v48 }
 0x7f9   :  { %6654 = vmatprep.subr.bf16.mxu1 %v9188_v59 }
 0x875   :  { %v1883_v49 = vpop.f32.mrb[14].mxu0  ;;  %v1954_v51 = vpop.f32.mrb[14].mxu1 }
 0x876   :  { %v7683_v34 = vadd.f32 %v1883_v49, %v8856_v6  ;;  %v1885_v13 = vpop.f32.mrb[15].mxu0  ;;  %v1956_v18 = vpop.f32.mrb[15].mxu1  ;;  %v7699_v17 = vadd.f32 %v1954_v51, %v8868_v32 }
 0x877   :  { %v7684_v35 = vadd.f32 %v1885_v13, %v8859_v10  ;;  %v7700_v30 = vadd.f32 %v1956_v18, %v8871_v33 }
 0x878   :  { %v5877_v36 = vmul.f32 -1.442695, %v7683_v34  ;;  %v5879_v40 = vmul.f32 -1.442695, %v7699_v17 }
 0x879   :  { %v5878_v14 = vmul.f32 -1.442695, %v7684_v35 }
 0x87a   :  { %7990 = vpow2.f32 %v5877_v36 }
 0x87b   :  { %7992 = vpow2.f32 %v5878_v14 }
 0x87c   :  { %7994 = vtanh.f32 %v7700_v30 }
 0x87d   :  { %7996 = vpow2.f32 %v5879_v40 }
 0x884   :  { %v7991_v44 = vpop.eup %7990 }
 0x885   :  { %v1972_v57 = vadd.f32 1.0, %v7991_v44  ;;  %v7993_v58 = vpop.eup %7992 }
 0x886   :  { %v1973_v6 = vadd.f32 1.0, %v7993_v58  ;;  %v7995_v8 = vpop.eup %7994 }
 0x887   :  { %7998 = vrcp.f32 %v1972_v57  ;;  %v7997_v20 = vpop.eup %7996 }
 0x888   :  { %8000 = vrcp.f32 %v1973_v6  ;;  %v1974_v43 = vadd.f32 1.0, %v7997_v20 }
 0x88a   :  { %8002 = vrcp.f32 %v1974_v43 }
 0x891   :  { %v7999_v10 = vpop.eup %7998 }
 0x892   :  { %v1984_v24 = vmul.f32 %v7999_v10, %v7995_v8  ;;  %v8001_v37 = vpop.eup %8000 }
 0x893   :  { %v1983_v46 = vmul.f32 %v8001_v37, %v9149_v60  ;;  %v2123_v60 = vld [vmem:[%s10112_s6] sm:$0xf] }
 0x894   :  { %v8003_v33 = vpop.eup %8002  ;;  %v9331_v49 = vrot.slane %v2123_v60, %v8848_v1  ;;  %v9334_v51 = vrot.slane %v2123_v60, %v8853_v5  ;;  %v9339_v40 = vrot.slane %v2123_v60, %v8862_v16  ;;  %v9342_v44 = vrot.slane %v2123_v60, %v8865_v31 }
 0x895   :  { %v1985_v32 = vadd.f32 %v1984_v24, %v1983_v46 }
 0x897   :  { %8004 = vtanh.f32 %v1985_v32 }
 0x8a1   :  { %v8005_v56 = vpop.eup %8004 }
 0x8a2   :  { %v1987_v55 = vmul.f32 %v8005_v56, %v8003_v33 }
 0x8a4   :  { %2260 = vmatmul.mubr.f32.gmra.mrb[30].mxu0 %v1987_v55  ;;  %2373 = vmatmul.mubr.f32.gmra.mrb[30].mxu1 %v1987_v55 }
 0x8a5   :  { %2480 = vmatprep.mubr.f32.mxu0 %v8460_v0  ;;  %2551 = vmatprep.mubr.f32.mxu1 %v8460_v0 }
 0x8a8   :  { %2481 = vmatmul.mubr.f32.vlgmr.msra.gmra.mrb[16].mxu0 %v8460_v0  ;;  %2552 = vmatmul.mubr.f32.vlgmr.msra.gmra.mrb[16].mxu1 %v8460_v0 }
 0x8a9   :  { %6624 = vmatpush1.bf16.msra.mxu0 %v9190_v61  ;;  %6656 = vmatpush1.bf16.msra.mxu1 %v9193_v47 }
 0x8aa   :  { %6626 = vmatprep.subr.bf16.mxu0 %v9198_v9  ;;  %6658 = vmatprep.subr.bf16.mxu1 %v9200_v63 }
 0x8ab   :  { %2659 = vmatprep.mubr.f32.mxu0 %v8460_v0  ;;  %2730 = vmatprep.mubr.f32.mxu1 %v8460_v0 }
 0x8ad   :  { %6628 = vmatpush1.bf16.msra.mxu0 %v9202_v12  ;;  %6660 = vmatpush1.bf16.msra.mxu1 %v9205_v2 }
 0x8ae   :  { %6630 = vmatprep.subr.bf16.mxu0 %v9210_v39  ;;  %6662 = vmatprep.subr.bf16.mxu1 %v9212_v26 }
 0x8b1   :  { %6632 = vmatpush1.bf16.msra.mxu0 %v9214_v29  ;;  %6664 = vmatpush1.bf16.msra.mxu1 %v9217_v41 }
 0x8b2   :  { %6634 = vmatprep.subr.bf16.mxu0 %v9222_v54  ;;  %6666 = vmatprep.subr.bf16.mxu1 %v9224_v4 }
 0x8b5   :  { %6636 = vmatpush1.bf16.msra.mxu0 %v9226_v7  ;;  %6668 = vmatpush1.bf16.msra.mxu1 %v9229_v21 }
 0x8b6   :  { %6638 = vmatprep.subr.bf16.mxu0 %v9234_v38  ;;  %6670 = vmatprep.subr.bf16.mxu1 %v9236_v28 }
 0x8b9   :  { %6640 = vmatpush1.bf16.msra.mxu0 %v9238_v42  ;;  %6672 = vmatpush1.bf16.msra.mxu1 %v9241_v19 }
 0x8ba   :  { %6642 = vmatprep.subr.bf16.mxu0 %v9246_v50  ;;  %6674 = vmatprep.subr.bf16.mxu1 %v9248_v62 }
 0x8bd   :  { %6644 = vmatpush1.bf16.msra.mxu0 %v9250_v11  ;;  %6676 = vmatpush1.bf16.msra.mxu1 %v9253_v23 }
 0x8be   :  { %6646 = vmatprep.subr.bf16.mxu0 %v9258_v25  ;;  %6678 = vmatprep.subr.bf16.mxu1 %v9260_v45 }
 0x8c1   :  { %6648 = vmatpush1.bf16.msra.mxu0 %v9262_v53  ;;  %6680 = vmatpush1.bf16.msra.mxu1 %v9265_v3 }
 0x8c2   :  { %6650 = vmatprep.subr.bf16.mxu0 %v9270_v27  ;;  %6682 = vmatprep.subr.bf16.mxu1 %v9272_v15 }
 0x8c5   :  { %6652 = vmatpush1.bf16.msra.mxu0 %v9274_v22  ;;  %6684 = vmatpush1.bf16.msra.mxu1 %v9277_v48 }
 0x8c6   :  { %6686 = vmatprep.subr.bf16.mxu0 %v9186_v52  ;;  %6718 = vmatprep.subr.bf16.mxu1 %v9188_v59 }
 0x97b   :  { %v2482_v34 = vpop.f32.mrb[16].mxu0  ;;  %v2553_v13 = vpop.f32.mrb[16].mxu1 }
 0x97c   :  { %v7701_v18 = vadd.f32 %v2482_v34, %v9331_v49  ;;  %v2484_v35 = vpop.f32.mrb[17].mxu0  ;;  %v2555_v36 = vpop.f32.mrb[17].mxu1  ;;  %v7717_v57 = vadd.f32 %v2553_v13, %v9339_v40 }
 0x97d   :  { %v7702_v14 = vadd.f32 %v2484_v35, %v9334_v51  ;;  %v7718_v58 = vadd.f32 %v2555_v36, %v9342_v44 }
 0x97e   :  { %v5880_v17 = vmul.f32 -1.442695, %v7701_v18  ;;  %v5882_v6 = vmul.f32 -1.442695, %v7717_v57 }
 0x97f   :  { %v5881_v30 = vmul.f32 -1.442695, %v7702_v14 }
 0x980   :  { %8006 = vpow2.f32 %v5880_v17 }
 0x981   :  { %8008 = vpow2.f32 %v5881_v30 }
 0x982   :  { %8010 = vtanh.f32 %v7718_v58 }
 0x983   :  { %8012 = vpow2.f32 %v5882_v6 }
 0x98a   :  { %v8007_v8 = vpop.eup %8006 }
 0x98b   :  { %v2571_v20 = vadd.f32 1.0, %v8007_v8  ;;  %v8009_v10 = vpop.eup %8008 }
 0x98c   :  { %v2572_v24 = vadd.f32 1.0, %v8009_v10  ;;  %v8011_v37 = vpop.eup %8010 }
 0x98d   :  { %8014 = vrcp.f32 %v2571_v20  ;;  %v8013_v43 = vpop.eup %8012 }
 0x98e   :  { %8016 = vrcp.f32 %v2572_v24  ;;  %v2573_v56 = vadd.f32 1.0, %v8013_v43 }
 0x990   :  { %8018 = vrcp.f32 %v2573_v56 }
 0x997   :  { %v8015_v46 = vpop.eup %8014 }
 0x998   :  { %v2583_v32 = vmul.f32 %v8015_v46, %v8011_v37  ;;  %v8017_v33 = vpop.eup %8016 }
 0x999   :  { %v2582_v55 = vmul.f32 0.0, %v8017_v33 }
 0x99a   :  { %v8019_v34 = vpop.eup %8018 }
 0x99b   :  { %v9346_v60 = vadd.f32 %v2583_v32, %v2582_v55 }
 0x99d   :  { %8020 = vtanh.f32 %v9346_v60 }
 0x9a7   :  { %v8021_v13 = vpop.eup %8020 }
 0x9a8   :  { %v9349_v18 = vmul.f32 %v8021_v13, %v8019_v34 }
 0x9aa   :  { %2660 = vmatmul.mubr.f32.vlgmr.msra.gmra.mrb[18].mxu0 %v9349_v18  ;;  %2731 = vmatmul.mubr.f32.vlgmr.msra.gmra.mrb[18].mxu1 %v9349_v18 }
 0x9ab   :  { %6688 = vmatpush1.bf16.msra.mxu0 %v9190_v61  ;;  %6720 = vmatpush1.bf16.msra.mxu1 %v9193_v47 }
 0x9ac   :  { %6690 = vmatprep.subr.bf16.mxu0 %v9198_v9  ;;  %6722 = vmatprep.subr.bf16.mxu1 %v9200_v63 }
 0x9ad   :  { %2838 = vmatprep.mubr.f32.mxu0 %v8460_v0  ;;  %2909 = vmatprep.mubr.f32.mxu1 %v8460_v0 }
 0x9af   :  { %6692 = vmatpush1.bf16.msra.mxu0 %v9202_v12  ;;  %6724 = vmatpush1.bf16.msra.mxu1 %v9205_v2 }
 0x9b0   :  { %6694 = vmatprep.subr.bf16.mxu0 %v9210_v39  ;;  %6726 = vmatprep.subr.bf16.mxu1 %v9212_v26 }
 0x9b3   :  { %6696 = vmatpush1.bf16.msra.mxu0 %v9214_v29  ;;  %6728 = vmatpush1.bf16.msra.mxu1 %v9217_v41 }
 0x9b4   :  { %6698 = vmatprep.subr.bf16.mxu0 %v9222_v54  ;;  %6730 = vmatprep.subr.bf16.mxu1 %v9224_v4 }
 0x9b7   :  { %6700 = vmatpush1.bf16.msra.mxu0 %v9226_v7  ;;  %6732 = vmatpush1.bf16.msra.mxu1 %v9229_v21 }
 0x9b8   :  { %6702 = vmatprep.subr.bf16.mxu0 %v9234_v38  ;;  %6734 = vmatprep.subr.bf16.mxu1 %v9236_v28 }
 0x9bb   :  { %6704 = vmatpush1.bf16.msra.mxu0 %v9238_v42  ;;  %6736 = vmatpush1.bf16.msra.mxu1 %v9241_v19 }
 0x9bc   :  { %6706 = vmatprep.subr.bf16.mxu0 %v9246_v50  ;;  %6738 = vmatprep.subr.bf16.mxu1 %v9248_v62 }
 0x9bf   :  { %6708 = vmatpush1.bf16.msra.mxu0 %v9250_v11  ;;  %6740 = vmatpush1.bf16.msra.mxu1 %v9253_v23 }
 0x9c0   :  { %6710 = vmatprep.subr.bf16.mxu0 %v9258_v25  ;;  %6742 = vmatprep.subr.bf16.mxu1 %v9260_v45 }
 0x9c3   :  { %6712 = vmatpush1.bf16.msra.mxu0 %v9262_v53  ;;  %6744 = vmatpush1.bf16.msra.mxu1 %v9265_v3 }
 0x9c4   :  { %6714 = vmatprep.subr.bf16.mxu0 %v9270_v27  ;;  %6746 = vmatprep.subr.bf16.mxu1 %v9272_v15 }
 0x9c7   :  { %6716 = vmatpush1.bf16.msra.mxu0 %v9274_v22  ;;  %6748 = vmatpush1.bf16.msra.mxu1 %v9277_v48 }
 0x9c8   :  { %6750 = vmatprep.subr.bf16.mxu0 %v9186_v52  ;;  %6782 = vmatprep.subr.bf16.mxu1 %v9188_v59 }
 0xa7d   :  { %v2661_v35 = vpop.f32.mrb[18].mxu0  ;;  %v2732_v36 = vpop.f32.mrb[18].mxu1 }
 0xa7e   :  { %v7703_v14 = vadd.f32 %v2661_v35, %v9331_v49  ;;  %v2663_v17 = vpop.f32.mrb[19].mxu0  ;;  %v2734_v30 = vpop.f32.mrb[19].mxu1  ;;  %v7719_v8 = vadd.f32 %v2732_v36, %v9339_v40 }
 0xa7f   :  { %v7704_v57 = vadd.f32 %v2663_v17, %v9334_v51  ;;  %v7720_v20 = vadd.f32 %v2734_v30, %v9342_v44 }
 0xa80   :  { %v5883_v58 = vmul.f32 -1.442695, %v7703_v14  ;;  %v5885_v10 = vmul.f32 -1.442695, %v7719_v8 }
 0xa81   :  { %v5884_v6 = vmul.f32 -1.442695, %v7704_v57 }
 0xa82   :  { %8022 = vpow2.f32 %v5883_v58 }
 0xa83   :  { %8024 = vpow2.f32 %v5884_v6 }
 0xa84   :  { %8026 = vtanh.f32 %v7720_v20 }
 0xa85   :  { %8028 = vpow2.f32 %v5885_v10 }
 0xa8c   :  { %v8023_v24 = vpop.eup %8022 }
 0xa8d   :  { %v2750_v37 = vadd.f32 1.0, %v8023_v24  ;;  %v8025_v43 = vpop.eup %8024 }
 0xa8e   :  { %v2751_v46 = vadd.f32 1.0, %v8025_v43  ;;  %v8027_v32 = vpop.eup %8026 }
 0xa8f   :  { %8030 = vrcp.f32 %v2750_v37  ;;  %v8029_v33 = vpop.eup %8028 }
 0xa90   :  { %8032 = vrcp.f32 %v2751_v46  ;;  %v2752_v13 = vadd.f32 1.0, %v8029_v33 }
 0xa92   :  { %8034 = vrcp.f32 %v2752_v13 }
 0xa99   :  { %v8031_v56 = vpop.eup %8030 }
 0xa9a   :  { %v2762_v55 = vmul.f32 %v8031_v56, %v8027_v32  ;;  %v8033_v34 = vpop.eup %8032 }
 0xa9b   :  { %v2761_v35 = vmul.f32 %v8033_v34, %v9346_v60 }
 0xa9c   :  { %v8035_v14 = vpop.eup %8034 }
 0xa9d   :  { %v9392_v36 = vadd.f32 %v2762_v55, %v2761_v35 }
 0xa9f   :  { %8036 = vtanh.f32 %v9392_v36 }
 0xaa9   :  { %v8037_v17 = vpop.eup %8036 }
 0xaaa   :  { %v9395_v30 = vmul.f32 %v8037_v17, %v8035_v14 }
 0xaac   :  { %2839 = vmatmul.mubr.f32.vlgmr.msra.gmra.mrb[20].mxu0 %v9395_v30  ;;  %2910 = vmatmul.mubr.f32.vlgmr.msra.gmra.mrb[20].mxu1 %v9395_v30 }
 0xaad   :  { %6752 = vmatpush1.bf16.msra.mxu0 %v9190_v61  ;;  %6784 = vmatpush1.bf16.msra.mxu1 %v9193_v47 }
 0xaae   :  { %6754 = vmatprep.subr.bf16.mxu0 %v9198_v9  ;;  %6786 = vmatprep.subr.bf16.mxu1 %v9200_v63 }
 0xaaf   :  { %3017 = vmatprep.mubr.f32.mxu0 %v8460_v0  ;;  %3088 = vmatprep.mubr.f32.mxu1 %v8460_v0 }
 0xab1   :  { %6756 = vmatpush1.bf16.msra.mxu0 %v9202_v12  ;;  %6788 = vmatpush1.bf16.msra.mxu1 %v9205_v2 }
 0xab2   :  { %6758 = vmatprep.subr.bf16.mxu0 %v9210_v39  ;;  %6790 = vmatprep.subr.bf16.mxu1 %v9212_v26 }
 0xab5   :  { %6760 = vmatpush1.bf16.msra.mxu0 %v9214_v29  ;;  %6792 = vmatpush1.bf16.msra.mxu1 %v9217_v41 }
 0xab6   :  { %6762 = vmatprep.subr.bf16.mxu0 %v9222_v54  ;;  %6794 = vmatprep.subr.bf16.mxu1 %v9224_v4 }
 0xab9   :  { %6764 = vmatpush1.bf16.msra.mxu0 %v9226_v7  ;;  %6796 = vmatpush1.bf16.msra.mxu1 %v9229_v21 }
 0xaba   :  { %6766 = vmatprep.subr.bf16.mxu0 %v9234_v38  ;;  %6798 = vmatprep.subr.bf16.mxu1 %v9236_v28 }
 0xabd   :  { %6768 = vmatpush1.bf16.msra.mxu0 %v9238_v42  ;;  %6800 = vmatpush1.bf16.msra.mxu1 %v9241_v19 }
 0xabe   :  { %6770 = vmatprep.subr.bf16.mxu0 %v9246_v50  ;;  %6802 = vmatprep.subr.bf16.mxu1 %v9248_v62 }
 0xac1   :  { %6772 = vmatpush1.bf16.msra.mxu0 %v9250_v11  ;;  %6804 = vmatpush1.bf16.msra.mxu1 %v9253_v23 }
 0xac2   :  { %6774 = vmatprep.subr.bf16.mxu0 %v9258_v25  ;;  %6806 = vmatprep.subr.bf16.mxu1 %v9260_v45 }
 0xac5   :  { %6776 = vmatpush1.bf16.msra.mxu0 %v9262_v53  ;;  %6808 = vmatpush1.bf16.msra.mxu1 %v9265_v3 }
 0xac6   :  { %6778 = vmatprep.subr.bf16.mxu0 %v9270_v27  ;;  %6810 = vmatprep.subr.bf16.mxu1 %v9272_v15 }
 0xac9   :  { %6780 = vmatpush1.bf16.msra.mxu0 %v9274_v22  ;;  %6812 = vmatpush1.bf16.msra.mxu1 %v9277_v48 }
 0xaca   :  { %6814 = vmatprep.subr.bf16.mxu0 %v9186_v52  ;;  %6846 = vmatprep.subr.bf16.mxu1 %v9188_v59 }
 0xb7f   :  { %v2840_v60 = vpop.f32.mrb[20].mxu0  ;;  %v2911_v57 = vpop.f32.mrb[20].mxu1 }
 0xb80   :  { %v7705_v58 = vadd.f32 %v2840_v60, %v9331_v49  ;;  %v2842_v6 = vpop.f32.mrb[21].mxu0  ;;  %v2913_v8 = vpop.f32.mrb[21].mxu1  ;;  %v7721_v37 = vadd.f32 %v2911_v57, %v9339_v40 }
 0xb81   :  { %v7706_v20 = vadd.f32 %v2842_v6, %v9334_v51  ;;  %v7722_v43 = vadd.f32 %v2913_v8, %v9342_v44 }
 0xb82   :  { %v5886_v10 = vmul.f32 -1.442695, %v7705_v58  ;;  %v5888_v46 = vmul.f32 -1.442695, %v7721_v37 }
 0xb83   :  { %v5887_v24 = vmul.f32 -1.442695, %v7706_v20 }
 0xb84   :  { %8038 = vpow2.f32 %v5886_v10 }
 0xb85   :  { %8040 = vpow2.f32 %v5887_v24 }
 0xb86   :  { %8042 = vtanh.f32 %v7722_v43 }
 0xb87   :  { %8044 = vpow2.f32 %v5888_v46 }
 0xb8e   :  { %v8039_v32 = vpop.eup %8038 }
 0xb8f   :  { %v2929_v33 = vadd.f32 1.0, %v8039_v32  ;;  %v8041_v56 = vpop.eup %8040 }
 0xb90   :  { %v2930_v55 = vadd.f32 1.0, %v8041_v56  ;;  %v8043_v34 = vpop.eup %8042 }
 0xb91   :  { %8046 = vrcp.f32 %v2929_v33  ;;  %v8045_v13 = vpop.eup %8044 }
 0xb92   :  { %8048 = vrcp.f32 %v2930_v55  ;;  %v2931_v60 = vadd.f32 1.0, %v8045_v13 }
 0xb94   :  { %8050 = vrcp.f32 %v2931_v60 }
 0xb9b   :  { %v8047_v35 = vpop.eup %8046 }
 0xb9c   :  { %v2941_v14 = vmul.f32 %v8047_v35, %v8043_v34  ;;  %v8049_v17 = vpop.eup %8048 }
 0xb9d   :  { %v2940_v58 = vmul.f32 %v8049_v17, %v9392_v36 }
 0xb9e   :  { %v8051_v6 = vpop.eup %8050 }
 0xb9f   :  { %v9438_v57 = vadd.f32 %v2941_v14, %v2940_v58 }
 0xba1   :  { %8052 = vtanh.f32 %v9438_v57 }
 0xbab   :  { %v8053_v8 = vpop.eup %8052 }
 0xbac   :  { %v9441_v20 = vmul.f32 %v8053_v8, %v8051_v6 }
 0xbae   :  { %3018 = vmatmul.mubr.f32.vlgmr.msra.gmra.mrb[22].mxu0 %v9441_v20  ;;  %3089 = vmatmul.mubr.f32.vlgmr.msra.gmra.mrb[22].mxu1 %v9441_v20 }
 0xbaf   :  { %6816 = vmatpush1.bf16.msra.mxu0 %v9190_v61  ;;  %6848 = vmatpush1.bf16.msra.mxu1 %v9193_v47 }
 0xbb0   :  { %6818 = vmatprep.subr.bf16.mxu0 %v9198_v9  ;;  %6850 = vmatprep.subr.bf16.mxu1 %v9200_v63 }
 0xbb1   :  { %3196 = vmatprep.mubr.f32.mxu0 %v8460_v0  ;;  %3267 = vmatprep.mubr.f32.mxu1 %v8460_v0 }
 0xbb3   :  { %6820 = vmatpush1.bf16.msra.mxu0 %v9202_v12  ;;  %6852 = vmatpush1.bf16.msra.mxu1 %v9205_v2 }
 0xbb4   :  { %6822 = vmatprep.subr.bf16.mxu0 %v9210_v39  ;;  %6854 = vmatprep.subr.bf16.mxu1 %v9212_v26 }
 0xbb7   :  { %6824 = vmatpush1.bf16.msra.mxu0 %v9214_v29  ;;  %6856 = vmatpush1.bf16.msra.mxu1 %v9217_v41 }
 0xbb8   :  { %6826 = vmatprep.subr.bf16.mxu0 %v9222_v54  ;;  %6858 = vmatprep.subr.bf16.mxu1 %v9224_v4 }
 0xbbb   :  { %6828 = vmatpush1.bf16.msra.mxu0 %v9226_v7  ;;  %6860 = vmatpush1.bf16.msra.mxu1 %v9229_v21 }
 0xbbc   :  { %6830 = vmatprep.subr.bf16.mxu0 %v9234_v38  ;;  %6862 = vmatprep.subr.bf16.mxu1 %v9236_v28 }
 0xbbf   :  { %6832 = vmatpush1.bf16.msra.mxu0 %v9238_v42  ;;  %6864 = vmatpush1.bf16.msra.mxu1 %v9241_v19 }
 0xbc0   :  { %6834 = vmatprep.subr.bf16.mxu0 %v9246_v50  ;;  %6866 = vmatprep.subr.bf16.mxu1 %v9248_v62 }
 0xbc3   :  { %6836 = vmatpush1.bf16.msra.mxu0 %v9250_v11  ;;  %6868 = vmatpush1.bf16.msra.mxu1 %v9253_v23 }
 0xbc4   :  { %6838 = vmatprep.subr.bf16.mxu0 %v9258_v25  ;;  %6870 = vmatprep.subr.bf16.mxu1 %v9260_v45 }
 0xbc7   :  { %6840 = vmatpush1.bf16.msra.mxu0 %v9262_v53  ;;  %6872 = vmatpush1.bf16.msra.mxu1 %v9265_v3 }
 0xbc8   :  { %6842 = vmatprep.subr.bf16.mxu0 %v9270_v27  ;;  %6874 = vmatprep.subr.bf16.mxu1 %v9272_v15 }
 0xbcb   :  { %6844 = vmatpush1.bf16.msra.mxu0 %v9274_v22  ;;  %6876 = vmatpush1.bf16.msra.mxu1 %v9277_v48 }
 0xbcc   :  { %6878 = vmatprep.subr.bf16.mxu0 %v9186_v52  ;;  %6910 = vmatprep.subr.bf16.mxu1 %v9188_v59 }
 0xc81   :  { %v3019_v36 = vpop.f32.mrb[22].mxu0  ;;  %v3090_v10 = vpop.f32.mrb[22].mxu1 }
 0xc82   :  { %v7707_v24 = vadd.f32 %v3019_v36, %v9331_v49  ;;  %v3021_v37 = vpop.f32.mrb[23].mxu0  ;;  %v3092_v43 = vpop.f32.mrb[23].mxu1  ;;  %v7723_v56 = vadd.f32 %v3090_v10, %v9339_v40 }
 0xc83   :  { %v7708_v46 = vadd.f32 %v3021_v37, %v9334_v51  ;;  %v7724_v55 = vadd.f32 %v3092_v43, %v9342_v44 }
 0xc84   :  { %v5889_v32 = vmul.f32 -1.442695, %v7707_v24  ;;  %v5891_v34 = vmul.f32 -1.442695, %v7723_v56 }
 0xc85   :  { %v5890_v33 = vmul.f32 -1.442695, %v7708_v46 }
 0xc86   :  { %8054 = vpow2.f32 %v5889_v32 }
 0xc87   :  { %8056 = vpow2.f32 %v5890_v33 }
 0xc88   :  { %8058 = vtanh.f32 %v7724_v55 }
 0xc89   :  { %8060 = vpow2.f32 %v5891_v34 }
 0xc90   :  { %v8055_v13 = vpop.eup %8054 }
 0xc91   :  { %v3108_v35 = vadd.f32 1.0, %v8055_v13  ;;  %v8057_v14 = vpop.eup %8056 }
 0xc92   :  { %v3109_v17 = vadd.f32 1.0, %v8057_v14  ;;  %v8059_v60 = vpop.eup %8058 }
 0xc93   :  { %8062 = vrcp.f32 %v3108_v35  ;;  %v8061_v58 = vpop.eup %8060 }
 0xc94   :  { %8064 = vrcp.f32 %v3109_v17  ;;  %v3110_v24 = vadd.f32 1.0, %v8061_v58 }
 0xc96   :  { %8066 = vrcp.f32 %v3110_v24 }
 0xc9d   :  { %v8063_v6 = vpop.eup %8062 }
 0xc9e   :  { %v3120_v8 = vmul.f32 %v8063_v6, %v8059_v60  ;;  %v8065_v36 = vpop.eup %8064 }
 0xc9f   :  { %v3119_v37 = vmul.f32 %v8065_v36, %v9438_v57 }
 0xca0   :  { %v8067_v43 = vpop.eup %8066 }
 0xca1   :  { %v9484_v10 = vadd.f32 %v3120_v8, %v3119_v37 }
 0xca3   :  { %8068 = vtanh.f32 %v9484_v10 }
 0xcad   :  { %v8069_v46 = vpop.eup %8068 }
 0xcae   :  { %v9487_v32 = vmul.f32 %v8069_v46, %v8067_v43 }
 0xcb0   :  { %3197 = vmatmul.mubr.f32.vlgmr.msra.gmra.mrb[24].mxu0 %v9487_v32  ;;  %3268 = vmatmul.mubr.f32.vlgmr.msra.gmra.mrb[24].mxu1 %v9487_v32 }
 0xcb1   :  { %6880 = vmatpush1.bf16.msra.mxu0 %v9190_v61  ;;  %6912 = vmatpush1.bf16.msra.mxu1 %v9193_v47 }
 0xcb2   :  { %6882 = vmatprep.subr.bf16.mxu0 %v9198_v9  ;;  %6914 = vmatprep.subr.bf16.mxu1 %v9200_v63 }
 0xcb3   :  { %3375 = vmatprep.mubr.f32.mxu0 %v8460_v0  ;;  %3446 = vmatprep.mubr.f32.mxu1 %v8460_v0 }
 0xcb5   :  { %6884 = vmatpush1.bf16.msra.mxu0 %v9202_v12  ;;  %6916 = vmatpush1.bf16.msra.mxu1 %v9205_v2 }
 0xcb6   :  { %6886 = vmatprep.subr.bf16.mxu0 %v9210_v39  ;;  %6918 = vmatprep.subr.bf16.mxu1 %v9212_v26 }
 0xcb9   :  { %6888 = vmatpush1.bf16.msra.mxu0 %v9214_v29  ;;  %6920 = vmatpush1.bf16.msra.mxu1 %v9217_v41 }
 0xcba   :  { %6890 = vmatprep.subr.bf16.mxu0 %v9222_v54  ;;  %6922 = vmatprep.subr.bf16.mxu1 %v9224_v4 }
 0xcbd   :  { %6892 = vmatpush1.bf16.msra.mxu0 %v9226_v7  ;;  %6924 = vmatpush1.bf16.msra.mxu1 %v9229_v21 }
 0xcbe   :  { %6894 = vmatprep.subr.bf16.mxu0 %v9234_v38  ;;  %6926 = vmatprep.subr.bf16.mxu1 %v9236_v28 }
 0xcc1   :  { %6896 = vmatpush1.bf16.msra.mxu0 %v9238_v42  ;;  %6928 = vmatpush1.bf16.msra.mxu1 %v9241_v19 }
 0xcc2   :  { %6898 = vmatprep.subr.bf16.mxu0 %v9246_v50  ;;  %6930 = vmatprep.subr.bf16.mxu1 %v9248_v62 }
 0xcc5   :  { %6900 = vmatpush1.bf16.msra.mxu0 %v9250_v11  ;;  %6932 = vmatpush1.bf16.msra.mxu1 %v9253_v23 }
 0xcc6   :  { %6902 = vmatprep.subr.bf16.mxu0 %v9258_v25  ;;  %6934 = vmatprep.subr.bf16.mxu1 %v9260_v45 }
 0xcc9   :  { %6904 = vmatpush1.bf16.msra.mxu0 %v9262_v53  ;;  %6936 = vmatpush1.bf16.msra.mxu1 %v9265_v3 }
 0xcca   :  { %6906 = vmatprep.subr.bf16.mxu0 %v9270_v27  ;;  %6938 = vmatprep.subr.bf16.mxu1 %v9272_v15 }
 0xccd   :  { %6908 = vmatpush1.bf16.msra.mxu0 %v9274_v22  ;;  %6940 = vmatpush1.bf16.msra.mxu1 %v9277_v48 }
 0xcce   :  { %6942 = vmatprep.subr.bf16.mxu0 %v9186_v52  ;;  %6974 = vmatprep.subr.bf16.mxu1 %v9188_v59 }
 0xd83   :  { %v3198_v57 = vpop.f32.mrb[24].mxu0  ;;  %v3269_v33 = vpop.f32.mrb[24].mxu1 }
 0xd84   :  { %v7709_v56 = vadd.f32 %v3198_v57, %v9331_v49  ;;  %v3200_v55 = vpop.f32.mrb[25].mxu0  ;;  %v3271_v34 = vpop.f32.mrb[25].mxu1  ;;  %v7725_v17 = vadd.f32 %v3269_v33, %v9339_v40 }
 0xd85   :  { %v7710_v13 = vadd.f32 %v3200_v55, %v9334_v51  ;;  %v7726_v60 = vadd.f32 %v3271_v34, %v9342_v44 }
 0xd86   :  { %v5892_v35 = vmul.f32 -1.442695, %v7709_v56  ;;  %v5894_v58 = vmul.f32 -1.442695, %v7725_v17 }
 0xd87   :  { %v5893_v14 = vmul.f32 -1.442695, %v7710_v13 }
 0xd88   :  { %8070 = vpow2.f32 %v5892_v35 }
 0xd89   :  { %8072 = vpow2.f32 %v5893_v14 }
 0xd8a   :  { %8074 = vtanh.f32 %v7726_v60 }
 0xd8b   :  { %8076 = vpow2.f32 %v5894_v58 }
 0xd92   :  { %v8071_v6 = vpop.eup %8070 }
 0xd93   :  { %v3287_v8 = vadd.f32 1.0, %v8071_v6  ;;  %v8073_v36 = vpop.eup %8072 }
 0xd94   :  { %v3288_v24 = vadd.f32 1.0, %v8073_v36  ;;  %v8075_v37 = vpop.eup %8074 }
 0xd95   :  { %8078 = vrcp.f32 %v3287_v8  ;;  %v8077_v43 = vpop.eup %8076 }
 0xd96   :  { %8080 = vrcp.f32 %v3288_v24  ;;  %v3289_v55 = vadd.f32 1.0, %v8077_v43 }
 0xd98   :  { %8082 = vrcp.f32 %v3289_v55 }
 0xd9f   :  { %v8079_v46 = vpop.eup %8078 }
 0xda0   :  { %v3299_v57 = vmul.f32 %v8079_v46, %v8075_v37  ;;  %v8081_v56 = vpop.eup %8080 }
 0xda1   :  { %v3298_v13 = vmul.f32 %v8081_v56, %v9484_v10 }
 0xda2   :  { %v8083_v34 = vpop.eup %8082 }
 0xda3   :  { %v9530_v33 = vadd.f32 %v3299_v57, %v3298_v13 }
 0xda5   :  { %8084 = vtanh.f32 %v9530_v33 }
 0xdaf   :  { %v8085_v35 = vpop.eup %8084 }
 0xdb0   :  { %v9533_v14 = vmul.f32 %v8085_v35, %v8083_v34 }
 0xdb2   :  { %3376 = vmatmul.mubr.f32.vlgmr.msra.gmra.mrb[26].mxu0 %v9533_v14  ;;  %3447 = vmatmul.mubr.f32.vlgmr.msra.gmra.mrb[26].mxu1 %v9533_v14 }
 0xdb3   :  { %6944 = vmatpush1.bf16.msra.mxu0 %v9190_v61  ;;  %6976 = vmatpush1.bf16.msra.mxu1 %v9193_v47 }
 0xdb4   :  { %6946 = vmatprep.subr.bf16.mxu0 %v9198_v9  ;;  %6978 = vmatprep.subr.bf16.mxu1 %v9200_v63 }
 0xdb5   :  { %3554 = vmatprep.mubr.f32.mxu0 %v8460_v0  ;;  %3625 = vmatprep.mubr.f32.mxu1 %v8460_v0 }
 0xdb7   :  { %6948 = vmatpush1.bf16.msra.mxu0 %v9202_v12  ;;  %6980 = vmatpush1.bf16.msra.mxu1 %v9205_v2 }
 0xdb8   :  { %6950 = vmatprep.subr.bf16.mxu0 %v9210_v39  ;;  %6982 = vmatprep.subr.bf16.mxu1 %v9212_v26 }
 0xdbb   :  { %6952 = vmatpush1.bf16.msra.mxu0 %v9214_v29  ;;  %6984 = vmatpush1.bf16.msra.mxu1 %v9217_v41 }
 0xdbc   :  { %6954 = vmatprep.subr.bf16.mxu0 %v9222_v54  ;;  %6986 = vmatprep.subr.bf16.mxu1 %v9224_v4 }
 0xdbf   :  { %6956 = vmatpush1.bf16.msra.mxu0 %v9226_v7  ;;  %6988 = vmatpush1.bf16.msra.mxu1 %v9229_v21 }
 0xdc0   :  { %6958 = vmatprep.subr.bf16.mxu0 %v9234_v38  ;;  %6990 = vmatprep.subr.bf16.mxu1 %v9236_v28 }
 0xdc3   :  { %6960 = vmatpush1.bf16.msra.mxu0 %v9238_v42  ;;  %6992 = vmatpush1.bf16.msra.mxu1 %v9241_v19 }
 0xdc4   :  { %6962 = vmatprep.subr.bf16.mxu0 %v9246_v50  ;;  %6994 = vmatprep.subr.bf16.mxu1 %v9248_v62 }
 0xdc7   :  { %6964 = vmatpush1.bf16.msra.mxu0 %v9250_v11  ;;  %6996 = vmatpush1.bf16.msra.mxu1 %v9253_v23 }
 0xdc8   :  { %6966 = vmatprep.subr.bf16.mxu0 %v9258_v25  ;;  %6998 = vmatprep.subr.bf16.mxu1 %v9260_v45 }
 0xdcb   :  { %6968 = vmatpush1.bf16.msra.mxu0 %v9262_v53  ;;  %7000 = vmatpush1.bf16.msra.mxu1 %v9265_v3 }
 0xdcc   :  { %6970 = vmatprep.subr.bf16.mxu0 %v9270_v27  ;;  %7002 = vmatprep.subr.bf16.mxu1 %v9272_v15 }
 0xdcf   :  { %6972 = vmatpush1.bf16.msra.mxu0 %v9274_v22  ;;  %7004 = vmatpush1.bf16.msra.mxu1 %v9277_v48 }
 0xdd0   :  { %7006 = vmatprep.subr.bf16.mxu0 %v9186_v52  ;;  %7038 = vmatprep.subr.bf16.mxu1 %v9188_v59 }
 0xe85   :  { %v3377_v10 = vpop.f32.mrb[26].mxu0  ;;  %v3448_v17 = vpop.f32.mrb[26].mxu1 }
 0xe86   :  { %v7711_v60 = vadd.f32 %v3377_v10, %v9331_v49  ;;  %v3379_v58 = vpop.f32.mrb[27].mxu0  ;;  %v3450_v6 = vpop.f32.mrb[27].mxu1  ;;  %v7727_v37 = vadd.f32 %v3448_v17, %v9339_v40 }
 0xe87   :  { %v7712_v8 = vadd.f32 %v3379_v58, %v9334_v51  ;;  %v7728_v43 = vadd.f32 %v3450_v6, %v9342_v44 }
 0xe88   :  { %v5895_v36 = vmul.f32 -1.442695, %v7711_v60  ;;  %v5897_v46 = vmul.f32 -1.442695, %v7727_v37  ;;  %v3851_v37 = vld [vmem:[#allocation11 + $0x30] sm:$0xff] }
 0xe89   :  { %v5896_v24 = vmul.f32 -1.442695, %v7712_v8 }
 0xe8a   :  { %8086 = vpow2.f32 %v5895_v36 }
 0xe8b   :  { %8088 = vpow2.f32 %v5896_v24  ;;  %v3847_v24 = vld [vmem:[#allocation11 + $0x10] sm:$0xff] }
 0xe8c   :  { %8090 = vtanh.f32 %v7728_v43  ;;  %v3854_v43 = vld [vmem:[#allocation11 + $0x48] sm:$0xff] }
 0xe8d   :  { %8092 = vpow2.f32 %v5897_v46  ;;  %v3858_v46 = vld [vmem:[#allocation11 + $0x68] sm:$0xff] }
 0xe94   :  { %v8087_v52 = vpop.eup %8086 }
 0xe95   :  { %v3466_v57 = vadd.f32 1.0, %v8087_v52  ;;  %v8089_v59 = vpop.eup %8088  ;;  %v3856_v52 = vld [vmem:[#allocation11 + $0x58] sm:$0xff] }
 0xe96   :  { %v3467_v56 = vadd.f32 1.0, %v8089_v59  ;;  %v8091_v55 = vpop.eup %8090 }
 0xe97   :  { %8094 = vrcp.f32 %v3466_v57  ;;  %v8093_v13 = vpop.eup %8092  ;;  %v3860_v57 = vld [vmem:[#allocation11 + $0x78] sm:$0xff] }
 0xe98   :  { %8096 = vrcp.f32 %v3467_v56  ;;  %v3468_v60 = vadd.f32 1.0, %v8093_v13  ;;  %v7103_v13 = vpack.c.bf16 %v3851_v37, %v3847_v24  ;;  %v3881_v24 = vld [vmem:[#allocation11 + $0x120] sm:$0xff] }
 0xe9a   :  { %8098 = vrcp.f32 %v3468_v60  ;;  %v7073_v60 = vpack.c.bf16 %v3858_v46, %v3854_v43  ;;  %v3879_v46 = vld [vmem:[#allocation11 + $0x110] sm:$0xff] }
 0xea1   :  { %v8095_v34 = vpop.eup %8094 }
 0xea2   :  { %v3478_v35 = vmul.f32 %v8095_v34, %v8091_v55  ;;  %v8097_v10 = vpop.eup %8096  ;;  %v3853_v34 = vld [vmem:[#allocation11 + $0x40] sm:$0xff] }
 0xea3   :  { %v3477_v58 = vmul.f32 %v8097_v10, %v9530_v33  ;;  %v3849_v33 = vld [vmem:[#allocation11 + $0x20] sm:$0xff] }
 0xea4   :  { %v8099_v6 = vpop.eup %8098 }
 0xea5   :  { %v9576_v17 = vadd.f32 %v3478_v35, %v3477_v58  ;;  %v3857_v35 = vld [vmem:[#allocation11 + $0x60] sm:$0xff]  ;;  %v7105_v58 = vpack.c.bf16 %v3860_v57, %v3856_v52  ;;  %v3883_v52 = vld [vmem:[#allocation11 + $0x130] sm:$0xff]  ;;  %v3886_v57 = vld [vmem:[#allocation11 + $0x148] sm:$0xff] }
 0xea7   :  { %8100 = vtanh.f32 %v9576_v17 }
 0xeb1   :  { %v8101_v8 = vpop.eup %8100 }
 0xeb2   :  { %v9579_v36 = vmul.f32 %v8101_v8, %v8099_v6  ;;  %v3859_v6 = vld [vmem:[#allocation11 + $0x70] sm:$0xff]  ;;  %v3862_v8 = vld [vmem:[#allocation11 + $0x88] sm:$0xff] }
 0xeb4   :  { %3555 = vmatmul.mubr.f32.vlgmr.msra.gmra.mrb[28].mxu0 %v9579_v36  ;;  %3626 = vmatmul.mubr.f32.vlgmr.msra.gmra.mrb[28].mxu1 %v9579_v36 }
 0xeb5   :  { %7008 = vmatpush1.bf16.msra.mxu0 %v9190_v61  ;;  %7040 = vmatpush1.bf16.msra.mxu1 %v9193_v47  ;;  %v3846_v61 = vld [vmem:[#allocation11 + $0x8] sm:$0xff] }
 0xeb6   :  { %7010 = vmatprep.subr.bf16.mxu0 %v9198_v9  ;;  %7042 = vmatprep.subr.bf16.mxu1 %v9200_v63  ;;  %v3850_v47 = vld [vmem:[#allocation11 + $0x28] sm:$0xff]  ;;  %v3848_v9 = vld [vmem:[#allocation11 + $0x18] sm:$0xff] }
 0xeb7   :  { %3733 = vmatprep.mubr.f32.mxu0 %v8460_v0  ;;  %3804 = vmatprep.mubr.f32.mxu1 %v8460_v0  ;;  %v7069_v63 = vpack.c.bf16 %v3850_v47, %v3846_v61  ;;  %v3866_v61 = vld [vmem:[#allocation11 + $0xa8] sm:$0xff]  ;;  %v3864_v47 = vld [vmem:[#allocation11 + $0x98] sm:$0xff] }
 0xeb9   :  { %7012 = vmatpush1.bf16.msra.mxu0 %v9202_v12  ;;  %7044 = vmatpush1.bf16.msra.mxu1 %v9205_v2  ;;  %v3852_v12 = vld [vmem:[#allocation11 + $0x38] sm:$0xff] }
 0xeba   :  { %7014 = vmatprep.subr.bf16.mxu0 %v9210_v39  ;;  %7046 = vmatprep.subr.bf16.mxu1 %v9212_v26  ;;  %v7101_v2 = vpack.c.bf16 %v3852_v12, %v3848_v9  ;;  %v3868_v9 = vld [vmem:[#allocation11 + $0xb8] sm:$0xff] }
 0xebd   :  { %7016 = vmatpush1.bf16.msra.mxu0 %v9214_v29  ;;  %7048 = vmatpush1.bf16.msra.mxu1 %v9217_v41 }
 0xebe   :  { %7018 = vmatprep.subr.bf16.mxu0 %v9222_v54  ;;  %7050 = vmatprep.subr.bf16.mxu1 %v9224_v4 }
 0xec1   :  { %7020 = vmatpush1.bf16.msra.mxu0 %v9226_v7  ;;  %7052 = vmatpush1.bf16.msra.mxu1 %v9229_v21 }
 0xec2   :  { %7022 = vmatprep.subr.bf16.mxu0 %v9234_v38  ;;  %7054 = vmatprep.subr.bf16.mxu1 %v9236_v28 }
 0xec5   :  { %7024 = vmatpush1.bf16.msra.mxu0 %v9238_v42  ;;  %7056 = vmatpush1.bf16.msra.mxu1 %v9241_v19 }
 0xec6   :  { %7026 = vmatprep.subr.bf16.mxu0 %v9246_v50  ;;  %7058 = vmatprep.subr.bf16.mxu1 %v9248_v62 }
 0xec9   :  { %7028 = vmatpush1.bf16.msra.mxu0 %v9250_v11  ;;  %7060 = vmatpush1.bf16.msra.mxu1 %v9253_v23 }
 0xeca   :  { %7030 = vmatprep.subr.bf16.mxu0 %v9258_v25  ;;  %7062 = vmatprep.subr.bf16.mxu1 %v9260_v45 }
 0xecd   :  { %7032 = vmatpush1.bf16.msra.mxu0 %v9262_v53  ;;  %7064 = vmatpush1.bf16.msra.mxu1 %v9265_v3 }
 0xece   :  { %7034 = vmatprep.subr.bf16.mxu0 %v9270_v27  ;;  %7066 = vmatprep.subr.bf16.mxu1 %v9272_v15 }
 0xed1   :  { %7036 = vmatpush1.bf16.msra.mxu0 %v9274_v22  ;;  %7068 = vmatpush1.bf16.msra.mxu1 %v9277_v48  ;;  %v3845_v48 = vld [vmem:[#allocation11] sm:$0xff] }
 0xed2   :  { %7070 = vmatprep.subr.bf16.mxu0 %v7069_v63  ;;  %7102 = vmatprep.subr.bf16.mxu1 %v7101_v2  ;;  %v7071_v55 = vpack.c.bf16 %v3849_v33, %v3845_v48  ;;  %v7075_v63 = vpack.c.bf16 %v3857_v35, %v3853_v34  ;;  %v3861_v2 = vld [vmem:[#allocation11 + $0x80] sm:$0xff]  ;;  %v7119_v34 = vpack.c.bf16 %v3883_v52, %v3879_v46  ;;  %v3920_v46 = vld [vmem:[#allocation13 + $0x58] sm:$0xff] }
 0xed3   :  { %v3877_v33 = vld [vmem:[#allocation11 + $0x100] sm:$0xff] }
 0xed4   :  { %v3885_v35 = vld [vmem:[#allocation11 + $0x140] sm:$0xff] }
 0xf87   :  { %v3556_v39 = vpop.f32.mrb[28].mxu0  ;;  %v3627_v26 = vpop.f32.mrb[28].mxu1 }
 0xf88   :  { %v7713_v29 = vadd.f32 %v3556_v39, %v9331_v49  ;;  %v3558_v41 = vpop.f32.mrb[29].mxu0  ;;  %v3629_v54 = vpop.f32.mrb[29].mxu1  ;;  %v7729_v38 = vadd.f32 %v3627_v26, %v9339_v40  ;;  %v3865_v39 = vld [vmem:[#allocation11 + $0xa0] sm:$0xff]  ;;  %v7077_v26 = vpack.c.bf16 %v3866_v61, %v3862_v8  ;;  %v3891_v8 = vld [vmem:[#allocation11 + $0x170] sm:$0xff]  ;;  %v3894_v61 = vld [vmem:[#allocation11 + $0x188] sm:$0xff] }
 0xf89   :  { %v7714_v4 = vadd.f32 %v3558_v41, %v9334_v51  ;;  %v7730_v28 = vadd.f32 %v3629_v54, %v9342_v44  ;;  %v3863_v41 = vld [vmem:[#allocation11 + $0x90] sm:$0xff] }
 0xf8a   :  { %v5898_v7 = vmul.f32 -1.442695, %v7713_v29  ;;  %v5900_v42 = vmul.f32 -1.442695, %v7729_v38  ;;  %v7109_v29 = vpack.c.bf16 %v3868_v9, %v3864_v47  ;;  %v3867_v54 = vld [vmem:[#allocation11 + $0xb0] sm:$0xff]  ;;  %v3876_v38 = vld [vmem:[#allocation11 + $0xf8] sm:$0xff] }
 0xf8b   :  { %v5899_v21 = vmul.f32 -1.442695, %v7714_v4  ;;  %v3870_v4 = vld [vmem:[#allocation11 + $0xc8] sm:$0xff]  ;;  %v3896_v9 = vld [vmem:[#allocation11 + $0x198] sm:$0xff] }
 0xf8c   :  { %8102 = vpow2.f32 %v5898_v7  ;;  %v3874_v7 = vld [vmem:[#allocation11 + $0xe8] sm:$0xff] }
 0xf8d   :  { %8104 = vpow2.f32 %v5899_v21  ;;  %v3872_v21 = vld [vmem:[#allocation11 + $0xd8] sm:$0xff]  ;;  %v3898_v47 = vld [vmem:[#allocation11 + $0x1a8] sm:$0xff] }
 0xf8e   :  { %8106 = vtanh.f32 %v7730_v28  ;;  %v7079_v28 = vpack.c.bf16 %v3865_v39, %v3861_v2  ;;  %v3893_v39 = vld [vmem:[#allocation11 + $0x180] sm:$0xff] }
 0xf8f   :  { %8108 = vpow2.f32 %v5900_v42  ;;  %v7111_v42 = vpack.c.bf16 %v3867_v54, %v3863_v41  ;;  %v3895_v54 = vld [vmem:[#allocation11 + $0x190] sm:$0xff] }
 0xf96   :  { %v8103_v19 = vpop.eup %8102 }
 0xf97   :  { %v3645_v50 = vadd.f32 1.0, %v8103_v19  ;;  %v8105_v62 = vpop.eup %8104  ;;  %v3869_v19 = vld [vmem:[#allocation11 + $0xc0] sm:$0xff] }
 0xf98   :  { %v3646_v11 = vadd.f32 1.0, %v8105_v62  ;;  %v8107_v23 = vpop.eup %8106  ;;  %v7081_v62 = vpack.c.bf16 %v3874_v7, %v3870_v4  ;;  %v3899_v4 = vld [vmem:[#allocation11 + $0x1b0] sm:$0xff]  ;;  %v3902_v7 = vld [vmem:[#allocation11 + $0x1c8] sm:$0xff] }
 0xf99   :  { %8110 = vrcp.f32 %v3645_v50  ;;  %v8109_v25 = vpop.eup %8108  ;;  %v3873_v50 = vld [vmem:[#allocation11 + $0xe0] sm:$0xff] }
 0xf9a   :  { %8112 = vrcp.f32 %v3646_v11  ;;  %v3647_v27 = vadd.f32 1.0, %v8109_v25  ;;  %v7113_v11 = vpack.c.bf16 %v3876_v38, %v3872_v21  ;;  %v3875_v25 = vld [vmem:[#allocation11 + $0xf0] sm:$0xff]  ;;  %v3906_v21 = vld [vmem:[#allocation11 + $0x1e8] sm:$0xff]  ;;  %v3904_v38 = vld [vmem:[#allocation11 + $0x1d8] sm:$0xff] }
 0xf9c   :  { %8114 = vrcp.f32 %v3647_v27  ;;  %v3884_v27 = vld [vmem:[#allocation11 + $0x138] sm:$0xff] }
 0xfa3   :  { %v8111_v45 = vpop.eup %8110 }
 0xfa4   :  { %v3657_v53 = vmul.f32 %v8111_v45, %v8107_v23  ;;  %v8113_v3 = vpop.eup %8112  ;;  %v3871_v23 = vld [vmem:[#allocation11 + $0xd0] sm:$0xff]  ;;  %v3878_v45 = vld [vmem:[#allocation11 + $0x108] sm:$0xff] }
 0xfa5   :  { %v3656_v15 = vmul.f32 %v8113_v3, %v9576_v17  ;;  %v3855_v17 = vld [vmem:[#allocation11 + $0x50] sm:$0xff]  ;;  %v3880_v3 = vld [vmem:[#allocation11 + $0x118] sm:$0xff]  ;;  %v7115_v48 = vpack.c.bf16 %v3875_v25, %v3871_v23  ;;  %v3905_v23 = vld [vmem:[#allocation11 + $0x1e0] sm:$0xff] }
 0xfa6   :  { %v8115_v59 = vpop.eup %8114  ;;  %v7107_v12 = vpack.c.bf16 %v3859_v6, %v3855_v17  ;;  %v7117_v43 = vpack.c.bf16 %v3884_v27, %v3880_v3  ;;  %v3887_v6 = vld [vmem:[#allocation11 + $0x150] sm:$0xff]  ;;  %v3909_v27 = vld [vmem:[#allocation13] sm:$0xff] }
 0xfa7   :  { %v9620_v22 = vadd.f32 %v3657_v53, %v3656_v15  ;;  %v3882_v53 = vld [vmem:[#allocation11 + $0x128] sm:$0xff]  ;;  %v7083_v15 = vpack.c.bf16 %v3873_v50, %v3869_v19  ;;  %v7123_v2 = vpack.c.bf16 %v3891_v8, %v3887_v6  ;;  %v7127_v19 = vpack.c.bf16 %v3899_v4, %v3895_v54  ;;  %v3901_v50 = vld [vmem:[#allocation11 + $0x1c0] sm:$0xff]  ;;  %v3903_v25 = vld [vmem:[#allocation11 + $0x1d0] sm:$0xff] }
 0xfa8   :  { %v7085_v37 = vpack.c.bf16 %v3882_v53, %v3878_v45  ;;  %v3907_v45 = vld [vmem:[#allocation11 + $0x1f0] sm:$0xff]  ;;  %v7099_v53 = vpack.c.bf16 %v3905_v23, %v3901_v50  ;;  %v3928_v6 = vld [vmem:[#allocation13 + $0x98] sm:$0xff]  ;;  %v3946_v23 = vld [vmem:[#allocation13 + $0x128] sm:$0xff] }
 0xfa9   :  { %8116 = vtanh.f32 %v9620_v22  ;;  %v7131_v3 = vpack.c.bf16 %v3907_v45, %v3903_v25  ;;  %v3936_v54 = vld [vmem:[#allocation13 + $0xd8] sm:$0xff]  ;;  %v3939_v50 = vld [vmem:[#allocation13 + $0xf0] sm:$0xff] }
 0xfaa   :  { %v3944_v25 = vld [vmem:[#allocation13 + $0x118] sm:$0xff] }
 0xfb3   :  { %v8117_v56 = vpop.eup %8116 }
 0xfb4   :  { %v9623_v10 = vmul.f32 %v8117_v56, %v8115_v59  ;;  %v3890_v59 = vld [vmem:[#allocation11 + $0x168] sm:$0xff]  ;;  %v3888_v56 = vld [vmem:[#allocation11 + $0x158] sm:$0xff] }
 0xfb6   :  { %3734 = vmatmul.mubr.f32.vlgmr.msra.gmra.mrb[30].mxu0 %v9623_v10  ;;  %3805 = vmatmul.mubr.f32.vlgmr.msra.gmra.mrb[30].mxu1 %v9623_v10 }
 0xfb7   :  { %7072 = vmatpush1.bf16.msra.mxu0 %v7071_v55  ;;  %7104 = vmatpush1.bf16.msra.mxu1 %v7103_v13  ;;  %v3892_v55 = vld [vmem:[#allocation11 + $0x178] sm:$0xff]  ;;  %v7087_v13 = vpack.c.bf16 %v3881_v24, %v3877_v33  ;;  %v3911_v33 = vld [vmem:[#allocation13 + $0x10] sm:$0xff] }
 0xfb8   :  { %7074 = vmatprep.subr.bf16.mxu0 %v7073_v60  ;;  %7106 = vmatprep.subr.bf16.mxu1 %v7105_v58  ;;  %v3889_v60 = vld [vmem:[#allocation11 + $0x160] sm:$0xff]  ;;  %v7089_v58 = vpack.c.bf16 %v3890_v59, %v3886_v57  ;;  %v7121_v17 = vpack.c.bf16 %v3892_v55, %v3888_v56  ;;  %v3915_v24 = vld [vmem:[#allocation13 + $0x30] sm:$0xff]  ;;  %v3924_v57 = vld [vmem:[#allocation13 + $0x78] sm:$0xff] }
 0xfb9   :  { %4067 = vmatprep.mubr.f32.mxu0 %v8460_v0  ;;  %4180 = vmatprep.mubr.f32.mxu1 %v8460_v0  ;;  %v3917_v59 = vld [vmem:[#allocation13 + $0x40] sm:$0xff]  ;;  %v9671_v55 = vpack.c.bf16 %v3924_v57, %v3920_v46  ;;  %v3956_v46 = vld [vmem:[#allocation13 + $0x178] sm:$0xff] }
 0xfba   :  { %v3921_v56 = vld [vmem:[#allocation13 + $0x60] sm:$0xff] }
 0xfbb   :  { %7076 = vmatpush1.bf16.msra.mxu0 %v7075_v63  ;;  %7108 = vmatpush1.bf16.msra.mxu1 %v7107_v12  ;;  %v3900_v63 = vld [vmem:[#allocation11 + $0x1b8] sm:$0xff]  ;;  %v7091_v12 = vpack.c.bf16 %v3889_v60, %v3885_v35  ;;  %v3923_v35 = vld [vmem:[#allocation13 + $0x70] sm:$0xff]  ;;  %v3949_v57 = vld [vmem:[#allocation13 + $0x140] sm:$0xff] }
 0xfbc   :  { %7078 = vmatprep.subr.bf16.mxu0 %v7077_v26  ;;  %7110 = vmatprep.subr.bf16.mxu1 %v7109_v29  ;;  %v3897_v26 = vld [vmem:[#allocation11 + $0x1a0] sm:$0xff]  ;;  %v7093_v29 = vpack.c.bf16 %v3898_v47, %v3894_v61  ;;  %v7125_v41 = vpack.c.bf16 %v3900_v63, %v3896_v9  ;;  %v3932_v61 = vld [vmem:[#allocation13 + $0xb8] sm:$0xff] }
 0xfbd   :  { %v3925_v47 = vld [vmem:[#allocation13 + $0x80] sm:$0xff]  ;;  %v9683_v63 = vpack.c.bf16 %v3932_v61, %v3928_v6  ;;  %v3958_v6 = vld [vmem:[#allocation13 + $0x188] sm:$0xff] }
 0xfbe   :  { %v3929_v9 = vld [vmem:[#allocation13 + $0xa0] sm:$0xff]  ;;  %v3962_v61 = vld [vmem:[#allocation13 + $0x1a8] sm:$0xff] }
 0xfbf   :  { %7080 = vmatpush1.bf16.msra.mxu0 %v7079_v28  ;;  %7112 = vmatpush1.bf16.msra.mxu1 %v7111_v42  ;;  %v3908_v28 = vld [vmem:[#allocation11 + $0x1f8] sm:$0xff]  ;;  %v7095_v42 = vpack.c.bf16 %v3897_v26, %v3893_v39  ;;  %v3931_v39 = vld [vmem:[#allocation13 + $0xb0] sm:$0xff] }
 0xfc0   :  { %7082 = vmatprep.subr.bf16.mxu0 %v7081_v62  ;;  %7114 = vmatprep.subr.bf16.mxu1 %v7113_v11  ;;  %v7097_v62 = vpack.c.bf16 %v3906_v21, %v3902_v7  ;;  %v7129_v11 = vpack.c.bf16 %v3908_v28, %v3904_v38  ;;  %v3940_v7 = vld [vmem:[#allocation13 + $0xf8] sm:$0xff]  ;;  %v3933_v21 = vld [vmem:[#allocation13 + $0xc0] sm:$0xff] }
 0xfc1   :  { %v3937_v38 = vld [vmem:[#allocation13 + $0xe0] sm:$0xff]  ;;  %v9695_v28 = vpack.c.bf16 %v3940_v7, %v3936_v54  ;;  %v3959_v7 = vld [vmem:[#allocation13 + $0x190] sm:$0xff] }
 0xfc3   :  { %7084 = vmatpush1.bf16.msra.mxu0 %v7083_v15  ;;  %7116 = vmatpush1.bf16.msra.mxu1 %v7115_v48 }
 0xfc4   :  { %7086 = vmatprep.subr.bf16.mxu0 %v7085_v37  ;;  %7118 = vmatprep.subr.bf16.mxu1 %v7117_v43  ;;  %v3918_v37 = vld [vmem:[#allocation13 + $0x48] sm:$0xff] }
 0xfc5   :  { %v3922_v43 = vld [vmem:[#allocation13 + $0x68] sm:$0xff] }
 0xfc6   :  { %v9669_v52 = vpack.c.bf16 %v3922_v43, %v3918_v37  ;;  %v3952_v37 = vld [vmem:[#allocation13 + $0x158] sm:$0xff] }
 0xfc7   :  { %7088 = vmatpush1.bf16.msra.mxu0 %v7087_v13  ;;  %7120 = vmatpush1.bf16.msra.mxu1 %v7119_v34  ;;  %v9673_v13 = vpack.c.bf16 %v3921_v56, %v3917_v59  ;;  %v3919_v34 = vld [vmem:[#allocation13 + $0x50] sm:$0xff]  ;;  %v3953_v59 = vld [vmem:[#allocation13 + $0x160] sm:$0xff]  ;;  %v9719_v56 = vpack.c.bf16 %v3956_v46, %v3952_v37 }
 0xfc8   :  { %7090 = vmatprep.subr.bf16.mxu0 %v7089_v58  ;;  %7122 = vmatprep.subr.bf16.mxu1 %v7121_v17  ;;  %v9676_v60 = vpack.c.bf16 %v3923_v35, %v3919_v34  ;;  %v3926_v58 = vld [vmem:[#allocation13 + $0x88] sm:$0xff]  ;;  %v9721_v34 = vpack.c.bf16 %v3953_v59, %v3949_v57  ;;  %v3951_v35 = vld [vmem:[#allocation13 + $0x150] sm:$0xff] }
 0xfc9   :  { %v3930_v17 = vld [vmem:[#allocation13 + $0xa8] sm:$0xff] }
 0xfca   :  { %v9681_v8 = vpack.c.bf16 %v3930_v17, %v3926_v58  ;;  %v3955_v58 = vld [vmem:[#allocation13 + $0x170] sm:$0xff] }
 0xfcb   :  { %7092 = vmatpush1.bf16.msra.mxu0 %v7091_v12  ;;  %7124 = vmatpush1.bf16.msra.mxu1 %v7123_v2  ;;  %v9685_v12 = vpack.c.bf16 %v3929_v9, %v3925_v47  ;;  %v3927_v2 = vld [vmem:[#allocation13 + $0x90] sm:$0xff]  ;;  %v9724_v17 = vpack.c.bf16 %v3955_v58, %v3951_v35  ;;  %v3960_v47 = vld [vmem:[#allocation13 + $0x198] sm:$0xff]  ;;  %v9729_v9 = vpack.c.bf16 %v3962_v61, %v3958_v6 }
 0xfcc   :  { %7094 = vmatprep.subr.bf16.mxu0 %v7093_v29  ;;  %7126 = vmatprep.subr.bf16.mxu1 %v7125_v41  ;;  %v9688_v26 = vpack.c.bf16 %v3931_v39, %v3927_v2  ;;  %v3934_v29 = vld [vmem:[#allocation13 + $0xc8] sm:$0xff]  ;;  %v3964_v2 = vld [vmem:[#allocation13 + $0x1b8] sm:$0xff]  ;;  %v3957_v39 = vld [vmem:[#allocation13 + $0x180] sm:$0xff] }
 0xfcd   :  { %v3938_v41 = vld [vmem:[#allocation13 + $0xe8] sm:$0xff] }
 0xfce   :  { %v9693_v4 = vpack.c.bf16 %v3938_v41, %v3934_v29  ;;  %v3961_v29 = vld [vmem:[#allocation13 + $0x1a0] sm:$0xff]  ;;  %v9731_v41 = vpack.c.bf16 %v3964_v2, %v3960_v47 }
 0xfcf   :  { %7096 = vmatpush1.bf16.msra.mxu0 %v7095_v42  ;;  %7128 = vmatpush1.bf16.msra.mxu1 %v7127_v19  ;;  %v9697_v42 = vpack.c.bf16 %v3937_v38, %v3933_v21  ;;  %v3935_v19 = vld [vmem:[#allocation13 + $0xd0] sm:$0xff]  ;;  %v9733_v54 = vpack.c.bf16 %v3961_v29, %v3957_v39 }
 0xfd0   :  { %7098 = vmatprep.subr.bf16.mxu0 %v7097_v62  ;;  %7130 = vmatprep.subr.bf16.mxu1 %v7129_v11  ;;  %v9700_v62 = vpack.c.bf16 %v3939_v50, %v3935_v19  ;;  %v3942_v11 = vld [vmem:[#allocation13 + $0x108] sm:$0xff]  ;;  %v3963_v21 = vld [vmem:[#allocation13 + $0x1b0] sm:$0xff] }
 0xfd1   :  { %v9705_v45 = vpack.c.bf16 %v3946_v23, %v3942_v11  ;;  %v9736_v38 = vpack.c.bf16 %v3963_v21, %v3959_v7  ;;  %v3966_v19 = vld [vmem:[#allocation13 + $0x1c8] sm:$0xff]  ;;  %v3968_v11 = vld [vmem:[#allocation13 + $0x1d8] sm:$0xff] }
 0xfd2   :  { %v3970_v50 = vld [vmem:[#allocation13 + $0x1e8] sm:$0xff] }
 0xfd3   :  { %7100 = vmatpush1.bf16.msra.mxu0 %v7099_v53  ;;  %7132 = vmatpush1.bf16.msra.mxu1 %v7131_v3  ;;  %v3948_v53 = vld [vmem:[#allocation13 + $0x138] sm:$0xff]  ;;  %v3941_v3 = vld [vmem:[#allocation13 + $0x100] sm:$0xff]  ;;  %v9741_v23 = vpack.c.bf16 %v3970_v50, %v3966_v19 }
 0xfd6   :  { %4068 = vmatmul.mubr.f32.vlgmr.msra.gmra.mrb[32].mxu0 %v9349_v18  ;;  %4181 = vmatmul.mubr.f32.vlgmr.msra.gmra.mrb[32].mxu1 %v9349_v18  ;;  %v3910_v18 = vld [vmem:[#allocation13 + $0x8] sm:$0xff] }
 0xfd7   :  { %4073 = vmatprep.mubr.f32.mxu0 %v8460_v0  ;;  %4186 = vmatprep.mubr.f32.mxu1 %v8460_v0 }
 0xfda   :  { %4074 = vmatmul.mubr.f32.gmra.mrb[34].mxu0 %v9395_v30  ;;  %4187 = vmatmul.mubr.f32.gmra.mrb[34].mxu1 %v9395_v30  ;;  %v3914_v30 = vld [vmem:[#allocation13 + $0x28] sm:$0xff] }
 0xfdb   :  { %4079 = vmatprep.mubr.f32.mxu0 %v8460_v0  ;;  %4192 = vmatprep.mubr.f32.mxu1 %v8460_v0 }
 0xfde   :  { %4080 = vmatmul.mubr.f32.gmra.mrb[36].mxu0 %v9441_v20  ;;  %4193 = vmatmul.mubr.f32.gmra.mrb[36].mxu1 %v9441_v20  ;;  %v3912_v20 = vld [vmem:[#allocation13 + $0x18] sm:$0xff] }
 0xfdf   :  { %4085 = vmatprep.mubr.f32.mxu0 %v8460_v0  ;;  %4198 = vmatprep.mubr.f32.mxu1 %v8460_v0 }
 0xfe2   :  { %4086 = vmatmul.mubr.f32.gmra.mrb[38].mxu0 %v9487_v32  ;;  %4199 = vmatmul.mubr.f32.gmra.mrb[38].mxu1 %v9487_v32  ;;  %v9657_v32 = vpack.c.bf16 %v3914_v30, %v3910_v18  ;;  %v3945_v18 = vld [vmem:[#allocation13 + $0x120] sm:$0xff]  ;;  %v9707_v30 = vpack.c.bf16 %v3948_v53, %v3944_v25  ;;  %v3972_v25 = vld [vmem:[#allocation13 + $0x1f8] sm:$0xff] }
 0xfe3   :  { %4091 = vmatprep.mubr.f32.mxu0 %v8460_v0  ;;  %4204 = vmatprep.mubr.f32.mxu1 %v8460_v0  ;;  %v3965_v53 = vld [vmem:[#allocation13 + $0x1c0] sm:$0xff] }
 0xfe4   :  { %7134 = vmatprep.subr.bf16.mxu0 %v9657_v32 }
 0xfe6   :  { %4092 = vmatmul.mubr.f32.gmra.mrb[40].mxu0 %v9533_v14  ;;  %4205 = vmatmul.mubr.f32.gmra.mrb[40].mxu1 %v9533_v14  ;;  %v3916_v14 = vld [vmem:[#allocation13 + $0x38] sm:$0xff] }
 0xfe7   :  { %4097 = vmatprep.mubr.f32.mxu0 %v8460_v0  ;;  %4210 = vmatprep.mubr.f32.mxu1 %v8460_v0  ;;  %v9659_v15 = vpack.c.bf16 %v3916_v14, %v3912_v20  ;;  %v9709_v20 = vpack.c.bf16 %v3945_v18, %v3941_v3  ;;  %v3943_v14 = vld [vmem:[#allocation13 + $0x110] sm:$0xff]  ;;  %v3969_v3 = vld [vmem:[#allocation13 + $0x1e0] sm:$0xff]  ;;  %v9743_v18 = vpack.c.bf16 %v3972_v25, %v3968_v11 }
 0xfe9   :  { %7166 = vmatprep.subr.bf16.mxu1 %v9659_v15 }
 0xfea   :  { %4098 = vmatmul.mubr.f32.gmra.mrb[42].mxu0 %v9579_v36  ;;  %4211 = vmatmul.mubr.f32.gmra.mrb[42].mxu1 %v9579_v36  ;;  %v3913_v36 = vld [vmem:[#allocation13 + $0x20] sm:$0xff] }
 0xfeb   :  { %4103 = vmatprep.mubr.f32.mxu0 %v8460_v0  ;;  %4216 = vmatprep.mubr.f32.mxu1 %v8460_v0  ;;  %v9661_v48 = vpack.c.bf16 %v3913_v36, %v3909_v27  ;;  %v3947_v27 = vld [vmem:[#allocation13 + $0x130] sm:$0xff] }
 0xfec   :  { %v9712_v36 = vpack.c.bf16 %v3947_v27, %v3943_v14  ;;  %v9745_v14 = vpack.c.bf16 %v3969_v3, %v3965_v53  ;;  %v3967_v27 = vld [vmem:[#allocation13 + $0x1d0] sm:$0xff] }
 0xfed   :  { %7136 = vmatpush1.bf16.msra.mxu0 %v9661_v48 }
 0xfee   :  { %4104 = vmatmul.mubr.f32.gmra.mrb[44].mxu0 %v9623_v10  ;;  %4217 = vmatmul.mubr.f32.gmra.mrb[44].mxu1 %v9623_v10  ;;  %v9664_v10 = vpack.c.bf16 %v3915_v24, %v3911_v33  ;;  %v3950_v33 = vld [vmem:[#allocation13 + $0x148] sm:$0xff] }
 0xfef   :  { %4109 = vmatprep.mubr.f32.mxu0 %v8460_v0  ;;  %4222 = vmatprep.mubr.f32.mxu1 %v8460_v0  ;;  %v3954_v24 = vld [vmem:[#allocation13 + $0x168] sm:$0xff] }
 0xff0   :  { %7168 = vmatpush1.bf16.msra.mxu1 %v9664_v10  ;;  %7138 = vmatprep.subr.bf16.mxu0 %v9669_v52  ;;  %v9717_v43 = vpack.c.bf16 %v3954_v24, %v3950_v33  ;;  %v3971_v33 = vld [vmem:[#allocation13 + $0x1f0] sm:$0xff] }
 0xff1   :  { %7170 = vmatprep.subr.bf16.mxu1 %v9671_v55  ;;  %7140 = vmatpush1.bf16.msra.mxu0 %v9673_v13  ;;  %v9748_v24 = vpack.c.bf16 %v3971_v33, %v3967_v27 }
 0xff2   :  { %7142 = vmatprep.subr.bf16.mxu0 %v9681_v8 }
 0xff4   :  { %7172 = vmatpush1.bf16.msra.mxu1 %v9676_v60 }
 0xff5   :  { %7174 = vmatprep.subr.bf16.mxu1 %v9683_v63  ;;  %7144 = vmatpush1.bf16.msra.mxu0 %v9685_v12 }
 0xff6   :  { %7146 = vmatprep.subr.bf16.mxu0 %v9693_v4 }
 0xff8   :  { %7176 = vmatpush1.bf16.msra.mxu1 %v9688_v26 }
 0xff9   :  { %7178 = vmatprep.subr.bf16.mxu1 %v9695_v28  ;;  %7148 = vmatpush1.bf16.msra.mxu0 %v9697_v42 }
 0xffa   :  { %7150 = vmatprep.subr.bf16.mxu0 %v9705_v45 }
 0xffc   :  { %7180 = vmatpush1.bf16.msra.mxu1 %v9700_v62 }
 0xffd   :  { %7182 = vmatprep.subr.bf16.mxu1 %v9707_v30  ;;  %7152 = vmatpush1.bf16.msra.mxu0 %v9709_v20 }
 0xffe   :  { %7154 = vmatprep.subr.bf16.mxu0 %v9717_v43 }
0x1000   :  { %7184 = vmatpush1.bf16.msra.mxu1 %v9712_v36 }
0x1001   :  { %7186 = vmatprep.subr.bf16.mxu1 %v9719_v56  ;;  %7156 = vmatpush1.bf16.msra.mxu0 %v9721_v34 }
0x1002   :  { %7158 = vmatprep.subr.bf16.mxu0 %v9729_v9 }
0x1004   :  { %7188 = vmatpush1.bf16.msra.mxu1 %v9724_v17 }
0x1005   :  { %7190 = vmatprep.subr.bf16.mxu1 %v9731_v41  ;;  %7160 = vmatpush1.bf16.msra.mxu0 %v9733_v54 }
0x1006   :  { %7162 = vmatprep.subr.bf16.mxu0 %v9741_v23 }
0x1008   :  { %7192 = vmatpush1.bf16.msra.mxu1 %v9736_v38 }
0x1009   :  { %7194 = vmatprep.subr.bf16.mxu1 %v9743_v18  ;;  %7164 = vmatpush1.bf16.msra.mxu0 %v9745_v14 }
0x100a   :  { %7198 = vmatprep.subr.bf16.mxu0 %v9657_v32 }
0x100c   :  { %7196 = vmatpush1.bf16.msra.mxu1 %v9748_v24 }
0x100d   :  { %7230 = vmatprep.subr.bf16.mxu1 %v9659_v15 }
0x1089   :  { %v3735_v37 = vpop.f32.mrb[30].mxu0  ;;  %v3806_v46 = vpop.f32.mrb[30].mxu1 }
0x108a   :  { %v7715_v57 = vadd.f32 %v3735_v37, %v9331_v49  ;;  %v3737_v59 = vpop.f32.mrb[31].mxu0  ;;  %v3808_v35 = vpop.f32.mrb[31].mxu1  ;;  %v7731_v47 = vadd.f32 %v3806_v46, %v9339_v40 }
0x108b   :  { %v7716_v58 = vadd.f32 %v3737_v59, %v9334_v51  ;;  %v7732_v2 = vadd.f32 %v3808_v35, %v9342_v44 }
0x108c   :  { %v5901_v6 = vmul.f32 -1.442695, %v7715_v57  ;;  %v5903_v39 = vmul.f32 -1.442695, %v7731_v47 }
0x108d   :  { %v5902_v61 = vmul.f32 -1.442695, %v7716_v58 }
0x108e   :  { %8118 = vpow2.f32 %v5901_v6 }
0x108f   :  { %8120 = vpow2.f32 %v5902_v61 }
0x1090   :  { %8122 = vtanh.f32 %v7732_v2 }
0x1091   :  { %8124 = vpow2.f32 %v5903_v39 }
0x1098   :  { %v8119_v29 = vpop.eup %8118 }
0x1099   :  { %v3824_v7 = vadd.f32 1.0, %v8119_v29  ;;  %v8121_v21 = vpop.eup %8120 }
0x109a   :  { %v3825_v49 = vadd.f32 1.0, %v8121_v21  ;;  %v8123_v19 = vpop.eup %8122 }
0x109b   :  { %8126 = vrcp.f32 %v3824_v7  ;;  %v8125_v50 = vpop.eup %8124 }
0x109c   :  { %8128 = vrcp.f32 %v3825_v49  ;;  %v3826_v53 = vadd.f32 1.0, %v8125_v50 }
0x109e   :  { %8130 = vrcp.f32 %v3826_v53 }
0x10a5   :  { %v8127_v51 = vpop.eup %8126 }
0x10a6   :  { %v3836_v11 = vmul.f32 %v8127_v51, %v8123_v19  ;;  %v8129_v25 = vpop.eup %8128 }
0x10a7   :  { %v3835_v3 = vmul.f32 %v8129_v25, %v9620_v22  ;;  %v3973_v22 = vld [vmem:[%s10115_s9] sm:$0xf]  ;;  %s8463_s9 = smov [#allocation16]  }
0x10a8   :  { %v8131_v44 = vpop.eup %8130  ;;  %v9802_v37 = vrot.slane %v3973_v22, %v8848_v1  ;;  %v9805_v46 = vrot.slane %v3973_v22, %v8853_v5  ;;  %v9810_v39 = vrot.slane %v3973_v22, %v8862_v16  ;;  %v9813_v1 = vrot.slane %v3973_v22, %v8865_v31  ;;  %s5793_s15 = sshll.u32 %s8463_s9, 4  ;;  %s5794_s15 = int_to_ptr.vmem [resolvable:$true] %s5793_s15 }
0x10a9   :  { %v3837_v40 = vadd.f32 %v3836_v11, %v3835_v3  ;;  %s8394_s16 = scalar_lea.vmem %s5794_s15, 1024  ;;  %p8399_p7 = scmp.lt.s32.totalorder %s5794_s15, %s5794_s15 }
0x10aa   :  { %p8395_p6 = scmp.ne.s32.totalorder %s5794_s15, %s8394_s16  ;;  %p8400_p8 = scmp.lt.s32.totalorder %s8394_s16, %s8394_s16 }
0x10ab   :  { %8132 = vtanh.f32 %v3837_v40 }
0x10ac   :  { %p8401_p9 = por %p8400_p8, %p8399_p7 }
0x10ae   :  { %p8402_p10 = pnand %p8401_p9, %p8395_p6 }
0x10b5   :  { %v8133_v27 = vpop.eup %8132 }
0x10b6   :  { %v3839_v33 = vmul.f32 %v8133_v27, %v8131_v44 }
0x10b8   :  { %4110 = vmatmul.mubr.f32.gmra.mrb[46].mxu0 %v3839_v33  ;;  %4223 = vmatmul.mubr.f32.gmra.mrb[46].mxu1 %v3839_v33 }
0x10b9   :  { %4330 = vmatprep.mubr.f32.mxu0 %v8460_v0  ;;  %4401 = vmatprep.mubr.f32.mxu1 %v8460_v0 }
0x10bc   :  { %4331 = vmatmul.mubr.f32.vlgmr.msra.gmra.mrb[32].mxu0 %v8460_v0  ;;  %4402 = vmatmul.mubr.f32.vlgmr.msra.gmra.mrb[32].mxu1 %v8460_v0 }
0x10bd   :  { %7200 = vmatpush1.bf16.msra.mxu0 %v9661_v48  ;;  %7232 = vmatpush1.bf16.msra.mxu1 %v9664_v10 }
0x10be   :  { %7202 = vmatprep.subr.bf16.mxu0 %v9669_v52  ;;  %7234 = vmatprep.subr.bf16.mxu1 %v9671_v55 }
0x10bf   :  { %4509 = vmatprep.mubr.f32.mxu0 %v8460_v0  ;;  %4580 = vmatprep.mubr.f32.mxu1 %v8460_v0 }
0x10c1   :  { %7204 = vmatpush1.bf16.msra.mxu0 %v9673_v13  ;;  %7236 = vmatpush1.bf16.msra.mxu1 %v9676_v60 }
0x10c2   :  { %7206 = vmatprep.subr.bf16.mxu0 %v9681_v8  ;;  %7238 = vmatprep.subr.bf16.mxu1 %v9683_v63 }
0x10c5   :  { %7208 = vmatpush1.bf16.msra.mxu0 %v9685_v12  ;;  %7240 = vmatpush1.bf16.msra.mxu1 %v9688_v26 }
0x10c6   :  { %7210 = vmatprep.subr.bf16.mxu0 %v9693_v4  ;;  %7242 = vmatprep.subr.bf16.mxu1 %v9695_v28 }
0x10c9   :  { %7212 = vmatpush1.bf16.msra.mxu0 %v9697_v42  ;;  %7244 = vmatpush1.bf16.msra.mxu1 %v9700_v62 }
0x10ca   :  { %7214 = vmatprep.subr.bf16.mxu0 %v9705_v45  ;;  %7246 = vmatprep.subr.bf16.mxu1 %v9707_v30 }
0x10cd   :  { %7216 = vmatpush1.bf16.msra.mxu0 %v9709_v20  ;;  %7248 = vmatpush1.bf16.msra.mxu1 %v9712_v36 }
0x10ce   :  { %7218 = vmatprep.subr.bf16.mxu0 %v9717_v43  ;;  %7250 = vmatprep.subr.bf16.mxu1 %v9719_v56 }
0x10d1   :  { %7220 = vmatpush1.bf16.msra.mxu0 %v9721_v34  ;;  %7252 = vmatpush1.bf16.msra.mxu1 %v9724_v17 }
0x10d2   :  { %7222 = vmatprep.subr.bf16.mxu0 %v9729_v9  ;;  %7254 = vmatprep.subr.bf16.mxu1 %v9731_v41 }
0x10d5   :  { %7224 = vmatpush1.bf16.msra.mxu0 %v9733_v54  ;;  %7256 = vmatpush1.bf16.msra.mxu1 %v9736_v38 }
0x10d6   :  { %7226 = vmatprep.subr.bf16.mxu0 %v9741_v23  ;;  %7258 = vmatprep.subr.bf16.mxu1 %v9743_v18 }
0x10d9   :  { %7228 = vmatpush1.bf16.msra.mxu0 %v9745_v14  ;;  %7260 = vmatpush1.bf16.msra.mxu1 %v9748_v24 }
0x10da   :  { %7262 = vmatprep.subr.bf16.mxu0 %v9657_v32  ;;  %7294 = vmatprep.subr.bf16.mxu1 %v9659_v15 }
0x118f   :  { %v4332_v57 = vpop.f32.mrb[32].mxu0  ;;  %v4403_v59 = vpop.f32.mrb[32].mxu1 }
0x1190   :  { %v7733_v35 = vadd.f32 %v4332_v57, %v9802_v37  ;;  %v4334_v58 = vpop.f32.mrb[33].mxu0  ;;  %v4405_v6 = vpop.f32.mrb[33].mxu1  ;;  %v7749_v5 = vadd.f32 %v4403_v59, %v9810_v39 }
0x1191   :  { %v7734_v61 = vadd.f32 %v4334_v58, %v9805_v46  ;;  %v7750_v29 = vadd.f32 %v4405_v6, %v9813_v1 }
0x1192   :  { %v5904_v47 = vmul.f32 -1.442695, %v7733_v35  ;;  %v5906_v7 = vmul.f32 -1.442695, %v7749_v5 }
0x1193   :  { %v5905_v2 = vmul.f32 -1.442695, %v7734_v61 }
0x1194   :  { %8134 = vpow2.f32 %v5904_v47 }
0x1195   :  { %8136 = vpow2.f32 %v5905_v2 }
0x1196   :  { %8138 = vtanh.f32 %v7750_v29 }
0x1197   :  { %8140 = vpow2.f32 %v5906_v7 }
0x119e   :  { %v8135_v21 = vpop.eup %8134 }
0x119f   :  { %v4421_v49 = vadd.f32 1.0, %v8135_v21  ;;  %v8137_v19 = vpop.eup %8136 }
0x11a0   :  { %v4422_v50 = vadd.f32 1.0, %v8137_v19  ;;  %v8139_v51 = vpop.eup %8138 }
0x11a1   :  { %8142 = vrcp.f32 %v4421_v49  ;;  %v8141_v16 = vpop.eup %8140 }
0x11a2   :  { %8144 = vrcp.f32 %v4422_v50  ;;  %v4423_v31 = vadd.f32 1.0, %v8141_v16 }
0x11a4   :  { %8146 = vrcp.f32 %v4423_v31 }
0x11ab   :  { %v8143_v11 = vpop.eup %8142 }
0x11ac   :  { %v4433_v25 = vmul.f32 %v8143_v11, %v8139_v51  ;;  %v8145_v53 = vpop.eup %8144 }
0x11ad   :  { %v4432_v3 = vmul.f32 0.0, %v8145_v53 }
0x11ae   :  { %v8147_v44 = vpop.eup %8146 }
0x11af   :  { %v9817_v40 = vadd.f32 %v4433_v25, %v4432_v3 }
0x11b1   :  { %8148 = vtanh.f32 %v9817_v40 }
0x11bb   :  { %v8149_v27 = vpop.eup %8148 }
0x11bc   :  { %v4436_v33 = vmul.f32 %v8149_v27, %v8147_v44 }
0x11be   :  { %4439 = vst [vmem:[#allocation16] sm:$0xff] %v4436_v33  ;;  %4510 = vmatmul.mubr.f32.vlgmr.msra.gmra.mrb[34].mxu0 %v4436_v33  ;;  %4581 = vmatmul.mubr.f32.vlgmr.msra.gmra.mrb[34].mxu1 %v4436_v33 }
0x11bf   :  { %7264 = vmatpush1.bf16.msra.mxu0 %v9661_v48  ;;  %7296 = vmatpush1.bf16.msra.mxu1 %v9664_v10 }
0x11c0   :  { %7266 = vmatprep.subr.bf16.mxu0 %v9669_v52  ;;  %7298 = vmatprep.subr.bf16.mxu1 %v9671_v55 }
0x11c1   :  { %4688 = vmatprep.mubr.f32.mxu0 %v8460_v0  ;;  %4759 = vmatprep.mubr.f32.mxu1 %v8460_v0 }
0x11c3   :  { %7268 = vmatpush1.bf16.msra.mxu0 %v9673_v13  ;;  %7300 = vmatpush1.bf16.msra.mxu1 %v9676_v60 }
0x11c4   :  { %7270 = vmatprep.subr.bf16.mxu0 %v9681_v8  ;;  %7302 = vmatprep.subr.bf16.mxu1 %v9683_v63 }
0x11c7   :  { %7272 = vmatpush1.bf16.msra.mxu0 %v9685_v12  ;;  %7304 = vmatpush1.bf16.msra.mxu1 %v9688_v26 }
0x11c8   :  { %7274 = vmatprep.subr.bf16.mxu0 %v9693_v4  ;;  %7306 = vmatprep.subr.bf16.mxu1 %v9695_v28 }
0x11cb   :  { %7276 = vmatpush1.bf16.msra.mxu0 %v9697_v42  ;;  %7308 = vmatpush1.bf16.msra.mxu1 %v9700_v62 }
0x11cc   :  { %7278 = vmatprep.subr.bf16.mxu0 %v9705_v45  ;;  %7310 = vmatprep.subr.bf16.mxu1 %v9707_v30 }
0x11cf   :  { %7280 = vmatpush1.bf16.msra.mxu0 %v9709_v20  ;;  %7312 = vmatpush1.bf16.msra.mxu1 %v9712_v36 }
0x11d0   :  { %7282 = vmatprep.subr.bf16.mxu0 %v9717_v43  ;;  %7314 = vmatprep.subr.bf16.mxu1 %v9719_v56 }
0x11d3   :  { %7284 = vmatpush1.bf16.msra.mxu0 %v9721_v34  ;;  %7316 = vmatpush1.bf16.msra.mxu1 %v9724_v17 }
0x11d4   :  { %7286 = vmatprep.subr.bf16.mxu0 %v9729_v9  ;;  %7318 = vmatprep.subr.bf16.mxu1 %v9731_v41 }
0x11d7   :  { %7288 = vmatpush1.bf16.msra.mxu0 %v9733_v54  ;;  %7320 = vmatpush1.bf16.msra.mxu1 %v9736_v38 }
0x11d8   :  { %7290 = vmatprep.subr.bf16.mxu0 %v9741_v23  ;;  %7322 = vmatprep.subr.bf16.mxu1 %v9743_v18 }
0x11db   :  { %7292 = vmatpush1.bf16.msra.mxu0 %v9745_v14  ;;  %7324 = vmatpush1.bf16.msra.mxu1 %v9748_v24 }
0x11dc   :  { %7326 = vmatprep.subr.bf16.mxu0 %v9657_v32  ;;  %7358 = vmatprep.subr.bf16.mxu1 %v9659_v15 }
0x1291   :  { %v4511_v22 = vpop.f32.mrb[34].mxu0  ;;  %v4582_v57 = vpop.f32.mrb[34].mxu1 }
0x1292   :  { %v7735_v59 = vadd.f32 %v4511_v22, %v9802_v37  ;;  %v4513_v35 = vpop.f32.mrb[35].mxu0  ;;  %v4584_v58 = vpop.f32.mrb[35].mxu1  ;;  %v7751_v2 = vadd.f32 %v4582_v57, %v9810_v39 }
0x1293   :  { %v7736_v6 = vadd.f32 %v4513_v35, %v9805_v46  ;;  %v7752_v5 = vadd.f32 %v4584_v58, %v9813_v1 }
0x1294   :  { %v5907_v61 = vmul.f32 -1.442695, %v7735_v59  ;;  %v5909_v29 = vmul.f32 -1.442695, %v7751_v2 }
0x1295   :  { %v5908_v47 = vmul.f32 -1.442695, %v7736_v6 }
0x1296   :  { %8150 = vpow2.f32 %v5907_v61 }
0x1297   :  { %8152 = vpow2.f32 %v5908_v47 }
0x1298   :  { %8154 = vtanh.f32 %v7752_v5 }
0x1299   :  { %8156 = vpow2.f32 %v5909_v29 }
0x12a0   :  { %v8151_v7 = vpop.eup %8150 }
0x12a1   :  { %v4600_v21 = vadd.f32 1.0, %v8151_v7  ;;  %v8153_v49 = vpop.eup %8152 }
0x12a2   :  { %v4601_v19 = vadd.f32 1.0, %v8153_v49  ;;  %v8155_v50 = vpop.eup %8154 }
0x12a3   :  { %8158 = vrcp.f32 %v4600_v21  ;;  %v8157_v51 = vpop.eup %8156 }
0x12a4   :  { %8160 = vrcp.f32 %v4601_v19  ;;  %v4602_v53 = vadd.f32 1.0, %v8157_v51 }
0x12a6   :  { %8162 = vrcp.f32 %v4602_v53 }
0x12ad   :  { %v8159_v16 = vpop.eup %8158 }
0x12ae   :  { %v4612_v11 = vmul.f32 %v8159_v16, %v8155_v50  ;;  %v8161_v25 = vpop.eup %8160 }
0x12af   :  { %v4611_v31 = vmul.f32 %v8161_v25, %v9817_v40 }
0x12b0   :  { %v8163_v44 = vpop.eup %8162 }
0x12b1   :  { %v9859_v3 = vadd.f32 %v4612_v11, %v4611_v31 }
0x12b3   :  { %8164 = vtanh.f32 %v9859_v3 }
0x12bd   :  { %v8165_v27 = vpop.eup %8164 }
0x12be   :  { %v4615_v33 = vmul.f32 %v8165_v27, %v8163_v44 }
0x12c0   :  { %4618 = vst [vmem:[#allocation16 + $0x8] sm:$0xff] %v4615_v33  ;;  %4689 = vmatmul.mubr.f32.vlgmr.msra.gmra.mrb[36].mxu0 %v4615_v33  ;;  %4760 = vmatmul.mubr.f32.vlgmr.msra.gmra.mrb[36].mxu1 %v4615_v33 }
0x12c1   :  { %7328 = vmatpush1.bf16.msra.mxu0 %v9661_v48  ;;  %7360 = vmatpush1.bf16.msra.mxu1 %v9664_v10 }
0x12c2   :  { %7330 = vmatprep.subr.bf16.mxu0 %v9669_v52  ;;  %7362 = vmatprep.subr.bf16.mxu1 %v9671_v55 }
0x12c3   :  { %4867 = vmatprep.mubr.f32.mxu0 %v8460_v0  ;;  %4938 = vmatprep.mubr.f32.mxu1 %v8460_v0 }
0x12c5   :  { %7332 = vmatpush1.bf16.msra.mxu0 %v9673_v13  ;;  %7364 = vmatpush1.bf16.msra.mxu1 %v9676_v60 }
0x12c6   :  { %7334 = vmatprep.subr.bf16.mxu0 %v9681_v8  ;;  %7366 = vmatprep.subr.bf16.mxu1 %v9683_v63 }
0x12c9   :  { %7336 = vmatpush1.bf16.msra.mxu0 %v9685_v12  ;;  %7368 = vmatpush1.bf16.msra.mxu1 %v9688_v26 }
0x12ca   :  { %7338 = vmatprep.subr.bf16.mxu0 %v9693_v4  ;;  %7370 = vmatprep.subr.bf16.mxu1 %v9695_v28 }
0x12cd   :  { %7340 = vmatpush1.bf16.msra.mxu0 %v9697_v42  ;;  %7372 = vmatpush1.bf16.msra.mxu1 %v9700_v62 }
0x12ce   :  { %7342 = vmatprep.subr.bf16.mxu0 %v9705_v45  ;;  %7374 = vmatprep.subr.bf16.mxu1 %v9707_v30 }
0x12d1   :  { %7344 = vmatpush1.bf16.msra.mxu0 %v9709_v20  ;;  %7376 = vmatpush1.bf16.msra.mxu1 %v9712_v36 }
0x12d2   :  { %7346 = vmatprep.subr.bf16.mxu0 %v9717_v43  ;;  %7378 = vmatprep.subr.bf16.mxu1 %v9719_v56 }
0x12d5   :  { %7348 = vmatpush1.bf16.msra.mxu0 %v9721_v34  ;;  %7380 = vmatpush1.bf16.msra.mxu1 %v9724_v17 }
0x12d6   :  { %7350 = vmatprep.subr.bf16.mxu0 %v9729_v9  ;;  %7382 = vmatprep.subr.bf16.mxu1 %v9731_v41 }
0x12d9   :  { %7352 = vmatpush1.bf16.msra.mxu0 %v9733_v54  ;;  %7384 = vmatpush1.bf16.msra.mxu1 %v9736_v38 }
0x12da   :  { %7354 = vmatprep.subr.bf16.mxu0 %v9741_v23  ;;  %7386 = vmatprep.subr.bf16.mxu1 %v9743_v18 }
0x12dd   :  { %7356 = vmatpush1.bf16.msra.mxu0 %v9745_v14  ;;  %7388 = vmatpush1.bf16.msra.mxu1 %v9748_v24 }
0x12de   :  { %7390 = vmatprep.subr.bf16.mxu0 %v9657_v32  ;;  %7422 = vmatprep.subr.bf16.mxu1 %v9659_v15 }
0x1393   :  { %v4690_v40 = vpop.f32.mrb[36].mxu0  ;;  %v4761_v22 = vpop.f32.mrb[36].mxu1 }
0x1394   :  { %v7737_v57 = vadd.f32 %v4690_v40, %v9802_v37  ;;  %v4692_v59 = vpop.f32.mrb[37].mxu0  ;;  %v4763_v35 = vpop.f32.mrb[37].mxu1  ;;  %v7753_v47 = vadd.f32 %v4761_v22, %v9810_v39 }
0x1395   :  { %v7738_v58 = vadd.f32 %v4692_v59, %v9805_v46  ;;  %v7754_v2 = vadd.f32 %v4763_v35, %v9813_v1 }
0x1396   :  { %v5910_v6 = vmul.f32 -1.442695, %v7737_v57  ;;  %v5912_v5 = vmul.f32 -1.442695, %v7753_v47 }
0x1397   :  { %v5911_v61 = vmul.f32 -1.442695, %v7738_v58 }
0x1398   :  { %8166 = vpow2.f32 %v5910_v6 }
0x1399   :  { %8168 = vpow2.f32 %v5911_v61 }
0x139a   :  { %8170 = vtanh.f32 %v7754_v2 }
0x139b   :  { %8172 = vpow2.f32 %v5912_v5 }
0x13a2   :  { %v8167_v29 = vpop.eup %8166 }
0x13a3   :  { %v4779_v7 = vadd.f32 1.0, %v8167_v29  ;;  %v8169_v21 = vpop.eup %8168 }
0x13a4   :  { %v4780_v49 = vadd.f32 1.0, %v8169_v21  ;;  %v8171_v19 = vpop.eup %8170 }
0x13a5   :  { %8174 = vrcp.f32 %v4779_v7  ;;  %v8173_v50 = vpop.eup %8172 }
0x13a6   :  { %8176 = vrcp.f32 %v4780_v49  ;;  %v4781_v25 = vadd.f32 1.0, %v8173_v50 }
0x13a8   :  { %8178 = vrcp.f32 %v4781_v25 }
0x13af   :  { %v8175_v51 = vpop.eup %8174 }
0x13b0   :  { %v4791_v16 = vmul.f32 %v8175_v51, %v8171_v19  ;;  %v8177_v11 = vpop.eup %8176 }
0x13b1   :  { %v4790_v53 = vmul.f32 %v8177_v11, %v9859_v3 }
0x13b2   :  { %v8179_v44 = vpop.eup %8178 }
0x13b3   :  { %v9901_v31 = vadd.f32 %v4791_v16, %v4790_v53 }
0x13b5   :  { %8180 = vtanh.f32 %v9901_v31 }
0x13bf   :  { %v8181_v27 = vpop.eup %8180 }
0x13c0   :  { %v4794_v33 = vmul.f32 %v8181_v27, %v8179_v44 }
0x13c2   :  { %4797 = vst [vmem:[#allocation16 + $0x10] sm:$0xff] %v4794_v33  ;;  %4868 = vmatmul.mubr.f32.vlgmr.msra.gmra.mrb[38].mxu0 %v4794_v33  ;;  %4939 = vmatmul.mubr.f32.vlgmr.msra.gmra.mrb[38].mxu1 %v4794_v33 }
0x13c3   :  { %7392 = vmatpush1.bf16.msra.mxu0 %v9661_v48  ;;  %7424 = vmatpush1.bf16.msra.mxu1 %v9664_v10 }
0x13c4   :  { %7394 = vmatprep.subr.bf16.mxu0 %v9669_v52  ;;  %7426 = vmatprep.subr.bf16.mxu1 %v9671_v55 }
0x13c5   :  { %5046 = vmatprep.mubr.f32.mxu0 %v8460_v0  ;;  %5117 = vmatprep.mubr.f32.mxu1 %v8460_v0 }
0x13c7   :  { %7396 = vmatpush1.bf16.msra.mxu0 %v9673_v13  ;;  %7428 = vmatpush1.bf16.msra.mxu1 %v9676_v60 }
0x13c8   :  { %7398 = vmatprep.subr.bf16.mxu0 %v9681_v8  ;;  %7430 = vmatprep.subr.bf16.mxu1 %v9683_v63 }
0x13cb   :  { %7400 = vmatpush1.bf16.msra.mxu0 %v9685_v12  ;;  %7432 = vmatpush1.bf16.msra.mxu1 %v9688_v26 }
0x13cc   :  { %7402 = vmatprep.subr.bf16.mxu0 %v9693_v4  ;;  %7434 = vmatprep.subr.bf16.mxu1 %v9695_v28 }
0x13cf   :  { %7404 = vmatpush1.bf16.msra.mxu0 %v9697_v42  ;;  %7436 = vmatpush1.bf16.msra.mxu1 %v9700_v62 }
0x13d0   :  { %7406 = vmatprep.subr.bf16.mxu0 %v9705_v45  ;;  %7438 = vmatprep.subr.bf16.mxu1 %v9707_v30 }
0x13d3   :  { %7408 = vmatpush1.bf16.msra.mxu0 %v9709_v20  ;;  %7440 = vmatpush1.bf16.msra.mxu1 %v9712_v36 }
0x13d4   :  { %7410 = vmatprep.subr.bf16.mxu0 %v9717_v43  ;;  %7442 = vmatprep.subr.bf16.mxu1 %v9719_v56 }
0x13d7   :  { %7412 = vmatpush1.bf16.msra.mxu0 %v9721_v34  ;;  %7444 = vmatpush1.bf16.msra.mxu1 %v9724_v17 }
0x13d8   :  { %7414 = vmatprep.subr.bf16.mxu0 %v9729_v9  ;;  %7446 = vmatprep.subr.bf16.mxu1 %v9731_v41 }
0x13db   :  { %7416 = vmatpush1.bf16.msra.mxu0 %v9733_v54  ;;  %7448 = vmatpush1.bf16.msra.mxu1 %v9736_v38 }
0x13dc   :  { %7418 = vmatprep.subr.bf16.mxu0 %v9741_v23  ;;  %7450 = vmatprep.subr.bf16.mxu1 %v9743_v18 }
0x13df   :  { %7420 = vmatpush1.bf16.msra.mxu0 %v9745_v14  ;;  %7452 = vmatpush1.bf16.msra.mxu1 %v9748_v24 }
0x13e0   :  { %7454 = vmatprep.subr.bf16.mxu0 %v9657_v32  ;;  %7486 = vmatprep.subr.bf16.mxu1 %v9659_v15 }
0x1495   :  { %v4869_v3 = vpop.f32.mrb[38].mxu0  ;;  %v4940_v40 = vpop.f32.mrb[38].mxu1 }
0x1496   :  { %v7739_v22 = vadd.f32 %v4869_v3, %v9802_v37  ;;  %v4871_v57 = vpop.f32.mrb[39].mxu0  ;;  %v4942_v59 = vpop.f32.mrb[39].mxu1  ;;  %v7755_v61 = vadd.f32 %v4940_v40, %v9810_v39 }
0x1497   :  { %v7740_v35 = vadd.f32 %v4871_v57, %v9805_v46  ;;  %v7756_v47 = vadd.f32 %v4942_v59, %v9813_v1 }
0x1498   :  { %v5913_v58 = vmul.f32 -1.442695, %v7739_v22  ;;  %v5915_v2 = vmul.f32 -1.442695, %v7755_v61 }
0x1499   :  { %v5914_v6 = vmul.f32 -1.442695, %v7740_v35 }
0x149a   :  { %8182 = vpow2.f32 %v5913_v58 }
0x149b   :  { %8184 = vpow2.f32 %v5914_v6 }
0x149c   :  { %8186 = vtanh.f32 %v7756_v47 }
0x149d   :  { %8188 = vpow2.f32 %v5915_v2 }
0x14a4   :  { %v8183_v5 = vpop.eup %8182 }
0x14a5   :  { %v4958_v29 = vadd.f32 1.0, %v8183_v5  ;;  %v8185_v7 = vpop.eup %8184 }
0x14a6   :  { %v4959_v21 = vadd.f32 1.0, %v8185_v7  ;;  %v8187_v49 = vpop.eup %8186 }
0x14a7   :  { %8190 = vrcp.f32 %v4958_v29  ;;  %v8189_v19 = vpop.eup %8188 }
0x14a8   :  { %8192 = vrcp.f32 %v4959_v21  ;;  %v4960_v11 = vadd.f32 1.0, %v8189_v19 }
0x14aa   :  { %8194 = vrcp.f32 %v4960_v11 }
0x14b1   :  { %v8191_v50 = vpop.eup %8190 }
0x14b2   :  { %v4970_v51 = vmul.f32 %v8191_v50, %v8187_v49  ;;  %v8193_v16 = vpop.eup %8192 }
0x14b3   :  { %v4969_v25 = vmul.f32 %v8193_v16, %v9901_v31 }
0x14b4   :  { %v8195_v44 = vpop.eup %8194 }
0x14b5   :  { %v9943_v53 = vadd.f32 %v4970_v51, %v4969_v25 }
0x14b7   :  { %8196 = vtanh.f32 %v9943_v53 }
0x14c1   :  { %v8197_v27 = vpop.eup %8196 }
0x14c2   :  { %v4973_v33 = vmul.f32 %v8197_v27, %v8195_v44 }
0x14c4   :  { %4976 = vst [vmem:[#allocation16 + $0x18] sm:$0xff] %v4973_v33  ;;  %5047 = vmatmul.mubr.f32.vlgmr.msra.gmra.mrb[40].mxu0 %v4973_v33  ;;  %5118 = vmatmul.mubr.f32.vlgmr.msra.gmra.mrb[40].mxu1 %v4973_v33 }
0x14c5   :  { %7456 = vmatpush1.bf16.msra.mxu0 %v9661_v48  ;;  %7488 = vmatpush1.bf16.msra.mxu1 %v9664_v10 }
0x14c6   :  { %7458 = vmatprep.subr.bf16.mxu0 %v9669_v52  ;;  %7490 = vmatprep.subr.bf16.mxu1 %v9671_v55 }
0x14c7   :  { %5225 = vmatprep.mubr.f32.mxu0 %v8460_v0  ;;  %5296 = vmatprep.mubr.f32.mxu1 %v8460_v0 }
0x14c9   :  { %7460 = vmatpush1.bf16.msra.mxu0 %v9673_v13  ;;  %7492 = vmatpush1.bf16.msra.mxu1 %v9676_v60 }
0x14ca   :  { %7462 = vmatprep.subr.bf16.mxu0 %v9681_v8  ;;  %7494 = vmatprep.subr.bf16.mxu1 %v9683_v63 }
0x14cd   :  { %7464 = vmatpush1.bf16.msra.mxu0 %v9685_v12  ;;  %7496 = vmatpush1.bf16.msra.mxu1 %v9688_v26 }
0x14ce   :  { %7466 = vmatprep.subr.bf16.mxu0 %v9693_v4  ;;  %7498 = vmatprep.subr.bf16.mxu1 %v9695_v28 }
0x14d1   :  { %7468 = vmatpush1.bf16.msra.mxu0 %v9697_v42  ;;  %7500 = vmatpush1.bf16.msra.mxu1 %v9700_v62 }
0x14d2   :  { %7470 = vmatprep.subr.bf16.mxu0 %v9705_v45  ;;  %7502 = vmatprep.subr.bf16.mxu1 %v9707_v30 }
0x14d5   :  { %7472 = vmatpush1.bf16.msra.mxu0 %v9709_v20  ;;  %7504 = vmatpush1.bf16.msra.mxu1 %v9712_v36 }
0x14d6   :  { %7474 = vmatprep.subr.bf16.mxu0 %v9717_v43  ;;  %7506 = vmatprep.subr.bf16.mxu1 %v9719_v56 }
0x14d9   :  { %7476 = vmatpush1.bf16.msra.mxu0 %v9721_v34  ;;  %7508 = vmatpush1.bf16.msra.mxu1 %v9724_v17 }
0x14da   :  { %7478 = vmatprep.subr.bf16.mxu0 %v9729_v9  ;;  %7510 = vmatprep.subr.bf16.mxu1 %v9731_v41 }
0x14dd   :  { %7480 = vmatpush1.bf16.msra.mxu0 %v9733_v54  ;;  %7512 = vmatpush1.bf16.msra.mxu1 %v9736_v38 }
0x14de   :  { %7482 = vmatprep.subr.bf16.mxu0 %v9741_v23  ;;  %7514 = vmatprep.subr.bf16.mxu1 %v9743_v18 }
0x14e1   :  { %7484 = vmatpush1.bf16.msra.mxu0 %v9745_v14  ;;  %7516 = vmatpush1.bf16.msra.mxu1 %v9748_v24 }
0x14e2   :  { %7518 = vmatprep.subr.bf16.mxu0 %v9657_v32  ;;  %7550 = vmatprep.subr.bf16.mxu1 %v9659_v15 }
0x1597   :  { %v5048_v31 = vpop.f32.mrb[40].mxu0  ;;  %v5119_v3 = vpop.f32.mrb[40].mxu1 }
0x1598   :  { %v7741_v40 = vadd.f32 %v5048_v31, %v9802_v37  ;;  %v5050_v22 = vpop.f32.mrb[41].mxu0  ;;  %v5121_v57 = vpop.f32.mrb[41].mxu1  ;;  %v7757_v6 = vadd.f32 %v5119_v3, %v9810_v39 }
0x1599   :  { %v7742_v59 = vadd.f32 %v5050_v22, %v9805_v46  ;;  %v7758_v61 = vadd.f32 %v5121_v57, %v9813_v1 }
0x159a   :  { %v5916_v35 = vmul.f32 -1.442695, %v7741_v40  ;;  %v5918_v47 = vmul.f32 -1.442695, %v7757_v6 }
0x159b   :  { %v5917_v58 = vmul.f32 -1.442695, %v7742_v59 }
0x159c   :  { %8198 = vpow2.f32 %v5916_v35 }
0x159d   :  { %8200 = vpow2.f32 %v5917_v58 }
0x159e   :  { %8202 = vtanh.f32 %v7758_v61 }
0x159f   :  { %8204 = vpow2.f32 %v5918_v47 }
0x15a6   :  { %v8199_v2 = vpop.eup %8198 }
0x15a7   :  { %v5137_v5 = vadd.f32 1.0, %v8199_v2  ;;  %v8201_v29 = vpop.eup %8200 }
0x15a8   :  { %v5138_v7 = vadd.f32 1.0, %v8201_v29  ;;  %v8203_v21 = vpop.eup %8202 }
0x15a9   :  { %8206 = vrcp.f32 %v5137_v5  ;;  %v8205_v49 = vpop.eup %8204 }
0x15aa   :  { %8208 = vrcp.f32 %v5138_v7  ;;  %v5139_v16 = vadd.f32 1.0, %v8205_v49 }
0x15ac   :  { %8210 = vrcp.f32 %v5139_v16 }
0x15b3   :  { %v8207_v19 = vpop.eup %8206 }
0x15b4   :  { %v5149_v50 = vmul.f32 %v8207_v19, %v8203_v21  ;;  %v8209_v51 = vpop.eup %8208 }
0x15b5   :  { %v5148_v11 = vmul.f32 %v8209_v51, %v9943_v53 }
0x15b6   :  { %v8211_v44 = vpop.eup %8210 }
0x15b7   :  { %v9985_v25 = vadd.f32 %v5149_v50, %v5148_v11 }
0x15b9   :  { %8212 = vtanh.f32 %v9985_v25 }
0x15c3   :  { %v8213_v27 = vpop.eup %8212 }
0x15c4   :  { %v5152_v33 = vmul.f32 %v8213_v27, %v8211_v44  ;;  %v5697_v27 = vld [vmem:[#allocation14 + $0x18] sm:$0xff] }
0x15c6   :  { %5155 = vst [vmem:[#allocation16 + $0x20] sm:$0xff] %v5152_v33  ;;  %5226 = vmatmul.mubr.f32.vlgmr.msra.gmra.mrb[42].mxu0 %v5152_v33  ;;  %5297 = vmatmul.mubr.f32.vlgmr.msra.gmra.mrb[42].mxu1 %v5152_v33 }
0x15c7   :  { %7520 = vmatpush1.bf16.msra.mxu0 %v9661_v48  ;;  %7552 = vmatpush1.bf16.msra.mxu1 %v9664_v10 }
0x15c8   :  { %7522 = vmatprep.subr.bf16.mxu0 %v9669_v52  ;;  %7554 = vmatprep.subr.bf16.mxu1 %v9671_v55 }
0x15c9   :  { %5404 = vmatprep.mubr.f32.mxu0 %v8460_v0  ;;  %5475 = vmatprep.mubr.f32.mxu1 %v8460_v0 }
0x15cb   :  { %7524 = vmatpush1.bf16.msra.mxu0 %v9673_v13  ;;  %7556 = vmatpush1.bf16.msra.mxu1 %v9676_v60 }
0x15cc   :  { %7526 = vmatprep.subr.bf16.mxu0 %v9681_v8  ;;  %7558 = vmatprep.subr.bf16.mxu1 %v9683_v63 }
0x15cf   :  { %7528 = vmatpush1.bf16.msra.mxu0 %v9685_v12  ;;  %7560 = vmatpush1.bf16.msra.mxu1 %v9688_v26 }
0x15d0   :  { %7530 = vmatprep.subr.bf16.mxu0 %v9693_v4  ;;  %7562 = vmatprep.subr.bf16.mxu1 %v9695_v28 }
0x15d3   :  { %7532 = vmatpush1.bf16.msra.mxu0 %v9697_v42  ;;  %7564 = vmatpush1.bf16.msra.mxu1 %v9700_v62 }
0x15d4   :  { %7534 = vmatprep.subr.bf16.mxu0 %v9705_v45  ;;  %7566 = vmatprep.subr.bf16.mxu1 %v9707_v30 }
0x15d7   :  { %7536 = vmatpush1.bf16.msra.mxu0 %v9709_v20  ;;  %7568 = vmatpush1.bf16.msra.mxu1 %v9712_v36 }
0x15d8   :  { %7538 = vmatprep.subr.bf16.mxu0 %v9717_v43  ;;  %7570 = vmatprep.subr.bf16.mxu1 %v9719_v56 }
0x15db   :  { %7540 = vmatpush1.bf16.msra.mxu0 %v9721_v34  ;;  %7572 = vmatpush1.bf16.msra.mxu1 %v9724_v17 }
0x15dc   :  { %7542 = vmatprep.subr.bf16.mxu0 %v9729_v9  ;;  %7574 = vmatprep.subr.bf16.mxu1 %v9731_v41 }
0x15df   :  { %7544 = vmatpush1.bf16.msra.mxu0 %v9733_v54  ;;  %7576 = vmatpush1.bf16.msra.mxu1 %v9736_v38 }
0x15e0   :  { %7546 = vmatprep.subr.bf16.mxu0 %v9741_v23  ;;  %7578 = vmatprep.subr.bf16.mxu1 %v9743_v18 }
0x15e3   :  { %7548 = vmatpush1.bf16.msra.mxu0 %v9745_v14  ;;  %7580 = vmatpush1.bf16.msra.mxu1 %v9748_v24 }
0x15e4   :  { %7582 = vmatprep.subr.bf16.mxu0 %v9657_v32  ;;  %7614 = vmatprep.subr.bf16.mxu1 %v9659_v15 }
0x1699   :  { %v5227_v53 = vpop.f32.mrb[42].mxu0  ;;  %v5298_v31 = vpop.f32.mrb[42].mxu1 }
0x169a   :  { %v7743_v3 = vadd.f32 %v5227_v53, %v9802_v37  ;;  %v5229_v40 = vpop.f32.mrb[43].mxu0  ;;  %v5300_v22 = vpop.f32.mrb[43].mxu1  ;;  %v7759_v58 = vadd.f32 %v5298_v31, %v9810_v39  ;;  %v5698_v53 = vld [vmem:[#allocation14 + $0x20] sm:$0xff]  ;;  %v5699_v31 = vld [vmem:[#allocation14 + $0x28] sm:$0xff] }
0x169b   :  { %v7744_v57 = vadd.f32 %v5229_v40, %v9805_v46  ;;  %v7760_v6 = vadd.f32 %v5300_v22, %v9813_v1  ;;  %v5700_v40 = vld [vmem:[#allocation14 + $0x30] sm:$0xff]  ;;  %v5701_v22 = vld [vmem:[#allocation14 + $0x38] sm:$0xff] }
0x169c   :  { %v5919_v59 = vmul.f32 -1.442695, %v7743_v3  ;;  %v5921_v61 = vmul.f32 -1.442695, %v7759_v58  ;;  %v7652_v3 = vpack.c.bf16 %v5699_v31, %v5698_v53 }
0x169d   :  { %v5920_v35 = vmul.f32 -1.442695, %v7744_v57  ;;  %v7655_v57 = vpack.c.bf16 %v5701_v22, %v5700_v40 }
0x169e   :  { %8214 = vpow2.f32 %v5919_v59  ;;  %v5702_v59 = vld [vmem:[#allocation14 + $0x40] sm:$0xff] }
0x169f   :  { %8216 = vpow2.f32 %v5920_v35  ;;  %v5703_v35 = vld [vmem:[#allocation14 + $0x48] sm:$0xff] }
0x16a0   :  { %8218 = vtanh.f32 %v7760_v6  ;;  %v7658_v58 = vpack.c.bf16 %v5703_v35, %v5702_v59  ;;  %v5704_v6 = vld [vmem:[#allocation14 + $0x50] sm:$0xff] }
0x16a1   :  { %8220 = vpow2.f32 %v5921_v61  ;;  %v5705_v61 = vld [vmem:[#allocation14 + $0x58] sm:$0xff] }
0x16a8   :  { %v8215_v32 = vpop.eup %8214 }
0x16a9   :  { %v5316_v47 = vadd.f32 1.0, %v8215_v32  ;;  %v8217_v15 = vpop.eup %8216  ;;  %v7661_v32 = vpack.c.bf16 %v5705_v61, %v5704_v6 }
0x16aa   :  { %v5317_v2 = vadd.f32 1.0, %v8217_v15  ;;  %v8219_v5 = vpop.eup %8218  ;;  %v5707_v15 = vld [vmem:[#allocation14 + $0x68] sm:$0xff] }
0x16ab   :  { %8222 = vrcp.f32 %v5316_v47  ;;  %v8221_v29 = vpop.eup %8220  ;;  %v5706_v47 = vld [vmem:[#allocation14 + $0x60] sm:$0xff] }
0x16ac   :  { %8224 = vrcp.f32 %v5317_v2  ;;  %v5318_v19 = vadd.f32 1.0, %v8221_v29  ;;  %v7664_v2 = vpack.c.bf16 %v5707_v15, %v5706_v47  ;;  %v5709_v29 = vld [vmem:[#allocation14 + $0x78] sm:$0xff] }
0x16ae   :  { %8226 = vrcp.f32 %v5318_v19 }
0x16b5   :  { %v8223_v7 = vpop.eup %8222 }
0x16b6   :  { %v5328_v21 = vmul.f32 %v8223_v7, %v8219_v5  ;;  %v8225_v49 = vpop.eup %8224  ;;  %v5708_v5 = vld [vmem:[#allocation14 + $0x70] sm:$0xff] }
0x16b7   :  { %v5327_v50 = vmul.f32 %v8225_v49, %v9985_v25  ;;  %v5696_v25 = vld [vmem:[#allocation14 + $0x10] sm:$0xff]  ;;  %v7667_v7 = vpack.c.bf16 %v5709_v29, %v5708_v5 }
0x16b8   :  { %v8227_v16 = vpop.eup %8226  ;;  %v7649_v33 = vpack.c.bf16 %v5697_v27, %v5696_v25 }
0x16b9   :  { %v10027_v51 = vadd.f32 %v5328_v21, %v5327_v50 }
0x16bb   :  { %8228 = vtanh.f32 %v10027_v51 }
0x16c5   :  { %v8229_v11 = vpop.eup %8228 }
0x16c6   :  { %v5331_v44 = vmul.f32 %v8229_v11, %v8227_v16 }
0x16c8   :  { %5334 = vst [vmem:[#allocation16 + $0x28] sm:$0xff] %v5331_v44  ;;  %5405 = vmatmul.mubr.f32.vlgmr.msra.gmra.mrb[44].mxu0 %v5331_v44  ;;  %5476 = vmatmul.mubr.f32.vlgmr.msra.gmra.mrb[44].mxu1 %v5331_v44 }
0x16c9   :  { %7584 = vmatpush1.bf16.msra.mxu0 %v9661_v48  ;;  %7616 = vmatpush1.bf16.msra.mxu1 %v9664_v10 }
0x16ca   :  { %7586 = vmatprep.subr.bf16.mxu0 %v9669_v52  ;;  %7618 = vmatprep.subr.bf16.mxu1 %v9671_v55 }
0x16cb   :  { %5583 = vmatprep.mubr.f32.mxu0 %v8460_v0  ;;  %5654 = vmatprep.mubr.f32.mxu1 %v8460_v0 }
0x16cd   :  { %7588 = vmatpush1.bf16.msra.mxu0 %v9673_v13  ;;  %7620 = vmatpush1.bf16.msra.mxu1 %v9676_v60 }
0x16ce   :  { %7590 = vmatprep.subr.bf16.mxu0 %v9681_v8  ;;  %7622 = vmatprep.subr.bf16.mxu1 %v9683_v63 }
0x16d1   :  { %7592 = vmatpush1.bf16.msra.mxu0 %v9685_v12  ;;  %7624 = vmatpush1.bf16.msra.mxu1 %v9688_v26 }
0x16d2   :  { %7594 = vmatprep.subr.bf16.mxu0 %v9693_v4  ;;  %7626 = vmatprep.subr.bf16.mxu1 %v9695_v28 }
0x16d5   :  { %7596 = vmatpush1.bf16.msra.mxu0 %v9697_v42  ;;  %7628 = vmatpush1.bf16.msra.mxu1 %v9700_v62 }
0x16d6   :  { %7598 = vmatprep.subr.bf16.mxu0 %v9705_v45  ;;  %7630 = vmatprep.subr.bf16.mxu1 %v9707_v30 }
0x16d9   :  { %7600 = vmatpush1.bf16.msra.mxu0 %v9709_v20  ;;  %7632 = vmatpush1.bf16.msra.mxu1 %v9712_v36 }
0x16da   :  { %7602 = vmatprep.subr.bf16.mxu0 %v9717_v43  ;;  %7634 = vmatprep.subr.bf16.mxu1 %v9719_v56 }
0x16dd   :  { %7604 = vmatpush1.bf16.msra.mxu0 %v9721_v34  ;;  %7636 = vmatpush1.bf16.msra.mxu1 %v9724_v17 }
0x16de   :  { %7606 = vmatprep.subr.bf16.mxu0 %v9729_v9  ;;  %7638 = vmatprep.subr.bf16.mxu1 %v9731_v41 }
0x16e1   :  { %7608 = vmatpush1.bf16.msra.mxu0 %v9733_v54  ;;  %7640 = vmatpush1.bf16.msra.mxu1 %v9736_v38 }
0x16e2   :  { %7610 = vmatprep.subr.bf16.mxu0 %v9741_v23  ;;  %7642 = vmatprep.subr.bf16.mxu1 %v9743_v18  ;;  %v5694_v23 = vld [vmem:[#allocation14] sm:$0xff]  ;;  %v5695_v18 = vld [vmem:[#allocation14 + $0x8] sm:$0xff] }
0x16e5   :  { %7612 = vmatpush1.bf16.msra.mxu0 %v9745_v14  ;;  %7644 = vmatpush1.bf16.msra.mxu1 %v9748_v24  ;;  %v7646_v14 = vpack.c.bf16 %v5695_v18, %v5694_v23  ;;  %v8461_v24 = vmov 0.0|0.0  }
0x16e6   :  { %7645 = vmatprep.subr.bf16.mxu0 %v8461_v24 }
0x179b   :  { %v5406_v48 = vpop.f32.mrb[44].mxu0  ;;  %v5477_v10 = vpop.f32.mrb[44].mxu1 }
0x179c   :  { %v7745_v52 = vadd.f32 %v5406_v48, %v9802_v37  ;;  %v5408_v55 = vpop.f32.mrb[45].mxu0  ;;  %v5479_v13 = vpop.f32.mrb[45].mxu1  ;;  %v7761_v12 = vadd.f32 %v5477_v10, %v9810_v39 }
0x179d   :  { %v7746_v60 = vadd.f32 %v5408_v55, %v9805_v46  ;;  %v7762_v26 = vadd.f32 %v5479_v13, %v9813_v1 }
0x179e   :  { %v5922_v8 = vmul.f32 -1.442695, %v7745_v52  ;;  %v5924_v4 = vmul.f32 -1.442695, %v7761_v12 }
0x179f   :  { %v5923_v63 = vmul.f32 -1.442695, %v7746_v60 }
0x17a0   :  { %8230 = vpow2.f32 %v5922_v8 }
0x17a1   :  { %8232 = vpow2.f32 %v5923_v63 }
0x17a2   :  { %8234 = vtanh.f32 %v7762_v26 }
0x17a3   :  { %8236 = vpow2.f32 %v5924_v4 }
0x17aa   :  { %v8231_v28 = vpop.eup %8230 }
0x17ab   :  { %v5495_v42 = vadd.f32 1.0, %v8231_v28  ;;  %v8233_v62 = vpop.eup %8232 }
0x17ac   :  { %v5496_v45 = vadd.f32 1.0, %v8233_v62  ;;  %v8235_v30 = vpop.eup %8234 }
0x17ad   :  { %8238 = vrcp.f32 %v5495_v42  ;;  %v8237_v20 = vpop.eup %8236 }
0x17ae   :  { %8240 = vrcp.f32 %v5496_v45  ;;  %v5497_v34 = vadd.f32 1.0, %v8237_v20 }
0x17b0   :  { %8242 = vrcp.f32 %v5497_v34 }
0x17b7   :  { %v8239_v36 = vpop.eup %8238 }
0x17b8   :  { %v5507_v43 = vmul.f32 %v8239_v36, %v8235_v30  ;;  %v8241_v56 = vpop.eup %8240 }
0x17b9   :  { %v5506_v17 = vmul.f32 %v8241_v56, %v10027_v51 }
0x17ba   :  { %v8243_v41 = vpop.eup %8242 }
0x17bb   :  { %v10067_v9 = vadd.f32 %v5507_v43, %v5506_v17 }
0x17bd   :  { %8244 = vtanh.f32 %v10067_v9 }
0x17c7   :  { %v8245_v54 = vpop.eup %8244 }
0x17c8   :  { %v5510_v38 = vmul.f32 %v8245_v54, %v8243_v41 }
0x17ca   :  { %5513 = vst [vmem:[#allocation16 + $0x30] sm:$0xff] %v5510_v38  ;;  %5584 = vmatmul.mubr.f32.vlgmr.msra.gmra.mrb[46].mxu0 %v5510_v38  ;;  %5655 = vmatmul.mubr.f32.vlgmr.msra.gmra.mrb[46].mxu1 %v5510_v38 }
0x17cb   :  { %7647 = vmatpush3.bf16.msra.mxu0 %v7646_v14  ;;  %5978 = vmatprep.mubr.msk.f32.mxu0 %vm8462_vm2, %v8460_v0 }
0x17cc   :  { %7648 = vmatprep.subr.bf16.mxu0 %v8461_v24 }
0x17cf   :  { %7650 = vmatpush3.bf16.msra.mxu0 %v7649_v33 }
0x17d0   :  { %7651 = vmatprep.subr.bf16.mxu0 %v8461_v24 }
0x17d3   :  { %7653 = vmatpush3.bf16.msra.mxu0 %v7652_v3 }
0x17d4   :  { %7654 = vmatprep.subr.bf16.mxu0 %v8461_v24 }
0x17d7   :  { %7656 = vmatpush3.bf16.msra.mxu0 %v7655_v57 }
0x17d8   :  { %7657 = vmatprep.subr.bf16.mxu0 %v8461_v24 }
0x17db   :  { %7659 = vmatpush3.bf16.msra.mxu0 %v7658_v58 }
0x17dc   :  { %7660 = vmatprep.subr.bf16.mxu0 %v8461_v24 }
0x17df   :  { %7662 = vmatpush3.bf16.msra.mxu0 %v7661_v32 }
0x17e0   :  { %7663 = vmatprep.subr.bf16.mxu0 %v8461_v24 }
0x17e3   :  { %7665 = vmatpush3.bf16.msra.mxu0 %v7664_v2 }
0x17e4   :  { %7666 = vmatprep.subr.bf16.mxu0 %v8461_v24 }
0x17e7   :  { %7668 = vmatpush3.bf16.msra.mxu0 %v7667_v7 }
0x189d   :  { %v5585_v21 = vpop.f32.mrb[46].mxu0  ;;  %v5656_v49 = vpop.f32.mrb[46].mxu1 }
0x189e   :  { %v7747_v19 = vadd.f32 %v5585_v21, %v9802_v37  ;;  %v5587_v50 = vpop.f32.mrb[47].mxu0  ;;  %v5658_v51 = vpop.f32.mrb[47].mxu1  ;;  %v7763_v48 = vadd.f32 %v5656_v49, %v9810_v39 }
0x189f   :  { %v7748_v16 = vadd.f32 %v5587_v50, %v9805_v46  ;;  %v7764_v10 = vadd.f32 %v5658_v51, %v9813_v1 }
0x18a0   :  { %v5925_v11 = vmul.f32 -1.442695, %v7747_v19  ;;  %v5927_v52 = vmul.f32 -1.442695, %v7763_v48 }
0x18a1   :  { %v5926_v44 = vmul.f32 -1.442695, %v7748_v16 }
0x18a2   :  { %8246 = vpow2.f32 %v5925_v11 }
0x18a3   :  { %8248 = vpow2.f32 %v5926_v44 }
0x18a4   :  { %8250 = vtanh.f32 %v7764_v10 }
0x18a5   :  { %8252 = vpow2.f32 %v5927_v52 }
0x18ac   :  { %v8247_v55 = vpop.eup %8246 }
0x18ad   :  { %v5674_v13 = vadd.f32 1.0, %v8247_v55  ;;  %v8249_v0 = vpop.eup %8248 }
0x18ae   :  { %v5675_v37 = vadd.f32 1.0, %v8249_v0  ;;  %v8251_v60 = vpop.eup %8250 }
0x18af   :  { %8254 = vrcp.f32 %v5674_v13  ;;  %v8253_v8 = vpop.eup %8252 }
0x18b0   :  { %8256 = vrcp.f32 %v5675_v37  ;;  %v5676_v26 = vadd.f32 1.0, %v8253_v8 }
0x18b2   :  { %8258 = vrcp.f32 %v5676_v26 }
0x18b9   :  { %v8255_v46 = vpop.eup %8254 }
0x18ba   :  { %v5686_v63 = vmul.f32 %v8255_v46, %v8251_v60  ;;  %v8257_v12 = vpop.eup %8256 }
0x18bb   :  { %v5685_v4 = vmul.f32 %v8257_v12, %v10067_v9 }
0x18bc   :  { %v8259_v1 = vpop.eup %8258 }
0x18bd   :  { %v5687_v39 = vadd.f32 %v5686_v63, %v5685_v4 }
0x18bf   :  { %8260 = vtanh.f32 %v5687_v39 }
0x18c9   :  { %v8261_v28 = vpop.eup %8260 }
0x18ca   :  { %v5689_v42 = vmul.f32 %v8261_v28, %v8259_v1 }
0x18cc   :  { %5692 = vst [vmem:[#allocation16 + $0x38] sm:$0xff] %v5689_v42  ;;  %5979 = vmatmul.mubr.f32.vlgmr.msra.gmra.mrb[48].mxu0 %v5689_v42 }
0x18cd   :  { %8405 = shalt.err (!%p8402_p10)
}
0x18ce   :  { %s8406_s4 = scalar_lea.hbm %s10118_s12, 1024 }
0x18cf   :  { %p8407_p11 = scmp.ne.s32.totalorder %s10118_s12, %s8406_s4  ;;  %p8410_p12 = scmp.lt.u32.totalorder %s8406_s4, %s10118_s12 }
0x18d1   :  { %p8412_p13 = pnand %p8410_p12, %p8407_p11 }
0x18d3   :  { %8415 = shalt.err (!%p8412_p13)
}
0x18d4   :  { %5799 = dma.vmem_to_hbm [thread:$0]  %s5794_s15, 1024, %s10118_s12, [#allocation7], %s8458_s8, %s8458_s8, %s8459_s20  }
0x18d5   :  { %v5928_v62 = vld [vmem:[%s10117_s11] ss:$0 sm:$0xff]  ;;  %s8464_s25 = smov [#allocation17]  }
0x18d6   :  { %s5806_s2 = sshll.u32 %s8464_s25, 4  ;;  %s5807_s2 = int_to_ptr.vmem [resolvable:$true] %s5806_s2 }
0x18d7   :  { %s8416_s18 = scalar_lea.vmem %s5807_s2, 128  ;;  %p8421_p1 = scmp.lt.s32.totalorder %s5807_s2, %s5807_s2 }
0x18d8   :  { %p8417_p0 = scmp.ne.s32.totalorder %s5807_s2, %s8416_s18  ;;  %p8422_p2 = scmp.lt.s32.totalorder %s8416_s18, %s8416_s18 }
0x18da   :  { %p8423_p3 = por %p8422_p2, %p8421_p1 }
0x18dc   :  { %p8424_p4 = pnand %p8423_p3, %p8417_p0 }
0x199f   :  { %v5783_v45 = vpop.f32.mrb[48].mxu0 }
0x19a0   :  { %v5784_v30 = vadd.f32 %v5928_v62, %v5783_v45  ;;  %v5980_v20 = vpop.f32.mrb[49].mxu0 }
0x19a2   :  { %5787 = vst [vmem:[#allocation17] sm:$0xff] %v5784_v30 }
0x19a3   :  { %8427 = shalt.err (!%p8424_p4)
}
0x19a4   :  { %s8428_s8 = scalar_lea.hbm %s10119_s13, 128 }
0x19a5   :  { %p8429_p5 = scmp.ne.s32.totalorder %s10119_s13, %s8428_s8  ;;  %p8432_p6 = scmp.lt.u32.totalorder %s8428_s8, %s10119_s13 }
0x19a7   :  { %p8434_p7 = pnand %p8432_p6, %p8429_p5 }
0x19a9   :  { %8437 = shalt.err (!%p8434_p7)
}
0x19aa   :  { %5809 = dma.vmem_to_hbm [thread:$0]  %s5807_s2, 128, %s10119_s13, [#allocation18]  }
0x19ab   :  { %8446 = dma.done.wait [#allocation7], 1024  }
0x19ac   :  { %8447 = vsyncadd [#allocation7], 4294966272 }
0x19ad   :  { %8448 = dma.done.wait [#allocation18], 128  }
0x19ae   :  { %8449 = vsyncadd [#allocation18], 4294967168 }
0x19af   :  { %5816 = vsyncpa [#allocation6], 1 }
0x19b0   :  { %5817 = vsyncpa [#allocation9], 1 }
0x19b1   :  { %5818 = vsyncpa [#allocation12], 1 }
0x19b2   :  { %5819 = vsyncpa [#allocation15], 1 }
0x19b3   :  { %5820 = vsyncpa [#allocation7], 1 }
0x19b4   :  { %5821 = vsyncpa [#allocation18], 1 }

</bundles_post_ra>
